<compile_context>
chip_gen: v5e
topology: v5e:2x2
jax: 0.10.0
libtpu: 0.0.40
codegen_flags: <defaults>
</compile_context>

<pallas_src>
import math

import jax
import jax.numpy as jnp
from jax.experimental import pallas as pl
from jax.experimental.pallas import tpu as pltpu

# ----------------------------- model configuration (small test shapes) --------------------------
D_MODEL = 32
NUM_HEADS = 4
D_K = D_MODEL // NUM_HEADS
D_FF = 64
NUM_LAYERS = 2
VOCAB = 128          # src & tgt vocab; multiple of 128 keeps the logits store lane-dense
MAX_SEQ = 16
EPS = 1e-5
NEG = -1e9

# Matmul operand dtype.  jnp.bfloat16 on v6e/v7x doubles MXU throughput (accumulation stays f32,
# LayerNorm/softmax stay f32); keep float32 on v5e and for tight parity with the f32 reference.
COMPUTE_DTYPE = jnp.float32


# ============================================ kernel =============================================

def transformer_stack_kernel(
    # per-batch activations (1,S,D) and compact additive attention biases (1,S,S)
    x_emb_ref, y_emb_ref, src_bias_ref, tgt_bias_ref,
    # encoder stack: weights stacked over layers, packed per-head, pre-transposed to (in, out)
    e_wqkv_ref, e_bqkv_ref, e_wo_ref, e_bo_ref, e_w1_ref, e_b1_ref, e_w2_ref, e_b2_ref, e_ln_ref,
    # decoder stack: self-attn, cross-attn, ffn, layer norms
    ds_wqkv_ref, ds_bqkv_ref, ds_wo_ref, ds_bo_ref,
    dc_wqkv_ref, dc_bqkv_ref, dc_wo_ref, dc_bo_ref,
    d_w1_ref, d_b1_ref, d_w2_ref, d_b2_ref, d_ln_ref,
    # final projection
    fc_w_ref, fc_b_ref,
    out_ref,
):
    num_layers = e_wqkv_ref.shape[0]
    num_heads = e_wqkv_ref.shape[1]
    d_model = e_wqkv_ref.shape[2]
    d_k = d_model // num_heads

    def mm(a, b):
        # plain 2-D matmul on the MXU, f32 accumulation
        return jnp.dot(a.astype(COMPUTE_DTYPE), b.astype(COMPUTE_DTYPE),
                       preferred_element_type=jnp.float32)

    def bmm(eq, a, b):
        # heads-batched matmul (single dot_general, heads as batch dim), f32 accumulation
        return jnp.einsum(eq, a.astype(COMPUTE_DTYPE), b.astype(COMPUTE_DTYPE),
                          preferred_element_type=jnp.float32)

    def layer_norm(x, gamma, beta):
        mean = jnp.mean(x, axis=-1, keepdims=True)
        var = jnp.mean((x - mean) ** 2, axis=-1, keepdims=True)
        return (x - mean) * jax.lax.rsqrt(var + EPS) * gamma + beta

    def softmax(s):
        m = jnp.max(s, axis=-1, keepdims=True)
        e = jnp.exp(s - m)
        # divide -> EUP reciprocal (frees the VALU slot on the softmax critical path)
        return e * pl.reciprocal(jnp.sum(e, axis=-1, keepdims=True), approx=True)

    def mha(xq, xkv, bias, w_qkv, b_qkv, w_o, b_o, is_self):
        # xq/xkv: (S, D).  w_qkv: (H, D, 3*d_k) per-head slabs (1/sqrt(d_k) folded into the Q slab
        # at pack time).  b_qkv: (H, 1, 3*d_k).  w_o: (H, d_k, D).  b_o: (1, D).
        # bias: (S, S) additive mask (0 keep / -1e9 masked), broadcast over heads.
        xq_b = jnp.broadcast_to(xq, (num_heads,) + xq.shape)            # (H, S, D)
        if is_self:
            qkv = bmm('hsd,hdk->hsk', xq_b, w_qkv) + b_qkv              # fused QKV: one issue
            q = qkv[:, :, :d_k]
            k = qkv[:, :, d_k:2 * d_k]
            v = qkv[:, :, 2 * d_k:]
        else:                                                           # cross: Q decoder, K/V enc
            xkv_b = jnp.broadcast_to(xkv, (num_heads,) + xkv.shape)
            q = bmm('hsd,hdk->hsk', xq_b, w_qkv[:, :, :d_k]) + b_qkv[:, :, :d_k]
            kv = bmm('hsd,hdk->hsk', xkv_b, w_qkv[:, :, d_k:]) + b_qkv[:, :, d_k:]
            k = kv[:, :, :d_k]
            v = kv[:, :, d_k:]
        s = bmm('hqd,hkd->hqk', q, k) + bias[None]                      # (H, S, S); scale pre-baked
        p = softmax(s)
        ctx = bmm('hqk,hkd->hqd', p, v)                                 # (H, S, d_k)
        heads = bmm('hqd,hdm->hqm', ctx, w_o)                           # (H, S, D)
        return jnp.sum(heads, axis=0) + b_o                             # combine heads: slab sum

    x = x_emb_ref[0]                                                    # (S, D) encoder stream
    y = y_emb_ref[0]                                                    # (S, D) decoder stream
    src_bias = src_bias_ref[0]                                          # (S, S)
    tgt_bias = tgt_bias_ref[0]                                          # (S, S)

    # ------------------------------------- encoder stack -------------------------------------
    # TODO(synk): for real depths, stream per-layer weights over an "arbitrary" grid axis instead
    # of this static unroll (bounds vreg live ranges + keeps VMEM flat in depth on v7x's 64 MiB).
    for l in range(num_layers):
        ln = e_ln_ref[l]                                                # (4, D): g1, b1, g2, b2
        attn = mha(x, x, src_bias,
                   e_wqkv_ref[l], e_bqkv_ref[l], e_wo_ref[l], e_bo_ref[l], is_self=True)
        x = layer_norm(x + attn, ln[0:1], ln[1:2])
        hidden = jnp.maximum(mm(x, e_w1_ref[l]) + e_b1_ref[l], 0.0)
        ff = mm(hidden, e_w2_ref[l]) + e_b2_ref[l]
        x = layer_norm(x + ff, ln[2:3], ln[3:4])

    # ------------------------------------- decoder stack -------------------------------------
    for l in range(num_layers):
        ln = d_ln_ref[l]                                                # (6, D): g1,b1,g2,b2,g3,b3
        sa = mha(y, y, tgt_bias,
                 ds_wqkv_ref[l], ds_bqkv_ref[l], ds_wo_ref[l], ds_bo_ref[l], is_self=True)
        y = layer_norm(y + sa, ln[0:1], ln[1:2])
        ca = mha(y, x, src_bias,
                 dc_wqkv_ref[l], dc_bqkv_ref[l], dc_wo_ref[l], dc_bo_ref[l], is_self=False)
        y = layer_norm(y + ca, ln[2:3], ln[3:4])
        hidden = jnp.maximum(mm(y, d_w1_ref[l]) + d_b1_ref[l], 0.0)
        ff = mm(hidden, d_w2_ref[l]) + d_b2_ref[l]
        y = layer_norm(y + ff, ln[4:5], ln[5:6])

    # final projection; VOCAB is a multiple of 128 -> lane-dense (unmasked) store
    out_ref[0] = mm(y, fc_w_ref[...]) + fc_b_ref[...]


# ==================================== parameters (PyTorch layout) ================================

def _linear_params(key, out_dim, in_dim):
    kw, kb = jax.random.split(key)
    bound = 1.0 / math.sqrt(in_dim)
    return {"w": jax.random.uniform(kw, (out_dim, in_dim), jnp.float32, -bound, bound),
            "b": jax.random.uniform(kb, (out_dim,), jnp.float32, -bound, bound)}


def _mha_params(key):
    ks = jax.random.split(key, 4)
    return {n: _linear_params(k, D_MODEL, D_MODEL) for n, k in zip(("wq", "wk", "wv", "wo"), ks)}


def _ffn_params(key):
    k1, k2 = jax.random.split(key)
    return {"fc1": _linear_params(k1, D_FF, D_MODEL), "fc2": _linear_params(k2, D_MODEL, D_FF)}


def _ln_params(key):
    # PyTorch default is ones/zeros; perturbed slightly so the parity check exercises gamma/beta.
    kg, kb = jax.random.split(key)
    return {"g": 1.0 + 0.1 * jax.random.normal(kg, (D_MODEL,), jnp.float32),
            "b": 0.1 * jax.random.normal(kb, (D_MODEL,), jnp.float32)}


def _positional_encoding(max_len, d):
    pos = jnp.arange(max_len, dtype=jnp.float32)[:, None]
    div = jnp.exp(jnp.arange(0, d, 2, dtype=jnp.float32) * (-math.log(10000.0) / d))
    pe = jnp.zeros((max_len, d), jnp.float32)
    pe = pe.at[:, 0::2].set(jnp.sin(pos * div))
    pe = pe.at[:, 1::2].set(jnp.cos(pos * div))
    return pe


def init_transformer_params(key):
    k_se, k_te, k_fc, k_enc, k_dec = jax.random.split(key, 5)
    encoder, decoder = [], []
    for k in jax.random.split(k_enc, NUM_LAYERS):
        ka, kf, k1, k2 = jax.random.split(k, 4)
        encoder.append({"attn": _mha_params(ka), "ffn": _ffn_params(kf),
                        "ln1": _ln_params(k1), "ln2": _ln_params(k2)})
    for k in jax.random.split(k_dec, NUM_LAYERS):
        ka, kc, kf, k1, k2, k3 = jax.random.split(k, 6)
        decoder.append({"self": _mha_params(ka), "cross": _mha_params(kc), "ffn": _ffn_params(kf),
                        "ln1": _ln_params(k1), "ln2": _ln_params(k2), "ln3": _ln_params(k3)})
    return {"src_emb": jax.random.normal(k_se, (VOCAB, D_MODEL), jnp.float32),
            "tgt_emb": jax.random.normal(k_te, (VOCAB, D_MODEL), jnp.float32),
            "fc": _linear_params(k_fc, VOCAB, D_MODEL),
            "pe": _positional_encoding(MAX_SEQ, D_MODEL),
            "encoder": encoder, "decoder": decoder}


# ============================== one-time host-side weight packing ================================

def _pack_attn(p):
    """Pack one MHA module into per-head slabs, pre-transposed to (in, out).
    W_qkv: (H, D, 3*d_k) with the 1/sqrt(d_k) attention scale folded into the Q slab (and bias)."""
    scale = 1.0 / math.sqrt(D_K)

    def per_head_w(w):                                   # (D_out, D_in) -> (H, D_in, d_k)
        return w.T.reshape(D_MODEL, NUM_HEADS, D_K).transpose(1, 0, 2)

    def per_head_b(b):                                   # (D,) -> (H, 1, d_k)
        return b.reshape(NUM_HEADS, 1, D_K)

    w_qkv = jnp.concatenate([per_head_w(p["wq"]["w"]) * scale,
                             per_head_w(p["wk"]["w"]),
                             per_head_w(p["wv"]["w"])], axis=2)          # (H, D, 3*d_k)
    b_qkv = jnp.concatenate([per_head_b(p["wq"]["b"]) * scale,
                             per_head_b(p["wk"]["b"]),
                             per_head_b(p["wv"]["b"])], axis=2)          # (H, 1, 3*d_k)
    w_o = p["wo"]["w"].T.reshape(NUM_HEADS, D_K, D_MODEL)                # (H, d_k, D)
    b_o = p["wo"]["b"][None, :]                                          # (1, D)
    return w_qkv, b_qkv, w_o, b_o


def _pack_ffn(p):
    return p["fc1"]["w"].T, p["fc1"]["b"][None, :], p["fc2"]["w"].T, p["fc2"]["b"][None, :]


def pack_params(params):
    def stack(fn, layers):
        cols = list(zip(*[fn(l) for l in layers]))
        return [jnp.stack(c) for c in cols]

    enc, dec = params["encoder"], params["decoder"]
    e_attn = stack(lambda l: _pack_attn(l["attn"]), enc)
    e_ffn = stack(lambda l: _pack_ffn(l["ffn"]), enc)
    e_ln = jnp.stack([jnp.stack([l["ln1"]["g"], l["ln1"]["b"],
                                 l["ln2"]["g"], l["ln2"]["b"]]) for l in enc])
    d_self = stack(lambda l: _pack_attn(l["self"]), dec)
    d_cross = stack(lambda l: _pack_attn(l["cross"]), dec)
    d_ffn = stack(lambda l: _pack_ffn(l["ffn"]), dec)
    d_ln = jnp.stack([jnp.stack([l["ln1"]["g"], l["ln1"]["b"], l["ln2"]["g"], l["ln2"]["b"],
                                 l["ln3"]["g"], l["ln3"]["b"]]) for l in dec])
    return {"src_emb": params["src_emb"], "tgt_emb": params["tgt_emb"], "pe": params["pe"],
            "enc": (*e_attn, *e_ffn, e_ln),
            "dec": (*d_self, *d_cross, *d_ffn, d_ln),
            "fc": (params["fc"]["w"].T, params["fc"]["b"][None, :])}


# ============================================ wrapper =============================================

def _mask_to_bias(mask, B, S):
    """(B,1,S,S) / (B,S,S) keep-mask (or None) -> compact (B, S, S) additive bias:
    0 where attention is allowed, -1e9 where masked."""
    if mask is None:
        return jnp.zeros((B, S, S), jnp.float32)
    keep = jnp.asarray(mask).reshape(B, S, S) != 0
    return jnp.where(keep, 0.0, NEG).astype(jnp.float32)


def _cost_estimate(B, S, arg_bytes, out_bytes):
    mha = (2 * S * D_MODEL * 3 * D_MODEL          # fused QKV
           + 2 * NUM_HEADS * S * S * D_K          # scores
           + 2 * NUM_HEADS * S * S * D_K          # ctx
           + 2 * S * D_MODEL * D_MODEL)           # output projection
    ffn = 4 * S * D_MODEL * D_FF
    flops = B * (NUM_LAYERS * ((mha + ffn) + (2 * mha + ffn)) + 2 * S * D_MODEL * VOCAB)
    # exp per softmax element + rsqrt/reciprocal per row (rough)
    transc = B * (3 * NUM_LAYERS) * (NUM_HEADS * S * S + NUM_HEADS * S) + B * 5 * NUM_LAYERS * S
    return pl.CostEstimate(flops=int(flops), transcendentals=int(transc),
                           bytes_accessed=int(arg_bytes + out_bytes))


def transformer_forward(packed, src_ids, tgt_ids, src_mask=None, tgt_mask=None):
    B, S = src_ids.shape
    vocab = packed["fc"][0].shape[1]

    # TODO(synk): embedding gather + positional encoding stay in the wrapper (jnp.take); an
    # in-kernel DMA-gather adds nothing at this vocab size.  Dropout == identity (eval mode).
    pos = packed["pe"][:S][None]                                        # (1, S, D)
    x_emb = jnp.take(packed["src_emb"], src_ids, axis=0) + pos          # (B, S, D)
    y_emb = jnp.take(packed["tgt_emb"], tgt_ids, axis=0) + pos          # (B, S, D)
    src_bias = _mask_to_bias(src_mask, B, S)                            # (B, S, S)
    tgt_bias = _mask_to_bias(tgt_mask, B, S)                            # (B, S, S)

    weights = (*packed["enc"], *packed["dec"], *packed["fc"])
    args = (x_emb, y_emb, src_bias, tgt_bias, *weights)

    def batched_spec(arr):
        # one batch slice per grid step
        rest = arr.shape[1:]
        zeros = (0,) * len(rest)
        return pl.BlockSpec((1,) + rest, lambda b, _z=zeros: (b,) + _z)

    def resident_spec(arr):
        # full array, constant block index -> fetched once, stays resident across grid steps
        zeros = (0,) * arr.ndim
        return pl.BlockSpec(arr.shape, lambda b, _z=zeros: _z)

    in_specs = ([batched_spec(a) for a in (x_emb, y_emb, src_bias, tgt_bias)]
                + [resident_spec(w) for w in weights])
    out_spec = pl.BlockSpec((1, S, vocab), lambda b: (b, 0, 0))

    arg_bytes = sum(int(a.size) * a.dtype.itemsize for a in args)
    out_bytes = B * S * vocab * 4

    logits = pl.pallas_call(
        transformer_stack_kernel,
        out_shape=jax.ShapeDtypeStruct((B, S, vocab), jnp.float32),
        grid=(B,),                                                       # batch axis: parallel
        in_specs=in_specs,
        out_specs=out_spec,
        compiler_params=pltpu.CompilerParams(
            dimension_semantics=("parallel",),       # shard batches across TCs on v7x megacore
            vmem_limit_bytes=16 * 1024 * 1024,       # actual footprint ≪ 1 MiB; explicit headroom
        ),
        cost_estimate=_cost_estimate(B, S, arg_bytes, out_bytes),
    )(*args)
    return logits


# ===================================== pure-JAX reference ========================================

def ref_forward(params, src_ids, tgt_ids, src_mask, tgt_mask):
    B, S = src_ids.shape

    def linear(x, p):
        return x @ p["w"].T + p["b"]

    def mha(p, q, k, v, mask):
        def split(t):
            return t.reshape(B, S, NUM_HEADS, D_K).transpose(0, 2, 1, 3)
        Q, K, V = split(linear(q, p["wq"])), split(linear(k, p["wk"])), split(linear(v, p["wv"]))
        s = jnp.einsum("bhqd,bhkd->bhqk", Q, K) / math.sqrt(D_K)
        if mask is not None:
            s = jnp.where(mask == 0, NEG, s)
        a = jax.nn.softmax(s, axis=-1)
        o = jnp.einsum("bhqk,bhkd->bhqd", a, V).transpose(0, 2, 1, 3).reshape(B, S, D_MODEL)
        return linear(o, p["wo"])

    def layer_norm(x, p):
        m = x.mean(-1, keepdims=True)
        v = ((x - m) ** 2).mean(-1, keepdims=True)
        return (x - m) / jnp.sqrt(v + EPS) * p["g"] + p["b"]

    def ffn(x, p):
        return linear(jnp.maximum(linear(x, p["fc1"]), 0.0), p["fc2"])

    pe = params["pe"][:S][None]
    x = jnp.take(params["src_emb"], src_ids, axis=0) + pe
    y = jnp.take(params["tgt_emb"], tgt_ids, axis=0) + pe
    for lp in params["encoder"]:
        x = layer_norm(x + mha(lp["attn"], x, x, x, src_mask), lp["ln1"])
        x = layer_norm(x + ffn(x, lp["ffn"]), lp["ln2"])
    for lp in params["decoder"]:
        y = layer_norm(y + mha(lp["self"], y, y, y, tgt_mask), lp["ln1"])
        y = layer_norm(y + mha(lp["cross"], y, x, x, src_mask), lp["ln2"])
        y = layer_norm(y + ffn(y, lp["ffn"]), lp["ln3"])
    return linear(y, params["fc"])


# ============================================== main ==============================================

if __name__ == "__main__":
    B, S = 2, 8
    root = jax.random.PRNGKey(0)
    k_params, k_src, k_tgt = jax.random.split(root, 3)

    params = init_transformer_params(k_params)
    packed = pack_params(params)      # one-time host transform: per-head slabs, fused QKV, stacked

    src_ids = jax.random.randint(k_src, (B, S), 1, VOCAB)
    tgt_ids = jax.random.randint(k_tgt, (B, S), 1, VOCAB)

    # masks in the PyTorch forward() interface: (B, 1, S, S), 1 = keep, 0 = masked
    tgt_mask = jnp.broadcast_to(jnp.tril(jnp.ones((S, S), jnp.float32)), (B, 1, S, S))
    src_mask = jnp.ones((B, 1, S, S), jnp.float32)

    out = transformer_forward(packed, src_ids, tgt_ids, src_mask, tgt_mask)
    out = jax.block_until_ready(out)

    ref = ref_forward(params, src_ids, tgt_ids, src_mask, tgt_mask)
    assert out.shape == (B, S, VOCAB)
    # tolerance covers the EUP approx-reciprocal in softmax (f32 path); looser if bf16 matmuls
    tol = 5e-3 if COMPUTE_DTYPE == jnp.float32 else 5e-2
    max_err = float(jnp.max(jnp.abs(out - ref)))
    assert jnp.allclose(out, ref, atol=tol, rtol=tol), f"mismatch vs reference, max err {max_err}"

    print("KERNEL_OK")
</pallas_src>

<mosaic_0001>
module attributes {stable_mosaic.version = 11 : i64} {
  func.func @transformer_stack_kernel(%arg0: i32, %arg1: memref<1x8x32xf32, #tpu.memory_space<vmem>>, %arg2: memref<1x8x32xf32, #tpu.memory_space<vmem>>, %arg3: memref<1x8x8xf32, #tpu.memory_space<vmem>>, %arg4: memref<1x8x8xf32, #tpu.memory_space<vmem>>, %arg5: memref<2x4x32x24xf32, #tpu.memory_space<vmem>>, %arg6: memref<2x4x1x24xf32, #tpu.memory_space<vmem>>, %arg7: memref<2x4x8x32xf32, #tpu.memory_space<vmem>>, %arg8: memref<2x1x32xf32, #tpu.memory_space<vmem>>, %arg9: memref<2x32x64xf32, #tpu.memory_space<vmem>>, %arg10: memref<2x1x64xf32, #tpu.memory_space<vmem>>, %arg11: memref<2x64x32xf32, #tpu.memory_space<vmem>>, %arg12: memref<2x1x32xf32, #tpu.memory_space<vmem>>, %arg13: memref<2x4x32xf32, #tpu.memory_space<vmem>>, %arg14: memref<2x4x32x24xf32, #tpu.memory_space<vmem>>, %arg15: memref<2x4x1x24xf32, #tpu.memory_space<vmem>>, %arg16: memref<2x4x8x32xf32, #tpu.memory_space<vmem>>, %arg17: memref<2x1x32xf32, #tpu.memory_space<vmem>>, %arg18: memref<2x4x32x24xf32, #tpu.memory_space<vmem>>, %arg19: memref<2x4x1x24xf32, #tpu.memory_space<vmem>>, %arg20: memref<2x4x8x32xf32, #tpu.memory_space<vmem>>, %arg21: memref<2x1x32xf32, #tpu.memory_space<vmem>>, %arg22: memref<2x32x64xf32, #tpu.memory_space<vmem>>, %arg23: memref<2x1x64xf32, #tpu.memory_space<vmem>>, %arg24: memref<2x64x32xf32, #tpu.memory_space<vmem>>, %arg25: memref<2x1x32xf32, #tpu.memory_space<vmem>>, %arg26: memref<2x6x32xf32, #tpu.memory_space<vmem>>, %arg27: memref<32x128xf32, #tpu.memory_space<vmem>>, %arg28: memref<1x128xf32, #tpu.memory_space<vmem>>, %arg29: memref<1x8x128xf32, #tpu.memory_space<vmem>>) attributes {dimension_semantics = [#tpu.dimension_semantics<parallel>], iteration_bounds = array<i64: 2>, scalar_prefetch = 0 : i64, scratch_operands = 0 : i64, tpu.core_type = #tpu.core_type<tc>, window_params = [{transform_indices = @transform_0, window_bounds = array<i64: 1, 8, 32>}, {transform_indices = @transform_1, window_bounds = array<i64: 1, 8, 32>}, {transform_indices = @transform_2, window_bounds = array<i64: 1, 8, 8>}, {transform_indices = @transform_3, window_bounds = array<i64: 1, 8, 8>}, {pipeline_mode = #tpu.pipeline_mode<synchronous>, transform_indices = @transform_4, window_bounds = array<i64: 2, 4, 32, 24>}, {pipeline_mode = #tpu.pipeline_mode<synchronous>, transform_indices = @transform_5, window_bounds = array<i64: 2, 4, 1, 24>}, {pipeline_mode = #tpu.pipeline_mode<synchronous>, transform_indices = @transform_6, window_bounds = array<i64: 2, 4, 8, 32>}, {pipeline_mode = #tpu.pipeline_mode<synchronous>, transform_indices = @transform_7, window_bounds = array<i64: 2, 1, 32>}, {pipeline_mode = #tpu.pipeline_mode<synchronous>, transform_indices = @transform_8, window_bounds = array<i64: 2, 32, 64>}, {pipeline_mode = #tpu.pipeline_mode<synchronous>, transform_indices = @transform_9, window_bounds = array<i64: 2, 1, 64>}, {pipeline_mode = #tpu.pipeline_mode<synchronous>, transform_indices = @transform_10, window_bounds = array<i64: 2, 64, 32>}, {pipeline_mode = #tpu.pipeline_mode<synchronous>, transform_indices = @transform_11, window_bounds = array<i64: 2, 1, 32>}, {pipeline_mode = #tpu.pipeline_mode<synchronous>, transform_indices = @transform_12, window_bounds = array<i64: 2, 4, 32>}, {pipeline_mode = #tpu.pipeline_mode<synchronous>, transform_indices = @transform_13, window_bounds = array<i64: 2, 4, 32, 24>}, {pipeline_mode = #tpu.pipeline_mode<synchronous>, transform_indices = @transform_14, window_bounds = array<i64: 2, 4, 1, 24>}, {pipeline_mode = #tpu.pipeline_mode<synchronous>, transform_indices = @transform_15, window_bounds = array<i64: 2, 4, 8, 32>}, {pipeline_mode = #tpu.pipeline_mode<synchronous>, transform_indices = @transform_16, window_bounds = array<i64: 2, 1, 32>}, {pipeline_mode = #tpu.pipeline_mode<synchronous>, transform_indices = @transform_17, window_bounds = array<i64: 2, 4, 32, 24>}, {pipeline_mode = #tpu.pipeline_mode<synchronous>, transform_indices = @transform_18, window_bounds = array<i64: 2, 4, 1, 24>}, {pipeline_mode = #tpu.pipeline_mode<synchronous>, transform_indices = @transform_19, window_bounds = array<i64: 2, 4, 8, 32>}, {pipeline_mode = #tpu.pipeline_mode<synchronous>, transform_indices = @transform_20, window_bounds = array<i64: 2, 1, 32>}, {pipeline_mode = #tpu.pipeline_mode<synchronous>, transform_indices = @transform_21, window_bounds = array<i64: 2, 32, 64>}, {pipeline_mode = #tpu.pipeline_mode<synchronous>, transform_indices = @transform_22, window_bounds = array<i64: 2, 1, 64>}, {pipeline_mode = #tpu.pipeline_mode<synchronous>, transform_indices = @transform_23, window_bounds = array<i64: 2, 64, 32>}, {pipeline_mode = #tpu.pipeline_mode<synchronous>, transform_indices = @transform_24, window_bounds = array<i64: 2, 1, 32>}, {pipeline_mode = #tpu.pipeline_mode<synchronous>, transform_indices = @transform_25, window_bounds = array<i64: 2, 6, 32>}, {pipeline_mode = #tpu.pipeline_mode<synchronous>, transform_indices = @transform_26, window_bounds = array<i64: 32, 128>}, {pipeline_mode = #tpu.pipeline_mode<synchronous>, transform_indices = @transform_27, window_bounds = array<i64: 1, 128>}, {transform_indices = @transform_28, window_bounds = array<i64: 1, 8, 128>}]} {
    %c0 = arith.constant 0 : index
    %c0_0 = arith.constant 0 : index
    %c0_1 = arith.constant 0 : index
    %0 = vector.load %arg1[%c0, %c0_0, %c0_1] : memref<1x8x32xf32, #tpu.memory_space<vmem>>, vector<1x8x32xf32>
    %1 = vector.shape_cast %0 : vector<1x8x32xf32> to vector<8x32xf32>
    %c0_2 = arith.constant 0 : index
    %c0_3 = arith.constant 0 : index
    %c0_4 = arith.constant 0 : index
    %2 = vector.load %arg2[%c0_2, %c0_3, %c0_4] : memref<1x8x32xf32, #tpu.memory_space<vmem>>, vector<1x8x32xf32>
    %3 = vector.shape_cast %2 : vector<1x8x32xf32> to vector<8x32xf32>
    %c0_5 = arith.constant 0 : index
    %c0_6 = arith.constant 0 : index
    %c0_7 = arith.constant 0 : index
    %4 = vector.load %arg3[%c0_5, %c0_6, %c0_7] : memref<1x8x8xf32, #tpu.memory_space<vmem>>, vector<1x8x8xf32>
    %5 = vector.shape_cast %4 : vector<1x8x8xf32> to vector<8x8xf32>
    %c0_8 = arith.constant 0 : index
    %c0_9 = arith.constant 0 : index
    %c0_10 = arith.constant 0 : index
    %6 = vector.load %arg4[%c0_8, %c0_9, %c0_10] : memref<1x8x8xf32, #tpu.memory_space<vmem>>, vector<1x8x8xf32>
    %7 = vector.shape_cast %6 : vector<1x8x8xf32> to vector<8x8xf32>
    %c0_11 = arith.constant 0 : index
    %c0_12 = arith.constant 0 : index
    %c0_13 = arith.constant 0 : index
    %8 = vector.load %arg13[%c0_11, %c0_12, %c0_13] : memref<2x4x32xf32, #tpu.memory_space<vmem>>, vector<1x4x32xf32>
    %9 = vector.shape_cast %8 : vector<1x4x32xf32> to vector<4x32xf32>
    %c0_14 = arith.constant 0 : index
    %c0_15 = arith.constant 0 : index
    %c0_16 = arith.constant 0 : index
    %c0_17 = arith.constant 0 : index
    %10 = vector.load %arg5[%c0_14, %c0_15, %c0_16, %c0_17] : memref<2x4x32x24xf32, #tpu.memory_space<vmem>>, vector<1x4x32x24xf32>
    %11 = vector.shape_cast %10 : vector<1x4x32x24xf32> to vector<4x32x24xf32>
    %c0_18 = arith.constant 0 : index
    %c0_19 = arith.constant 0 : index
    %c0_20 = arith.constant 0 : index
    %c0_21 = arith.constant 0 : index
    %12 = vector.load %arg6[%c0_18, %c0_19, %c0_20, %c0_21] : memref<2x4x1x24xf32, #tpu.memory_space<vmem>>, vector<1x4x1x24xf32>
    %13 = vector.shape_cast %12 : vector<1x4x1x24xf32> to vector<4x1x24xf32>
    %c0_22 = arith.constant 0 : index
    %c0_23 = arith.constant 0 : index
    %c0_24 = arith.constant 0 : index
    %c0_25 = arith.constant 0 : index
    %14 = vector.load %arg7[%c0_22, %c0_23, %c0_24, %c0_25] : memref<2x4x8x32xf32, #tpu.memory_space<vmem>>, vector<1x4x8x32xf32>
    %15 = vector.shape_cast %14 : vector<1x4x8x32xf32> to vector<4x8x32xf32>
    %c0_26 = arith.constant 0 : index
    %c0_27 = arith.constant 0 : index
    %c0_28 = arith.constant 0 : index
    %16 = vector.load %arg8[%c0_26, %c0_27, %c0_28] : memref<2x1x32xf32, #tpu.memory_space<vmem>>, vector<1x1x32xf32>
    %17 = vector.shape_cast %16 : vector<1x1x32xf32> to vector<1x32xf32>
    %18 = vector.shape_cast %1 : vector<8x32xf32> to vector<1x8x32xf32>
    %19 = vector.broadcast %18 : vector<1x8x32xf32> to vector<4x8x32xf32>
    "tpu.trace_start"() <{level = 10 : i32, message = "hsd,hdk->hsk"}> : () -> ()
    %cst = arith.constant dense<0.000000e+00> : vector<4x8x24xf32>
    %20 = tpu.matmul %19, %11, %cst {dimension_numbers = #tpu.dot_dimension_numbers<[2], [1], [1], [2], [0, 0, 0, 1, 1, 2], [0], [0]>} : vector<4x8x32xf32>, vector<4x32x24xf32>, vector<4x8x24xf32> -> vector<4x8x24xf32>
    "tpu.trace_stop"() : () -> ()
    %21 = vector.broadcast %13 : vector<4x1x24xf32> to vector<4x8x24xf32>
    %22 = arith.addf %20, %21 : vector<4x8x24xf32>
    %23 = vector.extract_strided_slice %22 {offsets = [0, 0, 0], sizes = [4, 8, 8], strides = [1, 1, 1]} : vector<4x8x24xf32> to vector<4x8x8xf32>
    %24 = vector.extract_strided_slice %22 {offsets = [0, 0, 8], sizes = [4, 8, 8], strides = [1, 1, 1]} : vector<4x8x24xf32> to vector<4x8x8xf32>
    %25 = vector.extract_strided_slice %22 {offsets = [0, 0, 16], sizes = [4, 8, 8], strides = [1, 1, 1]} : vector<4x8x24xf32> to vector<4x8x8xf32>
    "tpu.trace_start"() <{level = 10 : i32, message = "hqd,hkd->hqk"}> : () -> ()
    %cst_29 = arith.constant dense<0.000000e+00> : vector<4x8x8xf32>
    %26 = tpu.matmul %23, %24, %cst_29 {dimension_numbers = #tpu.dot_dimension_numbers<[2], [2], [1], [1], [0, 0, 0, 1, 1, 1], [0], [0]>} : vector<4x8x8xf32>, vector<4x8x8xf32>, vector<4x8x8xf32> -> vector<4x8x8xf32>
    "tpu.trace_stop"() : () -> ()
    %27 = vector.shape_cast %5 : vector<8x8xf32> to vector<1x8x8xf32>
    %28 = vector.broadcast %27 : vector<1x8x8xf32> to vector<4x8x8xf32>
    %29 = arith.addf %26, %28 : vector<4x8x8xf32>
    %cst_30 = arith.constant dense<0xFF800000> : vector<4x8xf32>
    %30 = vector.multi_reduction <maximumf>, %29, %cst_30 [2] : vector<4x8x8xf32> to vector<4x8xf32>
    %31 = vector.shape_cast %30 : vector<4x8xf32> to vector<4x8x1xf32>
    %32 = vector.broadcast %31 : vector<4x8x1xf32> to vector<4x8x8xf32>
    %33 = arith.subf %29, %32 : vector<4x8x8xf32>
    %34 = math.exp %33 : vector<4x8x8xf32>
    %cst_31 = arith.constant dense<0.000000e+00> : vector<4x8xf32>
    %35 = vector.multi_reduction <add>, %34, %cst_31 [2] : vector<4x8x8xf32> to vector<4x8xf32>
    %36 = vector.shape_cast %35 : vector<4x8xf32> to vector<4x8x1xf32>
    %37 = tpu.reciprocal %36 {approx = true} : vector<4x8x1xf32> -> vector<4x8x1xf32>
    %38 = vector.broadcast %37 : vector<4x8x1xf32> to vector<4x8x8xf32>
    %39 = arith.mulf %34, %38 : vector<4x8x8xf32>
    "tpu.trace_start"() <{level = 10 : i32, message = "hqk,hkd->hqd"}> : () -> ()
    %cst_32 = arith.constant dense<0.000000e+00> : vector<4x8x8xf32>
    %40 = tpu.matmul %39, %25, %cst_32 {dimension_numbers = #tpu.dot_dimension_numbers<[2], [1], [1], [2], [0, 0, 0, 1, 1, 2], [0], [0]>} : vector<4x8x8xf32>, vector<4x8x8xf32>, vector<4x8x8xf32> -> vector<4x8x8xf32>
    "tpu.trace_stop"() : () -> ()
    "tpu.trace_start"() <{level = 10 : i32, message = "hqd,hdm->hqm"}> : () -> ()
    %cst_33 = arith.constant dense<0.000000e+00> : vector<4x8x32xf32>
    %41 = tpu.matmul %40, %15, %cst_33 {dimension_numbers = #tpu.dot_dimension_numbers<[2], [1], [1], [2], [0, 0, 0, 1, 1, 2], [0], [0]>} : vector<4x8x8xf32>, vector<4x8x32xf32>, vector<4x8x32xf32> -> vector<4x8x32xf32>
    "tpu.trace_stop"() : () -> ()
    %cst_34 = arith.constant dense<0.000000e+00> : vector<8x32xf32>
    %42 = vector.multi_reduction <add>, %41, %cst_34 [0] : vector<4x8x32xf32> to vector<8x32xf32>
    %43 = vector.broadcast %17 : vector<1x32xf32> to vector<8x32xf32>
    %44 = arith.addf %42, %43 : vector<8x32xf32>
    %45 = arith.addf %1, %44 : vector<8x32xf32>
    %46 = vector.extract_strided_slice %9 {offsets = [0, 0], sizes = [1, 32], strides = [1, 1]} : vector<4x32xf32> to vector<1x32xf32>
    %47 = vector.extract_strided_slice %9 {offsets = [1, 0], sizes = [1, 32], strides = [1, 1]} : vector<4x32xf32> to vector<1x32xf32>
    %cst_35 = arith.constant dense<0.000000e+00> : vector<8xf32>
    %48 = vector.multi_reduction <add>, %45, %cst_35 [1] : vector<8x32xf32> to vector<8xf32>
    %49 = vector.shape_cast %48 : vector<8xf32> to vector<8x1xf32>
    %cst_36 = arith.constant 3.200000e+01 : f32
    %50 = vector.broadcast %cst_36 : f32 to vector<8x1xf32>
    %51 = arith.divf %49, %50 : vector<8x1xf32>
    %52 = vector.broadcast %51 : vector<8x1xf32> to vector<8x32xf32>
    %53 = arith.subf %45, %52 : vector<8x32xf32>
    %54 = arith.mulf %53, %53 : vector<8x32xf32>
    %cst_37 = arith.constant dense<0.000000e+00> : vector<8xf32>
    %55 = vector.multi_reduction <add>, %54, %cst_37 [1] : vector<8x32xf32> to vector<8xf32>
    %56 = vector.shape_cast %55 : vector<8xf32> to vector<8x1xf32>
    %cst_38 = arith.constant 3.200000e+01 : f32
    %57 = vector.broadcast %cst_38 : f32 to vector<8x1xf32>
    %58 = arith.divf %56, %57 : vector<8x1xf32>
    %59 = vector.broadcast %51 : vector<8x1xf32> to vector<8x32xf32>
    %60 = arith.subf %45, %59 : vector<8x32xf32>
    %cst_39 = arith.constant 9.99999974E-6 : f32
    %61 = vector.broadcast %cst_39 : f32 to vector<8x1xf32>
    %62 = arith.addf %58, %61 : vector<8x1xf32>
    %63 = math.rsqrt %62 : vector<8x1xf32>
    %64 = vector.broadcast %63 : vector<8x1xf32> to vector<8x32xf32>
    %65 = arith.mulf %60, %64 : vector<8x32xf32>
    %66 = vector.broadcast %46 : vector<1x32xf32> to vector<8x32xf32>
    %67 = arith.mulf %65, %66 : vector<8x32xf32>
    %68 = vector.broadcast %47 : vector<1x32xf32> to vector<8x32xf32>
    %69 = arith.addf %67, %68 : vector<8x32xf32>
    %c0_40 = arith.constant 0 : index
    %c0_41 = arith.constant 0 : index
    %c0_42 = arith.constant 0 : index
    %70 = vector.load %arg9[%c0_40, %c0_41, %c0_42] : memref<2x32x64xf32, #tpu.memory_space<vmem>>, vector<1x32x64xf32>
    %71 = vector.shape_cast %70 : vector<1x32x64xf32> to vector<32x64xf32>
    %cst_43 = arith.constant dense<0.000000e+00> : vector<8x64xf32>
    %72 = tpu.matmul %69, %71, %cst_43 {dimension_numbers = #tpu.dot_dimension_numbers<[1], [0], [0], [1], [0, 0, 1, 1], [], []>} : vector<8x32xf32>, vector<32x64xf32>, vector<8x64xf32> -> vector<8x64xf32>
    %c0_44 = arith.constant 0 : index
    %c0_45 = arith.constant 0 : index
    %c0_46 = arith.constant 0 : index
    %73 = vector.load %arg10[%c0_44, %c0_45, %c0_46] : memref<2x1x64xf32, #tpu.memory_space<vmem>>, vector<1x1x64xf32>
    %74 = vector.shape_cast %73 : vector<1x1x64xf32> to vector<1x64xf32>
    %75 = vector.broadcast %74 : vector<1x64xf32> to vector<8x64xf32>
    %76 = arith.addf %72, %75 : vector<8x64xf32>
    %cst_47 = arith.constant 0.000000e+00 : f32
    %77 = vector.broadcast %cst_47 : f32 to vector<8x64xf32>
    %78 = arith.maximumf %76, %77 : vector<8x64xf32>
    %c0_48 = arith.constant 0 : index
    %c0_49 = arith.constant 0 : index
    %c0_50 = arith.constant 0 : index
    %79 = vector.load %arg11[%c0_48, %c0_49, %c0_50] : memref<2x64x32xf32, #tpu.memory_space<vmem>>, vector<1x64x32xf32>
    %80 = vector.shape_cast %79 : vector<1x64x32xf32> to vector<64x32xf32>
    %cst_51 = arith.constant dense<0.000000e+00> : vector<8x32xf32>
    %81 = tpu.matmul %78, %80, %cst_51 {dimension_numbers = #tpu.dot_dimension_numbers<[1], [0], [0], [1], [0, 0, 1, 1], [], []>} : vector<8x64xf32>, vector<64x32xf32>, vector<8x32xf32> -> vector<8x32xf32>
    %c0_52 = arith.constant 0 : index
    %c0_53 = arith.constant 0 : index
    %c0_54 = arith.constant 0 : index
    %82 = vector.load %arg12[%c0_52, %c0_53, %c0_54] : memref<2x1x32xf32, #tpu.memory_space<vmem>>, vector<1x1x32xf32>
    %83 = vector.shape_cast %82 : vector<1x1x32xf32> to vector<1x32xf32>
    %84 = vector.broadcast %83 : vector<1x32xf32> to vector<8x32xf32>
    %85 = arith.addf %81, %84 : vector<8x32xf32>
    %86 = arith.addf %69, %85 : vector<8x32xf32>
    %87 = vector.extract_strided_slice %9 {offsets = [2, 0], sizes = [1, 32], strides = [1, 1]} : vector<4x32xf32> to vector<1x32xf32>
    %88 = vector.extract_strided_slice %9 {offsets = [3, 0], sizes = [1, 32], strides = [1, 1]} : vector<4x32xf32> to vector<1x32xf32>
    %cst_55 = arith.constant dense<0.000000e+00> : vector<8xf32>
    %89 = vector.multi_reduction <add>, %86, %cst_55 [1] : vector<8x32xf32> to vector<8xf32>
    %90 = vector.shape_cast %89 : vector<8xf32> to vector<8x1xf32>
    %cst_56 = arith.constant 3.200000e+01 : f32
    %91 = vector.broadcast %cst_56 : f32 to vector<8x1xf32>
    %92 = arith.divf %90, %91 : vector<8x1xf32>
    %93 = vector.broadcast %92 : vector<8x1xf32> to vector<8x32xf32>
    %94 = arith.subf %86, %93 : vector<8x32xf32>
    %95 = arith.mulf %94, %94 : vector<8x32xf32>
    %cst_57 = arith.constant dense<0.000000e+00> : vector<8xf32>
    %96 = vector.multi_reduction <add>, %95, %cst_57 [1] : vector<8x32xf32> to vector<8xf32>
    %97 = vector.shape_cast %96 : vector<8xf32> to vector<8x1xf32>
    %cst_58 = arith.constant 3.200000e+01 : f32
    %98 = vector.broadcast %cst_58 : f32 to vector<8x1xf32>
    %99 = arith.divf %97, %98 : vector<8x1xf32>
    %100 = vector.broadcast %92 : vector<8x1xf32> to vector<8x32xf32>
    %101 = arith.subf %86, %100 : vector<8x32xf32>
    %cst_59 = arith.constant 9.99999974E-6 : f32
    %102 = vector.broadcast %cst_59 : f32 to vector<8x1xf32>
    %103 = arith.addf %99, %102 : vector<8x1xf32>
    %104 = math.rsqrt %103 : vector<8x1xf32>
    %105 = vector.broadcast %104 : vector<8x1xf32> to vector<8x32xf32>
    %106 = arith.mulf %101, %105 : vector<8x32xf32>
    %107 = vector.broadcast %87 : vector<1x32xf32> to vector<8x32xf32>
    %108 = arith.mulf %106, %107 : vector<8x32xf32>
    %109 = vector.broadcast %88 : vector<1x32xf32> to vector<8x32xf32>
    %110 = arith.addf %108, %109 : vector<8x32xf32>
    %c1 = arith.constant 1 : index
    %c0_60 = arith.constant 0 : index
    %c0_61 = arith.constant 0 : index
    %111 = vector.load %arg13[%c1, %c0_60, %c0_61] : memref<2x4x32xf32, #tpu.memory_space<vmem>>, vector<1x4x32xf32>
    %112 = vector.shape_cast %111 : vector<1x4x32xf32> to vector<4x32xf32>
    %c1_62 = arith.constant 1 : index
    %c0_63 = arith.constant 0 : index
    %c0_64 = arith.constant 0 : index
    %c0_65 = arith.constant 0 : index
    %113 = vector.load %arg5[%c1_62, %c0_63, %c0_64, %c0_65] : memref<2x4x32x24xf32, #tpu.memory_space<vmem>>, vector<1x4x32x24xf32>
    %114 = vector.shape_cast %113 : vector<1x4x32x24xf32> to vector<4x32x24xf32>
    %c1_66 = arith.constant 1 : index
    %c0_67 = arith.constant 0 : index
    %c0_68 = arith.constant 0 : index
    %c0_69 = arith.constant 0 : index
    %115 = vector.load %arg6[%c1_66, %c0_67, %c0_68, %c0_69] : memref<2x4x1x24xf32, #tpu.memory_space<vmem>>, vector<1x4x1x24xf32>
    %116 = vector.shape_cast %115 : vector<1x4x1x24xf32> to vector<4x1x24xf32>
    %c1_70 = arith.constant 1 : index
    %c0_71 = arith.constant 0 : index
    %c0_72 = arith.constant 0 : index
    %c0_73 = arith.constant 0 : index
    %117 = vector.load %arg7[%c1_70, %c0_71, %c0_72, %c0_73] : memref<2x4x8x32xf32, #tpu.memory_space<vmem>>, vector<1x4x8x32xf32>
    %118 = vector.shape_cast %117 : vector<1x4x8x32xf32> to vector<4x8x32xf32>
    %c1_74 = arith.constant 1 : index
    %c0_75 = arith.constant 0 : index
    %c0_76 = arith.constant 0 : index
    %119 = vector.load %arg8[%c1_74, %c0_75, %c0_76] : memref<2x1x32xf32, #tpu.memory_space<vmem>>, vector<1x1x32xf32>
    %120 = vector.shape_cast %119 : vector<1x1x32xf32> to vector<1x32xf32>
    %121 = vector.shape_cast %110 : vector<8x32xf32> to vector<1x8x32xf32>
    %122 = vector.broadcast %121 : vector<1x8x32xf32> to vector<4x8x32xf32>
    "tpu.trace_start"() <{level = 10 : i32, message = "hsd,hdk->hsk"}> : () -> ()
    %cst_77 = arith.constant dense<0.000000e+00> : vector<4x8x24xf32>
    %123 = tpu.matmul %122, %114, %cst_77 {dimension_numbers = #tpu.dot_dimension_numbers<[2], [1], [1], [2], [0, 0, 0, 1, 1, 2], [0], [0]>} : vector<4x8x32xf32>, vector<4x32x24xf32>, vector<4x8x24xf32> -> vector<4x8x24xf32>
    "tpu.trace_stop"() : () -> ()
    %124 = vector.broadcast %116 : vector<4x1x24xf32> to vector<4x8x24xf32>
    %125 = arith.addf %123, %124 : vector<4x8x24xf32>
    %126 = vector.extract_strided_slice %125 {offsets = [0, 0, 0], sizes = [4, 8, 8], strides = [1, 1, 1]} : vector<4x8x24xf32> to vector<4x8x8xf32>
    %127 = vector.extract_strided_slice %125 {offsets = [0, 0, 8], sizes = [4, 8, 8], strides = [1, 1, 1]} : vector<4x8x24xf32> to vector<4x8x8xf32>
    %128 = vector.extract_strided_slice %125 {offsets = [0, 0, 16], sizes = [4, 8, 8], strides = [1, 1, 1]} : vector<4x8x24xf32> to vector<4x8x8xf32>
    "tpu.trace_start"() <{level = 10 : i32, message = "hqd,hkd->hqk"}> : () -> ()
    %cst_78 = arith.constant dense<0.000000e+00> : vector<4x8x8xf32>
    %129 = tpu.matmul %126, %127, %cst_78 {dimension_numbers = #tpu.dot_dimension_numbers<[2], [2], [1], [1], [0, 0, 0, 1, 1, 1], [0], [0]>} : vector<4x8x8xf32>, vector<4x8x8xf32>, vector<4x8x8xf32> -> vector<4x8x8xf32>
    "tpu.trace_stop"() : () -> ()
    %130 = vector.shape_cast %5 : vector<8x8xf32> to vector<1x8x8xf32>
    %131 = vector.broadcast %130 : vector<1x8x8xf32> to vector<4x8x8xf32>
    %132 = arith.addf %129, %131 : vector<4x8x8xf32>
    %cst_79 = arith.constant dense<0xFF800000> : vector<4x8xf32>
    %133 = vector.multi_reduction <maximumf>, %132, %cst_79 [2] : vector<4x8x8xf32> to vector<4x8xf32>
    %134 = vector.shape_cast %133 : vector<4x8xf32> to vector<4x8x1xf32>
    %135 = vector.broadcast %134 : vector<4x8x1xf32> to vector<4x8x8xf32>
    %136 = arith.subf %132, %135 : vector<4x8x8xf32>
    %137 = math.exp %136 : vector<4x8x8xf32>
    %cst_80 = arith.constant dense<0.000000e+00> : vector<4x8xf32>
    %138 = vector.multi_reduction <add>, %137, %cst_80 [2] : vector<4x8x8xf32> to vector<4x8xf32>
    %139 = vector.shape_cast %138 : vector<4x8xf32> to vector<4x8x1xf32>
    %140 = tpu.reciprocal %139 {approx = true} : vector<4x8x1xf32> -> vector<4x8x1xf32>
    %141 = vector.broadcast %140 : vector<4x8x1xf32> to vector<4x8x8xf32>
    %142 = arith.mulf %137, %141 : vector<4x8x8xf32>
    "tpu.trace_start"() <{level = 10 : i32, message = "hqk,hkd->hqd"}> : () -> ()
    %cst_81 = arith.constant dense<0.000000e+00> : vector<4x8x8xf32>
    %143 = tpu.matmul %142, %128, %cst_81 {dimension_numbers = #tpu.dot_dimension_numbers<[2], [1], [1], [2], [0, 0, 0, 1, 1, 2], [0], [0]>} : vector<4x8x8xf32>, vector<4x8x8xf32>, vector<4x8x8xf32> -> vector<4x8x8xf32>
    "tpu.trace_stop"() : () -> ()
    "tpu.trace_start"() <{level = 10 : i32, message = "hqd,hdm->hqm"}> : () -> ()
    %cst_82 = arith.constant dense<0.000000e+00> : vector<4x8x32xf32>
    %144 = tpu.matmul %143, %118, %cst_82 {dimension_numbers = #tpu.dot_dimension_numbers<[2], [1], [1], [2], [0, 0, 0, 1, 1, 2], [0], [0]>} : vector<4x8x8xf32>, vector<4x8x32xf32>, vector<4x8x32xf32> -> vector<4x8x32xf32>
    "tpu.trace_stop"() : () -> ()
    %cst_83 = arith.constant dense<0.000000e+00> : vector<8x32xf32>
    %145 = vector.multi_reduction <add>, %144, %cst_83 [0] : vector<4x8x32xf32> to vector<8x32xf32>
    %146 = vector.broadcast %120 : vector<1x32xf32> to vector<8x32xf32>
    %147 = arith.addf %145, %146 : vector<8x32xf32>
    %148 = arith.addf %110, %147 : vector<8x32xf32>
    %149 = vector.extract_strided_slice %112 {offsets = [0, 0], sizes = [1, 32], strides = [1, 1]} : vector<4x32xf32> to vector<1x32xf32>
    %150 = vector.extract_strided_slice %112 {offsets = [1, 0], sizes = [1, 32], strides = [1, 1]} : vector<4x32xf32> to vector<1x32xf32>
    %cst_84 = arith.constant dense<0.000000e+00> : vector<8xf32>
    %151 = vector.multi_reduction <add>, %148, %cst_84 [1] : vector<8x32xf32> to vector<8xf32>
    %152 = vector.shape_cast %151 : vector<8xf32> to vector<8x1xf32>
    %cst_85 = arith.constant 3.200000e+01 : f32
    %153 = vector.broadcast %cst_85 : f32 to vector<8x1xf32>
    %154 = arith.divf %152, %153 : vector<8x1xf32>
    %155 = vector.broadcast %154 : vector<8x1xf32> to vector<8x32xf32>
    %156 = arith.subf %148, %155 : vector<8x32xf32>
    %157 = arith.mulf %156, %156 : vector<8x32xf32>
    %cst_86 = arith.constant dense<0.000000e+00> : vector<8xf32>
    %158 = vector.multi_reduction <add>, %157, %cst_86 [1] : vector<8x32xf32> to vector<8xf32>
    %159 = vector.shape_cast %158 : vector<8xf32> to vector<8x1xf32>
    %cst_87 = arith.constant 3.200000e+01 : f32
    %160 = vector.broadcast %cst_87 : f32 to vector<8x1xf32>
    %161 = arith.divf %159, %160 : vector<8x1xf32>
    %162 = vector.broadcast %154 : vector<8x1xf32> to vector<8x32xf32>
    %163 = arith.subf %148, %162 : vector<8x32xf32>
    %cst_88 = arith.constant 9.99999974E-6 : f32
    %164 = vector.broadcast %cst_88 : f32 to vector<8x1xf32>
    %165 = arith.addf %161, %164 : vector<8x1xf32>
    %166 = math.rsqrt %165 : vector<8x1xf32>
    %167 = vector.broadcast %166 : vector<8x1xf32> to vector<8x32xf32>
    %168 = arith.mulf %163, %167 : vector<8x32xf32>
    %169 = vector.broadcast %149 : vector<1x32xf32> to vector<8x32xf32>
    %170 = arith.mulf %168, %169 : vector<8x32xf32>
    %171 = vector.broadcast %150 : vector<1x32xf32> to vector<8x32xf32>
    %172 = arith.addf %170, %171 : vector<8x32xf32>
    %c1_89 = arith.constant 1 : index
    %c0_90 = arith.constant 0 : index
    %c0_91 = arith.constant 0 : index
    %173 = vector.load %arg9[%c1_89, %c0_90, %c0_91] : memref<2x32x64xf32, #tpu.memory_space<vmem>>, vector<1x32x64xf32>
    %174 = vector.shape_cast %173 : vector<1x32x64xf32> to vector<32x64xf32>
    %cst_92 = arith.constant dense<0.000000e+00> : vector<8x64xf32>
    %175 = tpu.matmul %172, %174, %cst_92 {dimension_numbers = #tpu.dot_dimension_numbers<[1], [0], [0], [1], [0, 0, 1, 1], [], []>} : vector<8x32xf32>, vector<32x64xf32>, vector<8x64xf32> -> vector<8x64xf32>
    %c1_93 = arith.constant 1 : index
    %c0_94 = arith.constant 0 : index
    %c0_95 = arith.constant 0 : index
    %176 = vector.load %arg10[%c1_93, %c0_94, %c0_95] : memref<2x1x64xf32, #tpu.memory_space<vmem>>, vector<1x1x64xf32>
    %177 = vector.shape_cast %176 : vector<1x1x64xf32> to vector<1x64xf32>
    %178 = vector.broadcast %177 : vector<1x64xf32> to vector<8x64xf32>
    %179 = arith.addf %175, %178 : vector<8x64xf32>
    %cst_96 = arith.constant 0.000000e+00 : f32
    %180 = vector.broadcast %cst_96 : f32 to vector<8x64xf32>
    %181 = arith.maximumf %179, %180 : vector<8x64xf32>
    %c1_97 = arith.constant 1 : index
    %c0_98 = arith.constant 0 : index
    %c0_99 = arith.constant 0 : index
    %182 = vector.load %arg11[%c1_97, %c0_98, %c0_99] : memref<2x64x32xf32, #tpu.memory_space<vmem>>, vector<1x64x32xf32>
    %183 = vector.shape_cast %182 : vector<1x64x32xf32> to vector<64x32xf32>
    %cst_100 = arith.constant dense<0.000000e+00> : vector<8x32xf32>
    %184 = tpu.matmul %181, %183, %cst_100 {dimension_numbers = #tpu.dot_dimension_numbers<[1], [0], [0], [1], [0, 0, 1, 1], [], []>} : vector<8x64xf32>, vector<64x32xf32>, vector<8x32xf32> -> vector<8x32xf32>
    %c1_101 = arith.constant 1 : index
    %c0_102 = arith.constant 0 : index
    %c0_103 = arith.constant 0 : index
    %185 = vector.load %arg12[%c1_101, %c0_102, %c0_103] : memref<2x1x32xf32, #tpu.memory_space<vmem>>, vector<1x1x32xf32>
    %186 = vector.shape_cast %185 : vector<1x1x32xf32> to vector<1x32xf32>
    %187 = vector.broadcast %186 : vector<1x32xf32> to vector<8x32xf32>
    %188 = arith.addf %184, %187 : vector<8x32xf32>
    %189 = arith.addf %172, %188 : vector<8x32xf32>
    %190 = vector.extract_strided_slice %112 {offsets = [2, 0], sizes = [1, 32], strides = [1, 1]} : vector<4x32xf32> to vector<1x32xf32>
    %191 = vector.extract_strided_slice %112 {offsets = [3, 0], sizes = [1, 32], strides = [1, 1]} : vector<4x32xf32> to vector<1x32xf32>
    %cst_104 = arith.constant dense<0.000000e+00> : vector<8xf32>
    %192 = vector.multi_reduction <add>, %189, %cst_104 [1] : vector<8x32xf32> to vector<8xf32>
    %193 = vector.shape_cast %192 : vector<8xf32> to vector<8x1xf32>
    %cst_105 = arith.constant 3.200000e+01 : f32
    %194 = vector.broadcast %cst_105 : f32 to vector<8x1xf32>
    %195 = arith.divf %193, %194 : vector<8x1xf32>
    %196 = vector.broadcast %195 : vector<8x1xf32> to vector<8x32xf32>
    %197 = arith.subf %189, %196 : vector<8x32xf32>
    %198 = arith.mulf %197, %197 : vector<8x32xf32>
    %cst_106 = arith.constant dense<0.000000e+00> : vector<8xf32>
    %199 = vector.multi_reduction <add>, %198, %cst_106 [1] : vector<8x32xf32> to vector<8xf32>
    %200 = vector.shape_cast %199 : vector<8xf32> to vector<8x1xf32>
    %cst_107 = arith.constant 3.200000e+01 : f32
    %201 = vector.broadcast %cst_107 : f32 to vector<8x1xf32>
    %202 = arith.divf %200, %201 : vector<8x1xf32>
    %203 = vector.broadcast %195 : vector<8x1xf32> to vector<8x32xf32>
    %204 = arith.subf %189, %203 : vector<8x32xf32>
    %cst_108 = arith.constant 9.99999974E-6 : f32
    %205 = vector.broadcast %cst_108 : f32 to vector<8x1xf32>
    %206 = arith.addf %202, %205 : vector<8x1xf32>
    %207 = math.rsqrt %206 : vector<8x1xf32>
    %208 = vector.broadcast %207 : vector<8x1xf32> to vector<8x32xf32>
    %209 = arith.mulf %204, %208 : vector<8x32xf32>
    %210 = vector.broadcast %190 : vector<1x32xf32> to vector<8x32xf32>
    %211 = arith.mulf %209, %210 : vector<8x32xf32>
    %212 = vector.broadcast %191 : vector<1x32xf32> to vector<8x32xf32>
    %213 = arith.addf %211, %212 : vector<8x32xf32>
    %c0_109 = arith.constant 0 : index
    %c0_110 = arith.constant 0 : index
    %c0_111 = arith.constant 0 : index
    %214 = vector.load %arg26[%c0_109, %c0_110, %c0_111] : memref<2x6x32xf32, #tpu.memory_space<vmem>>, vector<1x6x32xf32>
    %215 = vector.shape_cast %214 : vector<1x6x32xf32> to vector<6x32xf32>
    %c0_112 = arith.constant 0 : index
    %c0_113 = arith.constant 0 : index
    %c0_114 = arith.constant 0 : index
    %c0_115 = arith.constant 0 : index
    %216 = vector.load %arg14[%c0_112, %c0_113, %c0_114, %c0_115] : memref<2x4x32x24xf32, #tpu.memory_space<vmem>>, vector<1x4x32x24xf32>
    %217 = vector.shape_cast %216 : vector<1x4x32x24xf32> to vector<4x32x24xf32>
    %c0_116 = arith.constant 0 : index
    %c0_117 = arith.constant 0 : index
    %c0_118 = arith.constant 0 : index
    %c0_119 = arith.constant 0 : index
    %218 = vector.load %arg15[%c0_116, %c0_117, %c0_118, %c0_119] : memref<2x4x1x24xf32, #tpu.memory_space<vmem>>, vector<1x4x1x24xf32>
    %219 = vector.shape_cast %218 : vector<1x4x1x24xf32> to vector<4x1x24xf32>
    %c0_120 = arith.constant 0 : index
    %c0_121 = arith.constant 0 : index
    %c0_122 = arith.constant 0 : index
    %c0_123 = arith.constant 0 : index
    %220 = vector.load %arg16[%c0_120, %c0_121, %c0_122, %c0_123] : memref<2x4x8x32xf32, #tpu.memory_space<vmem>>, vector<1x4x8x32xf32>
    %221 = vector.shape_cast %220 : vector<1x4x8x32xf32> to vector<4x8x32xf32>
    %c0_124 = arith.constant 0 : index
    %c0_125 = arith.constant 0 : index
    %c0_126 = arith.constant 0 : index
    %222 = vector.load %arg17[%c0_124, %c0_125, %c0_126] : memref<2x1x32xf32, #tpu.memory_space<vmem>>, vector<1x1x32xf32>
    %223 = vector.shape_cast %222 : vector<1x1x32xf32> to vector<1x32xf32>
    %224 = vector.shape_cast %3 : vector<8x32xf32> to vector<1x8x32xf32>
    %225 = vector.broadcast %224 : vector<1x8x32xf32> to vector<4x8x32xf32>
    "tpu.trace_start"() <{level = 10 : i32, message = "hsd,hdk->hsk"}> : () -> ()
    %cst_127 = arith.constant dense<0.000000e+00> : vector<4x8x24xf32>
    %226 = tpu.matmul %225, %217, %cst_127 {dimension_numbers = #tpu.dot_dimension_numbers<[2], [1], [1], [2], [0, 0, 0, 1, 1, 2], [0], [0]>} : vector<4x8x32xf32>, vector<4x32x24xf32>, vector<4x8x24xf32> -> vector<4x8x24xf32>
    "tpu.trace_stop"() : () -> ()
    %227 = vector.broadcast %219 : vector<4x1x24xf32> to vector<4x8x24xf32>
    %228 = arith.addf %226, %227 : vector<4x8x24xf32>
    %229 = vector.extract_strided_slice %228 {offsets = [0, 0, 0], sizes = [4, 8, 8], strides = [1, 1, 1]} : vector<4x8x24xf32> to vector<4x8x8xf32>
    %230 = vector.extract_strided_slice %228 {offsets = [0, 0, 8], sizes = [4, 8, 8], strides = [1, 1, 1]} : vector<4x8x24xf32> to vector<4x8x8xf32>
    %231 = vector.extract_strided_slice %228 {offsets = [0, 0, 16], sizes = [4, 8, 8], strides = [1, 1, 1]} : vector<4x8x24xf32> to vector<4x8x8xf32>
    "tpu.trace_start"() <{level = 10 : i32, message = "hqd,hkd->hqk"}> : () -> ()
    %cst_128 = arith.constant dense<0.000000e+00> : vector<4x8x8xf32>
    %232 = tpu.matmul %229, %230, %cst_128 {dimension_numbers = #tpu.dot_dimension_numbers<[2], [2], [1], [1], [0, 0, 0, 1, 1, 1], [0], [0]>} : vector<4x8x8xf32>, vector<4x8x8xf32>, vector<4x8x8xf32> -> vector<4x8x8xf32>
    "tpu.trace_stop"() : () -> ()
    %233 = vector.shape_cast %7 : vector<8x8xf32> to vector<1x8x8xf32>
    %234 = vector.broadcast %233 : vector<1x8x8xf32> to vector<4x8x8xf32>
    %235 = arith.addf %232, %234 : vector<4x8x8xf32>
    %cst_129 = arith.constant dense<0xFF800000> : vector<4x8xf32>
    %236 = vector.multi_reduction <maximumf>, %235, %cst_129 [2] : vector<4x8x8xf32> to vector<4x8xf32>
    %237 = vector.shape_cast %236 : vector<4x8xf32> to vector<4x8x1xf32>
    %238 = vector.broadcast %237 : vector<4x8x1xf32> to vector<4x8x8xf32>
    %239 = arith.subf %235, %238 : vector<4x8x8xf32>
    %240 = math.exp %239 : vector<4x8x8xf32>
    %cst_130 = arith.constant dense<0.000000e+00> : vector<4x8xf32>
    %241 = vector.multi_reduction <add>, %240, %cst_130 [2] : vector<4x8x8xf32> to vector<4x8xf32>
    %242 = vector.shape_cast %241 : vector<4x8xf32> to vector<4x8x1xf32>
    %243 = tpu.reciprocal %242 {approx = true} : vector<4x8x1xf32> -> vector<4x8x1xf32>
    %244 = vector.broadcast %243 : vector<4x8x1xf32> to vector<4x8x8xf32>
    %245 = arith.mulf %240, %244 : vector<4x8x8xf32>
    "tpu.trace_start"() <{level = 10 : i32, message = "hqk,hkd->hqd"}> : () -> ()
    %cst_131 = arith.constant dense<0.000000e+00> : vector<4x8x8xf32>
    %246 = tpu.matmul %245, %231, %cst_131 {dimension_numbers = #tpu.dot_dimension_numbers<[2], [1], [1], [2], [0, 0, 0, 1, 1, 2], [0], [0]>} : vector<4x8x8xf32>, vector<4x8x8xf32>, vector<4x8x8xf32> -> vector<4x8x8xf32>
    "tpu.trace_stop"() : () -> ()
    "tpu.trace_start"() <{level = 10 : i32, message = "hqd,hdm->hqm"}> : () -> ()
    %cst_132 = arith.constant dense<0.000000e+00> : vector<4x8x32xf32>
    %247 = tpu.matmul %246, %221, %cst_132 {dimension_numbers = #tpu.dot_dimension_numbers<[2], [1], [1], [2], [0, 0, 0, 1, 1, 2], [0], [0]>} : vector<4x8x8xf32>, vector<4x8x32xf32>, vector<4x8x32xf32> -> vector<4x8x32xf32>
    "tpu.trace_stop"() : () -> ()
    %cst_133 = arith.constant dense<0.000000e+00> : vector<8x32xf32>
    %248 = vector.multi_reduction <add>, %247, %cst_133 [0] : vector<4x8x32xf32> to vector<8x32xf32>
    %249 = vector.broadcast %223 : vector<1x32xf32> to vector<8x32xf32>
    %250 = arith.addf %248, %249 : vector<8x32xf32>
    %251 = arith.addf %3, %250 : vector<8x32xf32>
    %252 = vector.extract_strided_slice %215 {offsets = [0, 0], sizes = [1, 32], strides = [1, 1]} : vector<6x32xf32> to vector<1x32xf32>
    %253 = vector.extract_strided_slice %215 {offsets = [1, 0], sizes = [1, 32], strides = [1, 1]} : vector<6x32xf32> to vector<1x32xf32>
    %cst_134 = arith.constant dense<0.000000e+00> : vector<8xf32>
    %254 = vector.multi_reduction <add>, %251, %cst_134 [1] : vector<8x32xf32> to vector<8xf32>
    %255 = vector.shape_cast %254 : vector<8xf32> to vector<8x1xf32>
    %cst_135 = arith.constant 3.200000e+01 : f32
    %256 = vector.broadcast %cst_135 : f32 to vector<8x1xf32>
    %257 = arith.divf %255, %256 : vector<8x1xf32>
    %258 = vector.broadcast %257 : vector<8x1xf32> to vector<8x32xf32>
    %259 = arith.subf %251, %258 : vector<8x32xf32>
    %260 = arith.mulf %259, %259 : vector<8x32xf32>
    %cst_136 = arith.constant dense<0.000000e+00> : vector<8xf32>
    %261 = vector.multi_reduction <add>, %260, %cst_136 [1] : vector<8x32xf32> to vector<8xf32>
    %262 = vector.shape_cast %261 : vector<8xf32> to vector<8x1xf32>
    %cst_137 = arith.constant 3.200000e+01 : f32
    %263 = vector.broadcast %cst_137 : f32 to vector<8x1xf32>
    %264 = arith.divf %262, %263 : vector<8x1xf32>
    %265 = vector.broadcast %257 : vector<8x1xf32> to vector<8x32xf32>
    %266 = arith.subf %251, %265 : vector<8x32xf32>
    %cst_138 = arith.constant 9.99999974E-6 : f32
    %267 = vector.broadcast %cst_138 : f32 to vector<8x1xf32>
    %268 = arith.addf %264, %267 : vector<8x1xf32>
    %269 = math.rsqrt %268 : vector<8x1xf32>
    %270 = vector.broadcast %269 : vector<8x1xf32> to vector<8x32xf32>
    %271 = arith.mulf %266, %270 : vector<8x32xf32>
    %272 = vector.broadcast %252 : vector<1x32xf32> to vector<8x32xf32>
    %273 = arith.mulf %271, %272 : vector<8x32xf32>
    %274 = vector.broadcast %253 : vector<1x32xf32> to vector<8x32xf32>
    %275 = arith.addf %273, %274 : vector<8x32xf32>
    %c0_139 = arith.constant 0 : index
    %c0_140 = arith.constant 0 : index
    %c0_141 = arith.constant 0 : index
    %c0_142 = arith.constant 0 : index
    %276 = vector.load %arg18[%c0_139, %c0_140, %c0_141, %c0_142] : memref<2x4x32x24xf32, #tpu.memory_space<vmem>>, vector<1x4x32x24xf32>
    %277 = vector.shape_cast %276 : vector<1x4x32x24xf32> to vector<4x32x24xf32>
    %c0_143 = arith.constant 0 : index
    %c0_144 = arith.constant 0 : index
    %c0_145 = arith.constant 0 : index
    %c0_146 = arith.constant 0 : index
    %278 = vector.load %arg19[%c0_143, %c0_144, %c0_145, %c0_146] : memref<2x4x1x24xf32, #tpu.memory_space<vmem>>, vector<1x4x1x24xf32>
    %279 = vector.shape_cast %278 : vector<1x4x1x24xf32> to vector<4x1x24xf32>
    %c0_147 = arith.constant 0 : index
    %c0_148 = arith.constant 0 : index
    %c0_149 = arith.constant 0 : index
    %c0_150 = arith.constant 0 : index
    %280 = vector.load %arg20[%c0_147, %c0_148, %c0_149, %c0_150] : memref<2x4x8x32xf32, #tpu.memory_space<vmem>>, vector<1x4x8x32xf32>
    %281 = vector.shape_cast %280 : vector<1x4x8x32xf32> to vector<4x8x32xf32>
    %c0_151 = arith.constant 0 : index
    %c0_152 = arith.constant 0 : index
    %c0_153 = arith.constant 0 : index
    %282 = vector.load %arg21[%c0_151, %c0_152, %c0_153] : memref<2x1x32xf32, #tpu.memory_space<vmem>>, vector<1x1x32xf32>
    %283 = vector.shape_cast %282 : vector<1x1x32xf32> to vector<1x32xf32>
    %284 = vector.shape_cast %275 : vector<8x32xf32> to vector<1x8x32xf32>
    %285 = vector.broadcast %284 : vector<1x8x32xf32> to vector<4x8x32xf32>
    %286 = vector.shape_cast %213 : vector<8x32xf32> to vector<1x8x32xf32>
    %287 = vector.broadcast %286 : vector<1x8x32xf32> to vector<4x8x32xf32>
    %288 = vector.extract_strided_slice %277 {offsets = [0, 0, 0], sizes = [4, 32, 8], strides = [1, 1, 1]} : vector<4x32x24xf32> to vector<4x32x8xf32>
    "tpu.trace_start"() <{level = 10 : i32, message = "hsd,hdk->hsk"}> : () -> ()
    %cst_154 = arith.constant dense<0.000000e+00> : vector<4x8x8xf32>
    %289 = tpu.matmul %285, %288, %cst_154 {dimension_numbers = #tpu.dot_dimension_numbers<[2], [1], [1], [2], [0, 0, 0, 1, 1, 2], [0], [0]>} : vector<4x8x32xf32>, vector<4x32x8xf32>, vector<4x8x8xf32> -> vector<4x8x8xf32>
    "tpu.trace_stop"() : () -> ()
    %290 = vector.extract_strided_slice %279 {offsets = [0, 0, 0], sizes = [4, 1, 8], strides = [1, 1, 1]} : vector<4x1x24xf32> to vector<4x1x8xf32>
    %291 = vector.broadcast %290 : vector<4x1x8xf32> to vector<4x8x8xf32>
    %292 = arith.addf %289, %291 : vector<4x8x8xf32>
    %293 = vector.extract_strided_slice %277 {offsets = [0, 0, 8], sizes = [4, 32, 16], strides = [1, 1, 1]} : vector<4x32x24xf32> to vector<4x32x16xf32>
    "tpu.trace_start"() <{level = 10 : i32, message = "hsd,hdk->hsk"}> : () -> ()
    %cst_155 = arith.constant dense<0.000000e+00> : vector<4x8x16xf32>
    %294 = tpu.matmul %287, %293, %cst_155 {dimension_numbers = #tpu.dot_dimension_numbers<[2], [1], [1], [2], [0, 0, 0, 1, 1, 2], [0], [0]>} : vector<4x8x32xf32>, vector<4x32x16xf32>, vector<4x8x16xf32> -> vector<4x8x16xf32>
    "tpu.trace_stop"() : () -> ()
    %295 = vector.extract_strided_slice %279 {offsets = [0, 0, 8], sizes = [4, 1, 16], strides = [1, 1, 1]} : vector<4x1x24xf32> to vector<4x1x16xf32>
    %296 = vector.broadcast %295 : vector<4x1x16xf32> to vector<4x8x16xf32>
    %297 = arith.addf %294, %296 : vector<4x8x16xf32>
    %298 = vector.extract_strided_slice %297 {offsets = [0, 0, 0], sizes = [4, 8, 8], strides = [1, 1, 1]} : vector<4x8x16xf32> to vector<4x8x8xf32>
    %299 = vector.extract_strided_slice %297 {offsets = [0, 0, 8], sizes = [4, 8, 8], strides = [1, 1, 1]} : vector<4x8x16xf32> to vector<4x8x8xf32>
    "tpu.trace_start"() <{level = 10 : i32, message = "hqd,hkd->hqk"}> : () -> ()
    %cst_156 = arith.constant dense<0.000000e+00> : vector<4x8x8xf32>
    %300 = tpu.matmul %292, %298, %cst_156 {dimension_numbers = #tpu.dot_dimension_numbers<[2], [2], [1], [1], [0, 0, 0, 1, 1, 1], [0], [0]>} : vector<4x8x8xf32>, vector<4x8x8xf32>, vector<4x8x8xf32> -> vector<4x8x8xf32>
    "tpu.trace_stop"() : () -> ()
    %301 = vector.shape_cast %5 : vector<8x8xf32> to vector<1x8x8xf32>
    %302 = vector.broadcast %301 : vector<1x8x8xf32> to vector<4x8x8xf32>
    %303 = arith.addf %300, %302 : vector<4x8x8xf32>
    %cst_157 = arith.constant dense<0xFF800000> : vector<4x8xf32>
    %304 = vector.multi_reduction <maximumf>, %303, %cst_157 [2] : vector<4x8x8xf32> to vector<4x8xf32>
    %305 = vector.shape_cast %304 : vector<4x8xf32> to vector<4x8x1xf32>
    %306 = vector.broadcast %305 : vector<4x8x1xf32> to vector<4x8x8xf32>
    %307 = arith.subf %303, %306 : vector<4x8x8xf32>
    %308 = math.exp %307 : vector<4x8x8xf32>
    %cst_158 = arith.constant dense<0.000000e+00> : vector<4x8xf32>
    %309 = vector.multi_reduction <add>, %308, %cst_158 [2] : vector<4x8x8xf32> to vector<4x8xf32>
    %310 = vector.shape_cast %309 : vector<4x8xf32> to vector<4x8x1xf32>
    %311 = tpu.reciprocal %310 {approx = true} : vector<4x8x1xf32> -> vector<4x8x1xf32>
    %312 = vector.broadcast %311 : vector<4x8x1xf32> to vector<4x8x8xf32>
    %313 = arith.mulf %308, %312 : vector<4x8x8xf32>
    "tpu.trace_start"() <{level = 10 : i32, message = "hqk,hkd->hqd"}> : () -> ()
    %cst_159 = arith.constant dense<0.000000e+00> : vector<4x8x8xf32>
    %314 = tpu.matmul %313, %299, %cst_159 {dimension_numbers = #tpu.dot_dimension_numbers<[2], [1], [1], [2], [0, 0, 0, 1, 1, 2], [0], [0]>} : vector<4x8x8xf32>, vector<4x8x8xf32>, vector<4x8x8xf32> -> vector<4x8x8xf32>
    "tpu.trace_stop"() : () -> ()
    "tpu.trace_start"() <{level = 10 : i32, message = "hqd,hdm->hqm"}> : () -> ()
    %cst_160 = arith.constant dense<0.000000e+00> : vector<4x8x32xf32>
    %315 = tpu.matmul %314, %281, %cst_160 {dimension_numbers = #tpu.dot_dimension_numbers<[2], [1], [1], [2], [0, 0, 0, 1, 1, 2], [0], [0]>} : vector<4x8x8xf32>, vector<4x8x32xf32>, vector<4x8x32xf32> -> vector<4x8x32xf32>
    "tpu.trace_stop"() : () -> ()
    %cst_161 = arith.constant dense<0.000000e+00> : vector<8x32xf32>
    %316 = vector.multi_reduction <add>, %315, %cst_161 [0] : vector<4x8x32xf32> to vector<8x32xf32>
    %317 = vector.broadcast %283 : vector<1x32xf32> to vector<8x32xf32>
    %318 = arith.addf %316, %317 : vector<8x32xf32>
    %319 = arith.addf %275, %318 : vector<8x32xf32>
    %320 = vector.extract_strided_slice %215 {offsets = [2, 0], sizes = [1, 32], strides = [1, 1]} : vector<6x32xf32> to vector<1x32xf32>
    %321 = vector.extract_strided_slice %215 {offsets = [3, 0], sizes = [1, 32], strides = [1, 1]} : vector<6x32xf32> to vector<1x32xf32>
    %cst_162 = arith.constant dense<0.000000e+00> : vector<8xf32>
    %322 = vector.multi_reduction <add>, %319, %cst_162 [1] : vector<8x32xf32> to vector<8xf32>
    %323 = vector.shape_cast %322 : vector<8xf32> to vector<8x1xf32>
    %cst_163 = arith.constant 3.200000e+01 : f32
    %324 = vector.broadcast %cst_163 : f32 to vector<8x1xf32>
    %325 = arith.divf %323, %324 : vector<8x1xf32>
    %326 = vector.broadcast %325 : vector<8x1xf32> to vector<8x32xf32>
    %327 = arith.subf %319, %326 : vector<8x32xf32>
    %328 = arith.mulf %327, %327 : vector<8x32xf32>
    %cst_164 = arith.constant dense<0.000000e+00> : vector<8xf32>
    %329 = vector.multi_reduction <add>, %328, %cst_164 [1] : vector<8x32xf32> to vector<8xf32>
    %330 = vector.shape_cast %329 : vector<8xf32> to vector<8x1xf32>
    %cst_165 = arith.constant 3.200000e+01 : f32
    %331 = vector.broadcast %cst_165 : f32 to vector<8x1xf32>
    %332 = arith.divf %330, %331 : vector<8x1xf32>
    %333 = vector.broadcast %325 : vector<8x1xf32> to vector<8x32xf32>
    %334 = arith.subf %319, %333 : vector<8x32xf32>
    %cst_166 = arith.constant 9.99999974E-6 : f32
    %335 = vector.broadcast %cst_166 : f32 to vector<8x1xf32>
    %336 = arith.addf %332, %335 : vector<8x1xf32>
    %337 = math.rsqrt %336 : vector<8x1xf32>
    %338 = vector.broadcast %337 : vector<8x1xf32> to vector<8x32xf32>
    %339 = arith.mulf %334, %338 : vector<8x32xf32>
    %340 = vector.broadcast %320 : vector<1x32xf32> to vector<8x32xf32>
    %341 = arith.mulf %339, %340 : vector<8x32xf32>
    %342 = vector.broadcast %321 : vector<1x32xf32> to vector<8x32xf32>
    %343 = arith.addf %341, %342 : vector<8x32xf32>
    %c0_167 = arith.constant 0 : index
    %c0_168 = arith.constant 0 : index
    %c0_169 = arith.constant 0 : index
    %344 = vector.load %arg22[%c0_167, %c0_168, %c0_169] : memref<2x32x64xf32, #tpu.memory_space<vmem>>, vector<1x32x64xf32>
    %345 = vector.shape_cast %344 : vector<1x32x64xf32> to vector<32x64xf32>
    %cst_170 = arith.constant dense<0.000000e+00> : vector<8x64xf32>
    %346 = tpu.matmul %343, %345, %cst_170 {dimension_numbers = #tpu.dot_dimension_numbers<[1], [0], [0], [1], [0, 0, 1, 1], [], []>} : vector<8x32xf32>, vector<32x64xf32>, vector<8x64xf32> -> vector<8x64xf32>
    %c0_171 = arith.constant 0 : index
    %c0_172 = arith.constant 0 : index
    %c0_173 = arith.constant 0 : index
    %347 = vector.load %arg23[%c0_171, %c0_172, %c0_173] : memref<2x1x64xf32, #tpu.memory_space<vmem>>, vector<1x1x64xf32>
    %348 = vector.shape_cast %347 : vector<1x1x64xf32> to vector<1x64xf32>
    %349 = vector.broadcast %348 : vector<1x64xf32> to vector<8x64xf32>
    %350 = arith.addf %346, %349 : vector<8x64xf32>
    %cst_174 = arith.constant 0.000000e+00 : f32
    %351 = vector.broadcast %cst_174 : f32 to vector<8x64xf32>
    %352 = arith.maximumf %350, %351 : vector<8x64xf32>
    %c0_175 = arith.constant 0 : index
    %c0_176 = arith.constant 0 : index
    %c0_177 = arith.constant 0 : index
    %353 = vector.load %arg24[%c0_175, %c0_176, %c0_177] : memref<2x64x32xf32, #tpu.memory_space<vmem>>, vector<1x64x32xf32>
    %354 = vector.shape_cast %353 : vector<1x64x32xf32> to vector<64x32xf32>
    %cst_178 = arith.constant dense<0.000000e+00> : vector<8x32xf32>
    %355 = tpu.matmul %352, %354, %cst_178 {dimension_numbers = #tpu.dot_dimension_numbers<[1], [0], [0], [1], [0, 0, 1, 1], [], []>} : vector<8x64xf32>, vector<64x32xf32>, vector<8x32xf32> -> vector<8x32xf32>
    %c0_179 = arith.constant 0 : index
    %c0_180 = arith.constant 0 : index
    %c0_181 = arith.constant 0 : index
    %356 = vector.load %arg25[%c0_179, %c0_180, %c0_181] : memref<2x1x32xf32, #tpu.memory_space<vmem>>, vector<1x1x32xf32>
    %357 = vector.shape_cast %356 : vector<1x1x32xf32> to vector<1x32xf32>
    %358 = vector.broadcast %357 : vector<1x32xf32> to vector<8x32xf32>
    %359 = arith.addf %355, %358 : vector<8x32xf32>
    %360 = arith.addf %343, %359 : vector<8x32xf32>
    %361 = vector.extract_strided_slice %215 {offsets = [4, 0], sizes = [1, 32], strides = [1, 1]} : vector<6x32xf32> to vector<1x32xf32>
    %362 = vector.extract_strided_slice %215 {offsets = [5, 0], sizes = [1, 32], strides = [1, 1]} : vector<6x32xf32> to vector<1x32xf32>
    %cst_182 = arith.constant dense<0.000000e+00> : vector<8xf32>
    %363 = vector.multi_reduction <add>, %360, %cst_182 [1] : vector<8x32xf32> to vector<8xf32>
    %364 = vector.shape_cast %363 : vector<8xf32> to vector<8x1xf32>
    %cst_183 = arith.constant 3.200000e+01 : f32
    %365 = vector.broadcast %cst_183 : f32 to vector<8x1xf32>
    %366 = arith.divf %364, %365 : vector<8x1xf32>
    %367 = vector.broadcast %366 : vector<8x1xf32> to vector<8x32xf32>
    %368 = arith.subf %360, %367 : vector<8x32xf32>
    %369 = arith.mulf %368, %368 : vector<8x32xf32>
    %cst_184 = arith.constant dense<0.000000e+00> : vector<8xf32>
    %370 = vector.multi_reduction <add>, %369, %cst_184 [1] : vector<8x32xf32> to vector<8xf32>
    %371 = vector.shape_cast %370 : vector<8xf32> to vector<8x1xf32>
    %cst_185 = arith.constant 3.200000e+01 : f32
    %372 = vector.broadcast %cst_185 : f32 to vector<8x1xf32>
    %373 = arith.divf %371, %372 : vector<8x1xf32>
    %374 = vector.broadcast %366 : vector<8x1xf32> to vector<8x32xf32>
    %375 = arith.subf %360, %374 : vector<8x32xf32>
    %cst_186 = arith.constant 9.99999974E-6 : f32
    %376 = vector.broadcast %cst_186 : f32 to vector<8x1xf32>
    %377 = arith.addf %373, %376 : vector<8x1xf32>
    %378 = math.rsqrt %377 : vector<8x1xf32>
    %379 = vector.broadcast %378 : vector<8x1xf32> to vector<8x32xf32>
    %380 = arith.mulf %375, %379 : vector<8x32xf32>
    %381 = vector.broadcast %361 : vector<1x32xf32> to vector<8x32xf32>
    %382 = arith.mulf %380, %381 : vector<8x32xf32>
    %383 = vector.broadcast %362 : vector<1x32xf32> to vector<8x32xf32>
    %384 = arith.addf %382, %383 : vector<8x32xf32>
    %c1_187 = arith.constant 1 : index
    %c0_188 = arith.constant 0 : index
    %c0_189 = arith.constant 0 : index
    %385 = vector.load %arg26[%c1_187, %c0_188, %c0_189] : memref<2x6x32xf32, #tpu.memory_space<vmem>>, vector<1x6x32xf32>
    %386 = vector.shape_cast %385 : vector<1x6x32xf32> to vector<6x32xf32>
    %c1_190 = arith.constant 1 : index
    %c0_191 = arith.constant 0 : index
    %c0_192 = arith.constant 0 : index
    %c0_193 = arith.constant 0 : index
    %387 = vector.load %arg14[%c1_190, %c0_191, %c0_192, %c0_193] : memref<2x4x32x24xf32, #tpu.memory_space<vmem>>, vector<1x4x32x24xf32>
    %388 = vector.shape_cast %387 : vector<1x4x32x24xf32> to vector<4x32x24xf32>
    %c1_194 = arith.constant 1 : index
    %c0_195 = arith.constant 0 : index
    %c0_196 = arith.constant 0 : index
    %c0_197 = arith.constant 0 : index
    %389 = vector.load %arg15[%c1_194, %c0_195, %c0_196, %c0_197] : memref<2x4x1x24xf32, #tpu.memory_space<vmem>>, vector<1x4x1x24xf32>
    %390 = vector.shape_cast %389 : vector<1x4x1x24xf32> to vector<4x1x24xf32>
    %c1_198 = arith.constant 1 : index
    %c0_199 = arith.constant 0 : index
    %c0_200 = arith.constant 0 : index
    %c0_201 = arith.constant 0 : index
    %391 = vector.load %arg16[%c1_198, %c0_199, %c0_200, %c0_201] : memref<2x4x8x32xf32, #tpu.memory_space<vmem>>, vector<1x4x8x32xf32>
    %392 = vector.shape_cast %391 : vector<1x4x8x32xf32> to vector<4x8x32xf32>
    %c1_202 = arith.constant 1 : index
    %c0_203 = arith.constant 0 : index
    %c0_204 = arith.constant 0 : index
    %393 = vector.load %arg17[%c1_202, %c0_203, %c0_204] : memref<2x1x32xf32, #tpu.memory_space<vmem>>, vector<1x1x32xf32>
    %394 = vector.shape_cast %393 : vector<1x1x32xf32> to vector<1x32xf32>
    %395 = vector.shape_cast %384 : vector<8x32xf32> to vector<1x8x32xf32>
    %396 = vector.broadcast %395 : vector<1x8x32xf32> to vector<4x8x32xf32>
    "tpu.trace_start"() <{level = 10 : i32, message = "hsd,hdk->hsk"}> : () -> ()
    %cst_205 = arith.constant dense<0.000000e+00> : vector<4x8x24xf32>
    %397 = tpu.matmul %396, %388, %cst_205 {dimension_numbers = #tpu.dot_dimension_numbers<[2], [1], [1], [2], [0, 0, 0, 1, 1, 2], [0], [0]>} : vector<4x8x32xf32>, vector<4x32x24xf32>, vector<4x8x24xf32> -> vector<4x8x24xf32>
    "tpu.trace_stop"() : () -> ()
    %398 = vector.broadcast %390 : vector<4x1x24xf32> to vector<4x8x24xf32>
    %399 = arith.addf %397, %398 : vector<4x8x24xf32>
    %400 = vector.extract_strided_slice %399 {offsets = [0, 0, 0], sizes = [4, 8, 8], strides = [1, 1, 1]} : vector<4x8x24xf32> to vector<4x8x8xf32>
    %401 = vector.extract_strided_slice %399 {offsets = [0, 0, 8], sizes = [4, 8, 8], strides = [1, 1, 1]} : vector<4x8x24xf32> to vector<4x8x8xf32>
    %402 = vector.extract_strided_slice %399 {offsets = [0, 0, 16], sizes = [4, 8, 8], strides = [1, 1, 1]} : vector<4x8x24xf32> to vector<4x8x8xf32>
    "tpu.trace_start"() <{level = 10 : i32, message = "hqd,hkd->hqk"}> : () -> ()
    %cst_206 = arith.constant dense<0.000000e+00> : vector<4x8x8xf32>
    %403 = tpu.matmul %400, %401, %cst_206 {dimension_numbers = #tpu.dot_dimension_numbers<[2], [2], [1], [1], [0, 0, 0, 1, 1, 1], [0], [0]>} : vector<4x8x8xf32>, vector<4x8x8xf32>, vector<4x8x8xf32> -> vector<4x8x8xf32>
    "tpu.trace_stop"() : () -> ()
    %404 = vector.shape_cast %7 : vector<8x8xf32> to vector<1x8x8xf32>
    %405 = vector.broadcast %404 : vector<1x8x8xf32> to vector<4x8x8xf32>
    %406 = arith.addf %403, %405 : vector<4x8x8xf32>
    %cst_207 = arith.constant dense<0xFF800000> : vector<4x8xf32>
    %407 = vector.multi_reduction <maximumf>, %406, %cst_207 [2] : vector<4x8x8xf32> to vector<4x8xf32>
    %408 = vector.shape_cast %407 : vector<4x8xf32> to vector<4x8x1xf32>
    %409 = vector.broadcast %408 : vector<4x8x1xf32> to vector<4x8x8xf32>
    %410 = arith.subf %406, %409 : vector<4x8x8xf32>
    %411 = math.exp %410 : vector<4x8x8xf32>
    %cst_208 = arith.constant dense<0.000000e+00> : vector<4x8xf32>
    %412 = vector.multi_reduction <add>, %411, %cst_208 [2] : vector<4x8x8xf32> to vector<4x8xf32>
    %413 = vector.shape_cast %412 : vector<4x8xf32> to vector<4x8x1xf32>
    %414 = tpu.reciprocal %413 {approx = true} : vector<4x8x1xf32> -> vector<4x8x1xf32>
    %415 = vector.broadcast %414 : vector<4x8x1xf32> to vector<4x8x8xf32>
    %416 = arith.mulf %411, %415 : vector<4x8x8xf32>
    "tpu.trace_start"() <{level = 10 : i32, message = "hqk,hkd->hqd"}> : () -> ()
    %cst_209 = arith.constant dense<0.000000e+00> : vector<4x8x8xf32>
    %417 = tpu.matmul %416, %402, %cst_209 {dimension_numbers = #tpu.dot_dimension_numbers<[2], [1], [1], [2], [0, 0, 0, 1, 1, 2], [0], [0]>} : vector<4x8x8xf32>, vector<4x8x8xf32>, vector<4x8x8xf32> -> vector<4x8x8xf32>
    "tpu.trace_stop"() : () -> ()
    "tpu.trace_start"() <{level = 10 : i32, message = "hqd,hdm->hqm"}> : () -> ()
    %cst_210 = arith.constant dense<0.000000e+00> : vector<4x8x32xf32>
    %418 = tpu.matmul %417, %392, %cst_210 {dimension_numbers = #tpu.dot_dimension_numbers<[2], [1], [1], [2], [0, 0, 0, 1, 1, 2], [0], [0]>} : vector<4x8x8xf32>, vector<4x8x32xf32>, vector<4x8x32xf32> -> vector<4x8x32xf32>
    "tpu.trace_stop"() : () -> ()
    %cst_211 = arith.constant dense<0.000000e+00> : vector<8x32xf32>
    %419 = vector.multi_reduction <add>, %418, %cst_211 [0] : vector<4x8x32xf32> to vector<8x32xf32>
    %420 = vector.broadcast %394 : vector<1x32xf32> to vector<8x32xf32>
    %421 = arith.addf %419, %420 : vector<8x32xf32>
    %422 = arith.addf %384, %421 : vector<8x32xf32>
    %423 = vector.extract_strided_slice %386 {offsets = [0, 0], sizes = [1, 32], strides = [1, 1]} : vector<6x32xf32> to vector<1x32xf32>
    %424 = vector.extract_strided_slice %386 {offsets = [1, 0], sizes = [1, 32], strides = [1, 1]} : vector<6x32xf32> to vector<1x32xf32>
    %cst_212 = arith.constant dense<0.000000e+00> : vector<8xf32>
    %425 = vector.multi_reduction <add>, %422, %cst_212 [1] : vector<8x32xf32> to vector<8xf32>
    %426 = vector.shape_cast %425 : vector<8xf32> to vector<8x1xf32>
    %cst_213 = arith.constant 3.200000e+01 : f32
    %427 = vector.broadcast %cst_213 : f32 to vector<8x1xf32>
    %428 = arith.divf %426, %427 : vector<8x1xf32>
    %429 = vector.broadcast %428 : vector<8x1xf32> to vector<8x32xf32>
    %430 = arith.subf %422, %429 : vector<8x32xf32>
    %431 = arith.mulf %430, %430 : vector<8x32xf32>
    %cst_214 = arith.constant dense<0.000000e+00> : vector<8xf32>
    %432 = vector.multi_reduction <add>, %431, %cst_214 [1] : vector<8x32xf32> to vector<8xf32>
    %433 = vector.shape_cast %432 : vector<8xf32> to vector<8x1xf32>
    %cst_215 = arith.constant 3.200000e+01 : f32
    %434 = vector.broadcast %cst_215 : f32 to vector<8x1xf32>
    %435 = arith.divf %433, %434 : vector<8x1xf32>
    %436 = vector.broadcast %428 : vector<8x1xf32> to vector<8x32xf32>
    %437 = arith.subf %422, %436 : vector<8x32xf32>
    %cst_216 = arith.constant 9.99999974E-6 : f32
    %438 = vector.broadcast %cst_216 : f32 to vector<8x1xf32>
    %439 = arith.addf %435, %438 : vector<8x1xf32>
    %440 = math.rsqrt %439 : vector<8x1xf32>
    %441 = vector.broadcast %440 : vector<8x1xf32> to vector<8x32xf32>
    %442 = arith.mulf %437, %441 : vector<8x32xf32>
    %443 = vector.broadcast %423 : vector<1x32xf32> to vector<8x32xf32>
    %444 = arith.mulf %442, %443 : vector<8x32xf32>
    %445 = vector.broadcast %424 : vector<1x32xf32> to vector<8x32xf32>
    %446 = arith.addf %444, %445 : vector<8x32xf32>
    %c1_217 = arith.constant 1 : index
    %c0_218 = arith.constant 0 : index
    %c0_219 = arith.constant 0 : index
    %c0_220 = arith.constant 0 : index
    %447 = vector.load %arg18[%c1_217, %c0_218, %c0_219, %c0_220] : memref<2x4x32x24xf32, #tpu.memory_space<vmem>>, vector<1x4x32x24xf32>
    %448 = vector.shape_cast %447 : vector<1x4x32x24xf32> to vector<4x32x24xf32>
    %c1_221 = arith.constant 1 : index
    %c0_222 = arith.constant 0 : index
    %c0_223 = arith.constant 0 : index
    %c0_224 = arith.constant 0 : index
    %449 = vector.load %arg19[%c1_221, %c0_222, %c0_223, %c0_224] : memref<2x4x1x24xf32, #tpu.memory_space<vmem>>, vector<1x4x1x24xf32>
    %450 = vector.shape_cast %449 : vector<1x4x1x24xf32> to vector<4x1x24xf32>
    %c1_225 = arith.constant 1 : index
    %c0_226 = arith.constant 0 : index
    %c0_227 = arith.constant 0 : index
    %c0_228 = arith.constant 0 : index
    %451 = vector.load %arg20[%c1_225, %c0_226, %c0_227, %c0_228] : memref<2x4x8x32xf32, #tpu.memory_space<vmem>>, vector<1x4x8x32xf32>
    %452 = vector.shape_cast %451 : vector<1x4x8x32xf32> to vector<4x8x32xf32>
    %c1_229 = arith.constant 1 : index
    %c0_230 = arith.constant 0 : index
    %c0_231 = arith.constant 0 : index
    %453 = vector.load %arg21[%c1_229, %c0_230, %c0_231] : memref<2x1x32xf32, #tpu.memory_space<vmem>>, vector<1x1x32xf32>
    %454 = vector.shape_cast %453 : vector<1x1x32xf32> to vector<1x32xf32>
    %455 = vector.shape_cast %446 : vector<8x32xf32> to vector<1x8x32xf32>
    %456 = vector.broadcast %455 : vector<1x8x32xf32> to vector<4x8x32xf32>
    %457 = vector.shape_cast %213 : vector<8x32xf32> to vector<1x8x32xf32>
    %458 = vector.broadcast %457 : vector<1x8x32xf32> to vector<4x8x32xf32>
    %459 = vector.extract_strided_slice %448 {offsets = [0, 0, 0], sizes = [4, 32, 8], strides = [1, 1, 1]} : vector<4x32x24xf32> to vector<4x32x8xf32>
    "tpu.trace_start"() <{level = 10 : i32, message = "hsd,hdk->hsk"}> : () -> ()
    %cst_232 = arith.constant dense<0.000000e+00> : vector<4x8x8xf32>
    %460 = tpu.matmul %456, %459, %cst_232 {dimension_numbers = #tpu.dot_dimension_numbers<[2], [1], [1], [2], [0, 0, 0, 1, 1, 2], [0], [0]>} : vector<4x8x32xf32>, vector<4x32x8xf32>, vector<4x8x8xf32> -> vector<4x8x8xf32>
    "tpu.trace_stop"() : () -> ()
    %461 = vector.extract_strided_slice %450 {offsets = [0, 0, 0], sizes = [4, 1, 8], strides = [1, 1, 1]} : vector<4x1x24xf32> to vector<4x1x8xf32>
    %462 = vector.broadcast %461 : vector<4x1x8xf32> to vector<4x8x8xf32>
    %463 = arith.addf %460, %462 : vector<4x8x8xf32>
    %464 = vector.extract_strided_slice %448 {offsets = [0, 0, 8], sizes = [4, 32, 16], strides = [1, 1, 1]} : vector<4x32x24xf32> to vector<4x32x16xf32>
    "tpu.trace_start"() <{level = 10 : i32, message = "hsd,hdk->hsk"}> : () -> ()
    %cst_233 = arith.constant dense<0.000000e+00> : vector<4x8x16xf32>
    %465 = tpu.matmul %458, %464, %cst_233 {dimension_numbers = #tpu.dot_dimension_numbers<[2], [1], [1], [2], [0, 0, 0, 1, 1, 2], [0], [0]>} : vector<4x8x32xf32>, vector<4x32x16xf32>, vector<4x8x16xf32> -> vector<4x8x16xf32>
    "tpu.trace_stop"() : () -> ()
    %466 = vector.extract_strided_slice %450 {offsets = [0, 0, 8], sizes = [4, 1, 16], strides = [1, 1, 1]} : vector<4x1x24xf32> to vector<4x1x16xf32>
    %467 = vector.broadcast %466 : vector<4x1x16xf32> to vector<4x8x16xf32>
    %468 = arith.addf %465, %467 : vector<4x8x16xf32>
    %469 = vector.extract_strided_slice %468 {offsets = [0, 0, 0], sizes = [4, 8, 8], strides = [1, 1, 1]} : vector<4x8x16xf32> to vector<4x8x8xf32>
    %470 = vector.extract_strided_slice %468 {offsets = [0, 0, 8], sizes = [4, 8, 8], strides = [1, 1, 1]} : vector<4x8x16xf32> to vector<4x8x8xf32>
    "tpu.trace_start"() <{level = 10 : i32, message = "hqd,hkd->hqk"}> : () -> ()
    %cst_234 = arith.constant dense<0.000000e+00> : vector<4x8x8xf32>
    %471 = tpu.matmul %463, %469, %cst_234 {dimension_numbers = #tpu.dot_dimension_numbers<[2], [2], [1], [1], [0, 0, 0, 1, 1, 1], [0], [0]>} : vector<4x8x8xf32>, vector<4x8x8xf32>, vector<4x8x8xf32> -> vector<4x8x8xf32>
    "tpu.trace_stop"() : () -> ()
    %472 = vector.shape_cast %5 : vector<8x8xf32> to vector<1x8x8xf32>
    %473 = vector.broadcast %472 : vector<1x8x8xf32> to vector<4x8x8xf32>
    %474 = arith.addf %471, %473 : vector<4x8x8xf32>
    %cst_235 = arith.constant dense<0xFF800000> : vector<4x8xf32>
    %475 = vector.multi_reduction <maximumf>, %474, %cst_235 [2] : vector<4x8x8xf32> to vector<4x8xf32>
    %476 = vector.shape_cast %475 : vector<4x8xf32> to vector<4x8x1xf32>
    %477 = vector.broadcast %476 : vector<4x8x1xf32> to vector<4x8x8xf32>
    %478 = arith.subf %474, %477 : vector<4x8x8xf32>
    %479 = math.exp %478 : vector<4x8x8xf32>
    %cst_236 = arith.constant dense<0.000000e+00> : vector<4x8xf32>
    %480 = vector.multi_reduction <add>, %479, %cst_236 [2] : vector<4x8x8xf32> to vector<4x8xf32>
    %481 = vector.shape_cast %480 : vector<4x8xf32> to vector<4x8x1xf32>
    %482 = tpu.reciprocal %481 {approx = true} : vector<4x8x1xf32> -> vector<4x8x1xf32>
    %483 = vector.broadcast %482 : vector<4x8x1xf32> to vector<4x8x8xf32>
    %484 = arith.mulf %479, %483 : vector<4x8x8xf32>
    "tpu.trace_start"() <{level = 10 : i32, message = "hqk,hkd->hqd"}> : () -> ()
    %cst_237 = arith.constant dense<0.000000e+00> : vector<4x8x8xf32>
    %485 = tpu.matmul %484, %470, %cst_237 {dimension_numbers = #tpu.dot_dimension_numbers<[2], [1], [1], [2], [0, 0, 0, 1, 1, 2], [0], [0]>} : vector<4x8x8xf32>, vector<4x8x8xf32>, vector<4x8x8xf32> -> vector<4x8x8xf32>
    "tpu.trace_stop"() : () -> ()
    "tpu.trace_start"() <{level = 10 : i32, message = "hqd,hdm->hqm"}> : () -> ()
    %cst_238 = arith.constant dense<0.000000e+00> : vector<4x8x32xf32>
    %486 = tpu.matmul %485, %452, %cst_238 {dimension_numbers = #tpu.dot_dimension_numbers<[2], [1], [1], [2], [0, 0, 0, 1, 1, 2], [0], [0]>} : vector<4x8x8xf32>, vector<4x8x32xf32>, vector<4x8x32xf32> -> vector<4x8x32xf32>
    "tpu.trace_stop"() : () -> ()
    %cst_239 = arith.constant dense<0.000000e+00> : vector<8x32xf32>
    %487 = vector.multi_reduction <add>, %486, %cst_239 [0] : vector<4x8x32xf32> to vector<8x32xf32>
    %488 = vector.broadcast %454 : vector<1x32xf32> to vector<8x32xf32>
    %489 = arith.addf %487, %488 : vector<8x32xf32>
    %490 = arith.addf %446, %489 : vector<8x32xf32>
    %491 = vector.extract_strided_slice %386 {offsets = [2, 0], sizes = [1, 32], strides = [1, 1]} : vector<6x32xf32> to vector<1x32xf32>
    %492 = vector.extract_strided_slice %386 {offsets = [3, 0], sizes = [1, 32], strides = [1, 1]} : vector<6x32xf32> to vector<1x32xf32>
    %cst_240 = arith.constant dense<0.000000e+00> : vector<8xf32>
    %493 = vector.multi_reduction <add>, %490, %cst_240 [1] : vector<8x32xf32> to vector<8xf32>
    %494 = vector.shape_cast %493 : vector<8xf32> to vector<8x1xf32>
    %cst_241 = arith.constant 3.200000e+01 : f32
    %495 = vector.broadcast %cst_241 : f32 to vector<8x1xf32>
    %496 = arith.divf %494, %495 : vector<8x1xf32>
    %497 = vector.broadcast %496 : vector<8x1xf32> to vector<8x32xf32>
    %498 = arith.subf %490, %497 : vector<8x32xf32>
    %499 = arith.mulf %498, %498 : vector<8x32xf32>
    %cst_242 = arith.constant dense<0.000000e+00> : vector<8xf32>
    %500 = vector.multi_reduction <add>, %499, %cst_242 [1] : vector<8x32xf32> to vector<8xf32>
    %501 = vector.shape_cast %500 : vector<8xf32> to vector<8x1xf32>
    %cst_243 = arith.constant 3.200000e+01 : f32
    %502 = vector.broadcast %cst_243 : f32 to vector<8x1xf32>
    %503 = arith.divf %501, %502 : vector<8x1xf32>
    %504 = vector.broadcast %496 : vector<8x1xf32> to vector<8x32xf32>
    %505 = arith.subf %490, %504 : vector<8x32xf32>
    %cst_244 = arith.constant 9.99999974E-6 : f32
    %506 = vector.broadcast %cst_244 : f32 to vector<8x1xf32>
    %507 = arith.addf %503, %506 : vector<8x1xf32>
    %508 = math.rsqrt %507 : vector<8x1xf32>
    %509 = vector.broadcast %508 : vector<8x1xf32> to vector<8x32xf32>
    %510 = arith.mulf %505, %509 : vector<8x32xf32>
    %511 = vector.broadcast %491 : vector<1x32xf32> to vector<8x32xf32>
    %512 = arith.mulf %510, %511 : vector<8x32xf32>
    %513 = vector.broadcast %492 : vector<1x32xf32> to vector<8x32xf32>
    %514 = arith.addf %512, %513 : vector<8x32xf32>
    %c1_245 = arith.constant 1 : index
    %c0_246 = arith.constant 0 : index
    %c0_247 = arith.constant 0 : index
    %515 = vector.load %arg22[%c1_245, %c0_246, %c0_247] : memref<2x32x64xf32, #tpu.memory_space<vmem>>, vector<1x32x64xf32>
    %516 = vector.shape_cast %515 : vector<1x32x64xf32> to vector<32x64xf32>
    %cst_248 = arith.constant dense<0.000000e+00> : vector<8x64xf32>
    %517 = tpu.matmul %514, %516, %cst_248 {dimension_numbers = #tpu.dot_dimension_numbers<[1], [0], [0], [1], [0, 0, 1, 1], [], []>} : vector<8x32xf32>, vector<32x64xf32>, vector<8x64xf32> -> vector<8x64xf32>
    %c1_249 = arith.constant 1 : index
    %c0_250 = arith.constant 0 : index
    %c0_251 = arith.constant 0 : index
    %518 = vector.load %arg23[%c1_249, %c0_250, %c0_251] : memref<2x1x64xf32, #tpu.memory_space<vmem>>, vector<1x1x64xf32>
    %519 = vector.shape_cast %518 : vector<1x1x64xf32> to vector<1x64xf32>
    %520 = vector.broadcast %519 : vector<1x64xf32> to vector<8x64xf32>
    %521 = arith.addf %517, %520 : vector<8x64xf32>
    %cst_252 = arith.constant 0.000000e+00 : f32
    %522 = vector.broadcast %cst_252 : f32 to vector<8x64xf32>
    %523 = arith.maximumf %521, %522 : vector<8x64xf32>
    %c1_253 = arith.constant 1 : index
    %c0_254 = arith.constant 0 : index
    %c0_255 = arith.constant 0 : index
    %524 = vector.load %arg24[%c1_253, %c0_254, %c0_255] : memref<2x64x32xf32, #tpu.memory_space<vmem>>, vector<1x64x32xf32>
    %525 = vector.shape_cast %524 : vector<1x64x32xf32> to vector<64x32xf32>
    %cst_256 = arith.constant dense<0.000000e+00> : vector<8x32xf32>
    %526 = tpu.matmul %523, %525, %cst_256 {dimension_numbers = #tpu.dot_dimension_numbers<[1], [0], [0], [1], [0, 0, 1, 1], [], []>} : vector<8x64xf32>, vector<64x32xf32>, vector<8x32xf32> -> vector<8x32xf32>
    %c1_257 = arith.constant 1 : index
    %c0_258 = arith.constant 0 : index
    %c0_259 = arith.constant 0 : index
    %527 = vector.load %arg25[%c1_257, %c0_258, %c0_259] : memref<2x1x32xf32, #tpu.memory_space<vmem>>, vector<1x1x32xf32>
    %528 = vector.shape_cast %527 : vector<1x1x32xf32> to vector<1x32xf32>
    %529 = vector.broadcast %528 : vector<1x32xf32> to vector<8x32xf32>
    %530 = arith.addf %526, %529 : vector<8x32xf32>
    %531 = arith.addf %514, %530 : vector<8x32xf32>
    %532 = vector.extract_strided_slice %386 {offsets = [4, 0], sizes = [1, 32], strides = [1, 1]} : vector<6x32xf32> to vector<1x32xf32>
    %533 = vector.extract_strided_slice %386 {offsets = [5, 0], sizes = [1, 32], strides = [1, 1]} : vector<6x32xf32> to vector<1x32xf32>
    %cst_260 = arith.constant dense<0.000000e+00> : vector<8xf32>
    %534 = vector.multi_reduction <add>, %531, %cst_260 [1] : vector<8x32xf32> to vector<8xf32>
    %535 = vector.shape_cast %534 : vector<8xf32> to vector<8x1xf32>
    %cst_261 = arith.constant 3.200000e+01 : f32
    %536 = vector.broadcast %cst_261 : f32 to vector<8x1xf32>
    %537 = arith.divf %535, %536 : vector<8x1xf32>
    %538 = vector.broadcast %537 : vector<8x1xf32> to vector<8x32xf32>
    %539 = arith.subf %531, %538 : vector<8x32xf32>
    %540 = arith.mulf %539, %539 : vector<8x32xf32>
    %cst_262 = arith.constant dense<0.000000e+00> : vector<8xf32>
    %541 = vector.multi_reduction <add>, %540, %cst_262 [1] : vector<8x32xf32> to vector<8xf32>
    %542 = vector.shape_cast %541 : vector<8xf32> to vector<8x1xf32>
    %cst_263 = arith.constant 3.200000e+01 : f32
    %543 = vector.broadcast %cst_263 : f32 to vector<8x1xf32>
    %544 = arith.divf %542, %543 : vector<8x1xf32>
    %545 = vector.broadcast %537 : vector<8x1xf32> to vector<8x32xf32>
    %546 = arith.subf %531, %545 : vector<8x32xf32>
    %cst_264 = arith.constant 9.99999974E-6 : f32
    %547 = vector.broadcast %cst_264 : f32 to vector<8x1xf32>
    %548 = arith.addf %544, %547 : vector<8x1xf32>
    %549 = math.rsqrt %548 : vector<8x1xf32>
    %550 = vector.broadcast %549 : vector<8x1xf32> to vector<8x32xf32>
    %551 = arith.mulf %546, %550 : vector<8x32xf32>
    %552 = vector.broadcast %532 : vector<1x32xf32> to vector<8x32xf32>
    %553 = arith.mulf %551, %552 : vector<8x32xf32>
    %554 = vector.broadcast %533 : vector<1x32xf32> to vector<8x32xf32>
    %555 = arith.addf %553, %554 : vector<8x32xf32>
    %c0_265 = arith.constant 0 : index
    %c0_266 = arith.constant 0 : index
    %556 = vector.load %arg27[%c0_265, %c0_266] : memref<32x128xf32, #tpu.memory_space<vmem>>, vector<32x128xf32>
    %cst_267 = arith.constant dense<0.000000e+00> : vector<8x128xf32>
    %557 = tpu.matmul %555, %556, %cst_267 {dimension_numbers = #tpu.dot_dimension_numbers<[1], [0], [0], [1], [0, 0, 1, 1], [], []>} : vector<8x32xf32>, vector<32x128xf32>, vector<8x128xf32> -> vector<8x128xf32>
    %c0_268 = arith.constant 0 : index
    %c0_269 = arith.constant 0 : index
    %558 = vector.load %arg28[%c0_268, %c0_269] : memref<1x128xf32, #tpu.memory_space<vmem>>, vector<1x128xf32>
    %559 = vector.broadcast %558 : vector<1x128xf32> to vector<8x128xf32>
    %560 = arith.addf %557, %559 : vector<8x128xf32>
    %c0_270 = arith.constant 0 : index
    %c0_271 = arith.constant 0 : index
    %c0_272 = arith.constant 0 : index
    %561 = vector.load %arg29[%c0_270, %c0_271, %c0_272] : memref<1x8x128xf32, #tpu.memory_space<vmem>>, vector<1x8x128xf32>
    %562 = vector.shape_cast %561 : vector<1x8x128xf32> to vector<8x128xf32>
    %563 = vector.shape_cast %560 : vector<8x128xf32> to vector<1x8x128xf32>
    tpu.vector_store %arg29[%c0_270, %c0_271, %c0_272], %563 {strides = array<i32>} : memref<1x8x128xf32, #tpu.memory_space<vmem>>, vector<1x8x128xf32>,
    return
  }
  func.func @transform_0(%arg0: i32) -> (i32, i32, i32) {
    %c0_i32 = arith.constant 0 : i32
    %c0_i32_0 = arith.constant 0 : i32
    %c0_i32_1 = arith.constant 0 : i32
    return %arg0, %c0_i32, %c0_i32_0 : i32, i32, i32
  }
  func.func @transform_1(%arg0: i32) -> (i32, i32, i32) {
    %c0_i32 = arith.constant 0 : i32
    %c0_i32_0 = arith.constant 0 : i32
    %c0_i32_1 = arith.constant 0 : i32
    return %arg0, %c0_i32, %c0_i32_0 : i32, i32, i32
  }
  func.func @transform_2(%arg0: i32) -> (i32, i32, i32) {
    %c0_i32 = arith.constant 0 : i32
    %c0_i32_0 = arith.constant 0 : i32
    %c0_i32_1 = arith.constant 0 : i32
    return %arg0, %c0_i32, %c0_i32_0 : i32, i32, i32
  }
  func.func @transform_3(%arg0: i32) -> (i32, i32, i32) {
    %c0_i32 = arith.constant 0 : i32
    %c0_i32_0 = arith.constant 0 : i32
    %c0_i32_1 = arith.constant 0 : i32
    return %arg0, %c0_i32, %c0_i32_0 : i32, i32, i32
  }
  func.func @transform_4(%arg0: i32) -> (i32, i32, i32, i32) {
    %c0_i32 = arith.constant 0 : i32
    %c0_i32_0 = arith.constant 0 : i32
    %c0_i32_1 = arith.constant 0 : i32
    %c0_i32_2 = arith.constant 0 : i32
    %c0_i32_3 = arith.constant 0 : i32
    return %c0_i32, %c0_i32_0, %c0_i32_1, %c0_i32_2 : i32, i32, i32, i32
  }
  func.func @transform_5(%arg0: i32) -> (i32, i32, i32, i32) {
    %c0_i32 = arith.constant 0 : i32
    %c0_i32_0 = arith.constant 0 : i32
    %c0_i32_1 = arith.constant 0 : i32
    %c0_i32_2 = arith.constant 0 : i32
    %c0_i32_3 = arith.constant 0 : i32
    return %c0_i32, %c0_i32_0, %c0_i32_1, %c0_i32_2 : i32, i32, i32, i32
  }
  func.func @transform_6(%arg0: i32) -> (i32, i32, i32, i32) {
    %c0_i32 = arith.constant 0 : i32
    %c0_i32_0 = arith.constant 0 : i32
    %c0_i32_1 = arith.constant 0 : i32
    %c0_i32_2 = arith.constant 0 : i32
    %c0_i32_3 = arith.constant 0 : i32
    return %c0_i32, %c0_i32_0, %c0_i32_1, %c0_i32_2 : i32, i32, i32, i32
  }
  func.func @transform_7(%arg0: i32) -> (i32, i32, i32) {
    %c0_i32 = arith.constant 0 : i32
    %c0_i32_0 = arith.constant 0 : i32
    %c0_i32_1 = arith.constant 0 : i32
    %c0_i32_2 = arith.constant 0 : i32
    return %c0_i32, %c0_i32_0, %c0_i32_1 : i32, i32, i32
  }
  func.func @transform_8(%arg0: i32) -> (i32, i32, i32) {
    %c0_i32 = arith.constant 0 : i32
    %c0_i32_0 = arith.constant 0 : i32
    %c0_i32_1 = arith.constant 0 : i32
    %c0_i32_2 = arith.constant 0 : i32
    return %c0_i32, %c0_i32_0, %c0_i32_1 : i32, i32, i32
  }
  func.func @transform_9(%arg0: i32) -> (i32, i32, i32) {
    %c0_i32 = arith.constant 0 : i32
    %c0_i32_0 = arith.constant 0 : i32
    %c0_i32_1 = arith.constant 0 : i32
    %c0_i32_2 = arith.constant 0 : i32
    return %c0_i32, %c0_i32_0, %c0_i32_1 : i32, i32, i32
  }
  func.func @transform_10(%arg0: i32) -> (i32, i32, i32) {
    %c0_i32 = arith.constant 0 : i32
    %c0_i32_0 = arith.constant 0 : i32
    %c0_i32_1 = arith.constant 0 : i32
    %c0_i32_2 = arith.constant 0 : i32
    return %c0_i32, %c0_i32_0, %c0_i32_1 : i32, i32, i32
  }
  func.func @transform_11(%arg0: i32) -> (i32, i32, i32) {
    %c0_i32 = arith.constant 0 : i32
    %c0_i32_0 = arith.constant 0 : i32
    %c0_i32_1 = arith.constant 0 : i32
    %c0_i32_2 = arith.constant 0 : i32
    return %c0_i32, %c0_i32_0, %c0_i32_1 : i32, i32, i32
  }
  func.func @transform_12(%arg0: i32) -> (i32, i32, i32) {
    %c0_i32 = arith.constant 0 : i32
    %c0_i32_0 = arith.constant 0 : i32
    %c0_i32_1 = arith.constant 0 : i32
    %c0_i32_2 = arith.constant 0 : i32
    return %c0_i32, %c0_i32_0, %c0_i32_1 : i32, i32, i32
  }
  func.func @transform_13(%arg0: i32) -> (i32, i32, i32, i32) {
    %c0_i32 = arith.constant 0 : i32
    %c0_i32_0 = arith.constant 0 : i32
    %c0_i32_1 = arith.constant 0 : i32
    %c0_i32_2 = arith.constant 0 : i32
    %c0_i32_3 = arith.constant 0 : i32
    return %c0_i32, %c0_i32_0, %c0_i32_1, %c0_i32_2 : i32, i32, i32, i32
  }
  func.func @transform_14(%arg0: i32) -> (i32, i32, i32, i32) {
    %c0_i32 = arith.constant 0 : i32
    %c0_i32_0 = arith.constant 0 : i32
    %c0_i32_1 = arith.constant 0 : i32
    %c0_i32_2 = arith.constant 0 : i32
    %c0_i32_3 = arith.constant 0 : i32
    return %c0_i32, %c0_i32_0, %c0_i32_1, %c0_i32_2 : i32, i32, i32, i32
  }
  func.func @transform_15(%arg0: i32) -> (i32, i32, i32, i32) {
    %c0_i32 = arith.constant 0 : i32
    %c0_i32_0 = arith.constant 0 : i32
    %c0_i32_1 = arith.constant 0 : i32
    %c0_i32_2 = arith.constant 0 : i32
    %c0_i32_3 = arith.constant 0 : i32
    return %c0_i32, %c0_i32_0, %c0_i32_1, %c0_i32_2 : i32, i32, i32, i32
  }
  func.func @transform_16(%arg0: i32) -> (i32, i32, i32) {
    %c0_i32 = arith.constant 0 : i32
    %c0_i32_0 = arith.constant 0 : i32
    %c0_i32_1 = arith.constant 0 : i32
    %c0_i32_2 = arith.constant 0 : i32
    return %c0_i32, %c0_i32_0, %c0_i32_1 : i32, i32, i32
  }
  func.func @transform_17(%arg0: i32) -> (i32, i32, i32, i32) {
    %c0_i32 = arith.constant 0 : i32
    %c0_i32_0 = arith.constant 0 : i32
    %c0_i32_1 = arith.constant 0 : i32
    %c0_i32_2 = arith.constant 0 : i32
    %c0_i32_3 = arith.constant 0 : i32
    return %c0_i32, %c0_i32_0, %c0_i32_1, %c0_i32_2 : i32, i32, i32, i32
  }
  func.func @transform_18(%arg0: i32) -> (i32, i32, i32, i32) {
    %c0_i32 = arith.constant 0 : i32
    %c0_i32_0 = arith.constant 0 : i32
    %c0_i32_1 = arith.constant 0 : i32
    %c0_i32_2 = arith.constant 0 : i32
    %c0_i32_3 = arith.constant 0 : i32
    return %c0_i32, %c0_i32_0, %c0_i32_1, %c0_i32_2 : i32, i32, i32, i32
  }
  func.func @transform_19(%arg0: i32) -> (i32, i32, i32, i32) {
    %c0_i32 = arith.constant 0 : i32
    %c0_i32_0 = arith.constant 0 : i32
    %c0_i32_1 = arith.constant 0 : i32
    %c0_i32_2 = arith.constant 0 : i32
    %c0_i32_3 = arith.constant 0 : i32
    return %c0_i32, %c0_i32_0, %c0_i32_1, %c0_i32_2 : i32, i32, i32, i32
  }
  func.func @transform_20(%arg0: i32) -> (i32, i32, i32) {
    %c0_i32 = arith.constant 0 : i32
    %c0_i32_0 = arith.constant 0 : i32
    %c0_i32_1 = arith.constant 0 : i32
    %c0_i32_2 = arith.constant 0 : i32
    return %c0_i32, %c0_i32_0, %c0_i32_1 : i32, i32, i32
  }
  func.func @transform_21(%arg0: i32) -> (i32, i32, i32) {
    %c0_i32 = arith.constant 0 : i32
    %c0_i32_0 = arith.constant 0 : i32
    %c0_i32_1 = arith.constant 0 : i32
    %c0_i32_2 = arith.constant 0 : i32
    return %c0_i32, %c0_i32_0, %c0_i32_1 : i32, i32, i32
  }
  func.func @transform_22(%arg0: i32) -> (i32, i32, i32) {
    %c0_i32 = arith.constant 0 : i32
    %c0_i32_0 = arith.constant 0 : i32
    %c0_i32_1 = arith.constant 0 : i32
    %c0_i32_2 = arith.constant 0 : i32
    return %c0_i32, %c0_i32_0, %c0_i32_1 : i32, i32, i32
  }
  func.func @transform_23(%arg0: i32) -> (i32, i32, i32) {
    %c0_i32 = arith.constant 0 : i32
    %c0_i32_0 = arith.constant 0 : i32
    %c0_i32_1 = arith.constant 0 : i32
    %c0_i32_2 = arith.constant 0 : i32
    return %c0_i32, %c0_i32_0, %c0_i32_1 : i32, i32, i32
  }
  func.func @transform_24(%arg0: i32) -> (i32, i32, i32) {
    %c0_i32 = arith.constant 0 : i32
    %c0_i32_0 = arith.constant 0 : i32
    %c0_i32_1 = arith.constant 0 : i32
    %c0_i32_2 = arith.constant 0 : i32
    return %c0_i32, %c0_i32_0, %c0_i32_1 : i32, i32, i32
  }
  func.func @transform_25(%arg0: i32) -> (i32, i32, i32) {
    %c0_i32 = arith.constant 0 : i32
    %c0_i32_0 = arith.constant 0 : i32
    %c0_i32_1 = arith.constant 0 : i32
    %c0_i32_2 = arith.constant 0 : i32
    return %c0_i32, %c0_i32_0, %c0_i32_1 : i32, i32, i32
  }
  func.func @transform_26(%arg0: i32) -> (i32, i32) {
    %c0_i32 = arith.constant 0 : i32
    %c0_i32_0 = arith.constant 0 : i32
    %c0_i32_1 = arith.constant 0 : i32
    return %c0_i32, %c0_i32_0 : i32, i32
  }
  func.func @transform_27(%arg0: i32) -> (i32, i32) {
    %c0_i32 = arith.constant 0 : i32
    %c0_i32_0 = arith.constant 0 : i32
    %c0_i32_1 = arith.constant 0 : i32
    return %c0_i32, %c0_i32_0 : i32, i32
  }
  func.func @transform_28(%arg0: i32) -> (i32, i32, i32) {
    %c0_i32 = arith.constant 0 : i32
    %c0_i32_0 = arith.constant 0 : i32
    %c0_i32_1 = arith.constant 0 : i32
    return %arg0, %c0_i32, %c0_i32_0 : i32, i32, i32
  }
}

</mosaic_0001>

<bundles_post_ra>
// kernel: tpu_custom_call.1
= control target key start
LH: loop header
LB: loop body
LE: loop exit
PB: predicated region body
PF: predicated region fallthrough
CT: control target
= control target key end

     0   :  { %s6849_s0 = inlined_call_operand.vmem [shape: f32[2,8,32], index: 0, kind: input, shape index: {}]   ;;  %s6850_s1 = inlined_call_operand.vmem [shape: f32[2,8,32], index: 1, kind: input, shape index: {}]   ;;  %s6851_s2 = inlined_call_operand.vmem [shape: f32[2,8,8], index: 2, kind: input, shape index: {}]   ;;  %s6852_s3 = inlined_call_operand.vmem [shape: f32[2,8,8], index: 3, kind: input, shape index: {}]   ;;  %s6853_s4 = inlined_call_operand.vmem [shape: f32[2,4,32,24], index: 4, kind: input, shape index: {}]   ;;  %s6854_s5 = inlined_call_operand.vmem [shape: f32[2,4,1,24], index: 5, kind: input, shape index: {}]   ;;  %s6855_s6 = inlined_call_operand.vmem [shape: f32[2,4,8,32], index: 6, kind: input, shape index: {}]   ;;  %s6856_s7 = inlined_call_operand.vmem [shape: f32[2,1,32], index: 7, kind: input, shape index: {}]   ;;  %s6857_s8 = inlined_call_operand.vmem [shape: f32[2,32,64], index: 8, kind: input, shape index: {}]   ;;  %s6858_s9 = inlined_call_operand.vmem [shape: f32[2,1,64], index: 9, kind: input, shape index: {}]   ;;  %s6859_s10 = inlined_call_operand.vmem [shape: f32[2,64,32], index: 10, kind: input, shape index: {}]   ;;  %s6860_s11 = inlined_call_operand.vmem [shape: f32[2,1,32], index: 11, kind: input, shape index: {}]   ;;  %s6861_s12 = inlined_call_operand.vmem [shape: f32[2,4,32], index: 12, kind: input, shape index: {}]   ;;  %s6862_s13 = inlined_call_operand.vmem [shape: f32[2,4,32,24], index: 13, kind: input, shape index: {}]   ;;  %s6863_s14 = inlined_call_operand.vmem [shape: f32[2,4,1,24], index: 14, kind: input, shape index: {}]   ;;  %s6864_s15 = inlined_call_operand.vmem [shape: f32[2,4,8,32], index: 15, kind: input, shape index: {}]   ;;  %s6865_s16 = inlined_call_operand.vmem [shape: f32[2,1,32], index: 16, kind: input, shape index: {}]   ;;  %s6866_s17 = inlined_call_operand.vmem [shape: f32[2,4,32,24], index: 17, kind: input, shape index: {}]   ;;  %s6867_s18 = inlined_call_operand.vmem [shape: f32[2,4,1,24], index: 18, kind: input, shape index: {}]   ;;  %s6868_s19 = inlined_call_operand.vmem [shape: f32[2,4,8,32], index: 19, kind: input, shape index: {}]   ;;  %s6869_s20 = inlined_call_operand.vmem [shape: f32[2,1,32], index: 20, kind: input, shape index: {}]   ;;  %s6870_s21 = inlined_call_operand.vmem [shape: f32[2,32,64], index: 21, kind: input, shape index: {}]   ;;  %s6871_s22 = inlined_call_operand.vmem [shape: f32[2,1,64], index: 22, kind: input, shape index: {}]   ;;  %s6872_s23 = inlined_call_operand.vmem [shape: f32[2,64,32], index: 23, kind: input, shape index: {}]   ;;  %s6873_s24 = inlined_call_operand.vmem [shape: f32[2,1,32], index: 24, kind: input, shape index: {}]   ;;  %s6874_s25 = inlined_call_operand.vmem [shape: f32[2,6,32], index: 25, kind: input, shape index: {}]   ;;  %s6875_s26 = inlined_call_operand.vmem [shape: f32[32,128], index: 26, kind: input, shape index: {}]   ;;  %s6876_s27 = inlined_call_operand.vmem [shape: f32[1,128], index: 27, kind: input, shape index: {}]   ;;  %s6877_s28 = inlined_call_operand.hbm [shape: f32[2,8,128], index: 28, kind: output, shape index: {}]  }
   0x1   :  { %6916 = sst [smem:[#allocation14_spill]] %s6849_s0 }
   0x2   :  { %6917 = sst [smem:[#allocation15_spill]] %s6850_s1 }
   0x3   :  { %6918 = sst [smem:[#allocation16_spill]] %s6851_s2 }
   0x4   :  { %6919 = sst [smem:[#allocation17_spill]] %s6852_s3 }
   0x5   :  { %6920 = sst [smem:[#allocation18_spill]] %s6853_s4 }
   0x6   :  { %6921 = sst [smem:[#allocation19_spill]] %s6854_s5 }
   0x7   :  { %6922 = sst [smem:[#allocation20_spill]] %s6855_s6 }
   0x8   :  { %6923 = sst [smem:[#allocation21_spill]] %s6856_s7 }
   0x9   :  { %6924 = sst [smem:[#allocation22_spill]] %s6857_s8 }
   0xa   :  { %6925 = sst [smem:[#allocation23_spill]] %s6858_s9 }
   0xb   :  { %6926 = sst [smem:[#allocation24_spill]] %s6859_s10 }
   0xc   :  { %6927 = sst [smem:[#allocation25_spill]] %s6860_s11 }
   0xd   :  { %6928 = sst [smem:[#allocation26_spill]] %s6861_s12 }
   0xe   :  { %6929 = sst [smem:[#allocation27_spill]] %s6870_s21 }
   0xf   :  { %6930 = sst [smem:[#allocation28_spill]] %s6871_s22 }
  0x10   :  { %6931 = sst [smem:[#allocation29_spill]] %s6872_s23 }
  0x11   :  { %6932 = sst [smem:[#allocation30_spill]] %s6873_s24 }
  0x12   :  { %6933 = sst [smem:[#allocation31_spill]] %s6875_s26 }
  0x13   :  { %6934 = sst [smem:[#allocation32_spill]] %s6876_s27 }
  0x14   :  { %6935 = sst [smem:[#allocation33_spill]] %s6877_s28 }
  0x15   :  { %33 = vsyncpa [#allocation3], 0 }
  0x16   :  { %35 = vsyncpa [#allocation3 + $0x1], 0  ;;  %s5593_s8 = smov 0   ;;  %s5595_s5 = smov 0  }
  0x17   :  { %s5597_s9 = smov 0   ;;  %s5599_s30 = smov 0  }
  0x18 LB: > { %6936 = sst [smem:[#allocation5_spill]] %s5431_s8  ;;  %s5614_s3 = sadd.s32 4294967295, %s5443_s30   ;;  %s5443_s30 = sphi %s5599_s30, %s6978_s30   ;;  %s5439_s9 = sphi %s5597_s9, %s6981_s9   ;;  %s5435_s5 = sphi %s5595_s5, %s6980_s5   ;;  %s5431_s8 = sphi %s5593_s8, %s6979_s8  }
  0x19   : > { %6937 = sst [smem:[#allocation6_spill]] %s5435_s5  ;;  %s4794_s6 = sadd.s32 4294967294, %s5443_s30  }
  0x1a   : > { %6938 = sst [smem:[#allocation7_spill]] %s5439_s9  ;;  %s5618_s10 = sadd.s32 1, %s5443_s30  }
  0x1b   : > { %6939 = sst [smem:[#allocation8_spill]] %s5443_s30  ;;  %s656_s0 = sadd.s32 1, %s5439_s9 }
  0x1c   : > { %6940 = sst [smem:[#allocation9_spill]] %s5614_s3  ;;  %s653_s11 = ssub.s32 %s5443_s30, %s5618_s10 }
  0x1d   : > { %6941 = sst [smem:[#allocation10_spill]] %s5618_s10  ;;  %p666_p0 = scmp.ne.s32.totalorder %s5439_s9, %s5435_s5 }
  0x1e   : > { %p654_p1 = scmp.eq.s32.totalorder %s653_s11, 0  ;;  %p667_p2 = scmp.eq.s32.totalorder %s5614_s3, 1 }
  0x1f   : > { %p672_p3 = scmp.ne.s32.totalorder %s5435_s5, %s5431_s8  ;;  %p673_p4 = scmp.eq.s32.totalorder %s4794_s6, 1 }
  0x20   : > { %s5629_s29 = scalar_select %p654_p1, %s5439_s9, %s656_s0  }
  0x21   : > { %p5631_p5 = por %p667_p2, %p666_p0  ;;  %p5635_p6 = por %p673_p4, %p672_p3 }
  0x22   : > { %6942 = sst [smem:[#allocation11_spill]] %s5629_s29  ;;  %p4797_p7 = scmp.ge.s32.totalorder %s5443_s30, 1 }
  0x23   : > { %s6943_s2 = scalar_select %p5631_p5, 1, 0 }
  0x24   : > { %s6945_s7 = scalar_select %p5635_p6, 1, 0 }
  0x25   : > { %6944 = sst [smem:[#allocation12_spill]] %s6943_s2  ;;  %p791_p8 = scmp.lt.s32.totalorder %s5443_s30, 3 }
  0x26   : > { %6946 = sst [smem:[#allocation13_spill]] %s6945_s7 }
  0x27   : > { %p792_p9 = pnand %p4797_p7, %p791_p8 }
  0x28   : > { %s6947_s4 = sld [smem:[#allocation18_spill]] (!%p792_p9)  ;;  %p876_p10 = scmp.lt.s32.totalorder (!%p792_p9), %s5614_s3, 1 }
  0x29   : > { %795 = sbr.rel (%p792_p9) target bundleno = 8738 (0x2222), region = 132  ;;  %s6948_s8 = sld [smem:[#allocation14_spill]] (!%p792_p9) }
  0x2a   : > { %s6949_s10 = sld [smem:[#allocation19_spill]] (!%p792_p9)  ;;  %s6895_s7 = smov (!%p792_p9), 120  }
  0x2b   : > { %s6950_s9 = sld [smem:[#allocation16_spill]] (!%p792_p9)  ;;  %s6961_s5 = smov (!%p792_p9), 112  }
  0x2c   : > { %s6951_s0 = sld [smem:[#allocation20_spill]] (!%p792_p9) }
  0x2d   : > { %s6952_s12 = sld [smem:[#allocation21_spill]] (!%p792_p9) }
  0x2e   : > { %v900_v0 = vld [vmem:[%s6947_s4 + $0x18] sm:$0xff]  ;;  %v899_v3 = vld [vmem:[%s6947_s4 + $0x10] sm:$0xff]  ;;  %v898_v6 = vld [vmem:[%s6947_s4 + $0x8] sm:$0xff]  ;;  %s877_s30 = scalar_select %p876_p10, %s5614_s3, 1  ;;  %vm934_vm0 = vcmask 261120   ;;  %vm1021_vm1 = vcmask 64512  }
  0x2f   : > { %v908_v1 = vld [vmem:[%s6947_s4 + $0x58] sm:$0xff]  ;;  %950 = vmatpush.msra.mxu0 %v900_v0  ;;  %v907_v4 = vld [vmem:[%s6947_s4 + $0x50] sm:$0xff]  ;;  %v906_v7 = vld [vmem:[%s6947_s4 + $0x48] sm:$0xff]  ;;  %s6953_s29 = sld [smem:[#allocation22_spill]]  ;;  %vm1456_vm6 = vcmask 523264  }
  0x30   : > { %v912_v2 = vld [vmem:[%s6947_s4 + $0x78] sm:$0xff]  ;;  %990 = vmatpush.msra.mxu2 %v908_v1  ;;  %v911_v5 = vld [vmem:[%s6947_s4 + $0x70] sm:$0xff]  ;;  %v910_v8 = vld [vmem:[%s6947_s4 + $0x68] sm:$0xff]  ;;  %s5676_s6 = sshll.u32 %s877_s30, 3  ;;  %s6893_s30 = smov 112  }
  0x31   : > { %1010 = vmatpush.msra.mxu3 %v912_v2  ;;  %951 = vmatpush.msra.mxu0 %v899_v3  ;;  %v897_v9 = vld [vmem:[%s6947_s4] sm:$0xff]  ;;  %v904_v11 = vld [vmem:[%s6947_s4 + $0x38] sm:$0xff]  ;;  %s879_s27 = scalar_lea.vmem %s6948_s8, %s5676_s6  ;;  %v903_v14 = vld [vmem:[%s6947_s4 + $0x30] sm:$0xff]  ;;  %s5735_s8 = scalar_lea.vmem %s6950_s9, %s5676_s6 }
  0x32   : > { %991 = vmatpush.msra.mxu2 %v907_v4  ;;  %v905_v10 = vld [vmem:[%s6947_s4 + $0x40] sm:$0xff]  ;;  %970 = vmatpush.msra.mxu1 %v904_v11  ;;  %v902_v15 = vld [vmem:[%s6947_s4 + $0x28] sm:$0xff]  ;;  %s6954_s1 = sld [smem:[#allocation24_spill]] }
  0x33   : > { %1011 = vmatpush.msra.mxu3 %v911_v5  ;;  %952 = vmatpush.msra.mxu0 %v898_v6  ;;  %v909_v12 = vld [vmem:[%s6947_s4 + $0x60] sm:$0xff]  ;;  %s6959_s28 = sld [smem:[#allocation25_spill]] }
  0x34   : > { %992 = vmatpush.msra.mxu2 %v906_v7  ;;  %v5688_v13 = vld [vmem:[%s879_s27] sm:$0xff]  ;;  %971 = vmatpush.msra.mxu1 %v903_v14  ;;  %s6963_s9 = sld [smem:[#allocation17_spill]] }
  0x35   : > { %1012 = vmatpush.msra.mxu3 %v910_v8  ;;  %953 = vmatpush.msra.mxu0 %v897_v9  ;;  %v901_v16 = vld [vmem:[%s6947_s4 + $0x20] sm:$0xff]  ;;  %s6964_s2 = sld [smem:[#allocation27_spill]] }
  0x36   : > { %993 = vmatpush.msra.mxu2 %v905_v10  ;;  %4803 = vmatmul.msk.f32.vlgmr.msra.gmra.mxu0 %vm934_vm0, %v5688_v13  ;;  %v5221_v17 = vld [vmem:[%s6949_s10] ss:$0 sm:$0xff]  ;;  %v5222_v20 = vld [vmem:[%s6949_s10 + $0x2] ss:$0 sm:$0xff]  ;;  %v5224_v21 = vld [vmem:[%s6949_s10 + $0x1] ss:$0 sm:$0xff] }
  0x37   : > { %1013 = vmatpush.msra.mxu3 %v909_v12  ;;  %4805 = vmatmul.msk.f32.vlgmr.msra.gmra.mxu2 %vm934_vm0, %v5688_v13  ;;  %v5223_v26 = vld [vmem:[%s6949_s10 + $0x3] ss:$0 sm:$0xff]  ;;  %s6970_s11 = sld [smem:[#allocation6_spill]] }
  0x38   : > { %4806 = vmatmul.msk.f32.vlgmr.msra.gmra.mxu3 %vm934_vm0, %v5688_v13  ;;  %972 = vmatpush.msra.mxu1 %v902_v15  ;;  %v5738_v33 = vld [vmem:[%s5735_s8] sm:$0xff]  ;;  %s6972_s23 = sld [smem:[#allocation33_spill]] }
  0x3a   : > { %973 = vmatpush.msra.mxu1 %v901_v16  ;;  %s6140_s22 = scalar_lea.vmem %s6963_s9, %s5676_s6  ;;  %s6966_s9 = sld [smem:[#allocation28_spill]] }
  0x3b   : > { %4804 = vmatmul.msk.f32.vlgmr.msra.gmra.mxu1 %vm934_vm0, %v5688_v13 }
  0xb3   : > { %v955_v18 = vpop.f32.mrf.mxu0 }
  0xb4   : > { %v956_v19 = vadd.f32 %v5221_v17, %v955_v18 }
  0xb6   : > { %1019 = vrot.lane.b32.xlu1 %v956_v19, %s6895_s7 }
  0xb8   : > { %v975_v24 = vpop.f32.mrf.mxu1 }
  0xb9   : > { %v976_v25 = vadd.f32 %v5224_v21, %v975_v24  ;;  %v919_v24 = vld [vmem:[%s6951_s0 + $0x10] sm:$0xff] }
  0xba   : > { %v995_v22 = vpop.f32.mrf.mxu2 }
  0xbb   : > { %v996_v23 = vadd.f32 %v5222_v20, %v995_v22  ;;  %v1015_v27 = vpop.f32.mrf.mxu3  ;;  %v5096_v46 = vpack.i.bf16 %v976_v25, %v956_v19 }
  0xbc   : > { %v1016_v28 = vadd.f32 %v5223_v26, %v1015_v27  ;;  %v917_v26 = vld [vmem:[%s6951_s0] sm:$0xff] }
  0xbd   : > { %1074 = vrot.lane.b32.xlu0 %v996_v23, %s6895_s7 }
  0xbe   : > { %1047 = vrot.lane.b32.xlu1 %v976_v25, %s6895_s7  ;;  %v5091_v47 = vpack.i.bf16 %v1016_v28, %v996_v23 }
  0xc5   : > { %1101 = vrot.lane.b32.xlu0 %v1016_v28, %s6895_s7  ;;  %s6960_s7 = smov 120  }
 0x128   : > { %v1020_v29 = vpop.permute.xlu1 %1019 }
 0x129   : > { %4807 = vmatpush.xpose.msk.msrb.mxu0 %vm1021_vm1, %v1020_v29 }
 0x12c   : > { %4808 = vmatmul.msk.f32.vlgmr.msrb.gmra.mxu0 %vm1021_vm1, %v956_v19 }
 0x12f   : > { %v1075_v30 = vpop.permute.xlu0 %1074 }
 0x130   : > { %4811 = vmatpush.xpose.msk.msrb.mxu2 %vm1021_vm1, %v1075_v30  ;;  %v1048_v31 = vpop.permute.xlu1 %1047 }
 0x131   : > { %4809 = vmatpush.xpose.msk.msrb.mxu1 %vm1021_vm1, %v1048_v31 }
 0x133   : > { %4812 = vmatmul.msk.f32.vlgmr.msrb.gmra.mxu2 %vm1021_vm1, %v996_v23  ;;  %v918_v23 = vld [vmem:[%s6951_s0 + $0x8] sm:$0xff] }
 0x134   : > { %4810 = vmatmul.msk.f32.vlgmr.msrb.gmra.mxu1 %vm1021_vm1, %v976_v25  ;;  %v920_v25 = vld [vmem:[%s6951_s0 + $0x18] sm:$0xff] }
 0x137   : > { %v1102_v32 = vpop.permute.xlu0 %1101 }
 0x138   : > { %4813 = vmatpush.xpose.msk.msrb.mxu3 %vm1021_vm1, %v1102_v32 }
 0x13b   : > { %4814 = vmatmul.msk.f32.vlgmr.msrb.gmra.mxu3 %vm1021_vm1, %v1016_v28 }
 0x1a9   : > { %v1043_v34 = vpop.f32.mrf.mxu0 }
 0x1aa   : > { %v1044_v35 = vadd.f32 %v1043_v34, %v5738_v33 }
 0x1ac   : > { %v1127_v36 = vsel %vm1021_vm1, %v1044_v35, -inf }
 0x1ad   : > { %1128 = vmax.xlane.f32.xlu0 %v1127_v36 }
 0x1b1   : > { %v1070_v37 = vpop.f32.mrf.mxu1 }
 0x1b2   : > { %v1071_v38 = vadd.f32 %v1070_v37, %v5738_v33 }
 0x1b4   : > { %v1130_v39 = vsel %vm1021_vm1, %v1071_v38, -inf }
 0x1b5   : > { %1131 = vmax.xlane.f32.xlu1 %v1130_v39 }
 0x1b6   : > { %v1097_v40 = vpop.f32.mrf.mxu2 }
 0x1b7   : > { %v1098_v41 = vadd.f32 %v1097_v40, %v5738_v33 }
 0x1b9   : > { %v1133_v42 = vsel %vm1021_vm1, %v1098_v41, -inf }
 0x1ba   : > { %1134 = vmax.xlane.f32.xlu2 %v1133_v42 }
 0x1be   : > { %v1124_v43 = vpop.f32.mrf.mxu3 }
 0x1bf   : > { %v1125_v44 = vadd.f32 %v1124_v43, %v5738_v33 }
 0x1c1   : > { %v1136_v45 = vsel %vm1021_vm1, %v1125_v44, -inf }
 0x1c2   : > { %1137 = vmax.xlane.f32.xlu2 %v1136_v45 }
 0x1ce   : > { %5097 = vrot.lane.b32.xlu1 %v5096_v46, %s6893_s30 }
 0x1da   : > { %5092 = vrot.lane.b32.xlu2 %v5091_v47, %s6893_s30  ;;  %v5447_v47 = vmov 32.0   ;;  %s6955_s30 = sld [smem:[#allocation26_spill]] }
 0x1e0   : > { %s6956_s27 = smov %s6955_s30 }
 0x220   : > { %v1129_v56 = vpop.xlane.xlu0 %1128 }
 0x221   : > { %v1139_v60 = vsub.f32 %v1044_v35, %v1129_v56 }
 0x223   : > { %v1143_v63 = vmul.f32 1.442695, %v1139_v60  ;;  %v1413_v60 = vld [vmem:[%s6953_s29 + $0x8] sm:$0xff] }
 0x228   : > { %v1132_v48 = vpop.xlane.xlu1 %1131 }
 0x229   : > { %v1140_v49 = vsub.f32 %v1071_v38, %v1132_v48 }
 0x22b   : > { %v1145_v50 = vmul.f32 1.442695, %v1140_v49 }
 0x22d   : > { %5260 = vpow2.f32 %v1145_v50  ;;  %v1135_v51 = vpop.xlane.xlu2 %1134 }
 0x22e   : > { %v1141_v52 = vsub.f32 %v1098_v41, %v1135_v51  ;;  %v5225_v41 = vld [vmem:[%s6952_s12] ss:$0 sm:$0xff] }
 0x230   : > { %v1147_v53 = vmul.f32 1.442695, %v1141_v52 }
 0x232   : > { %5262 = vpow2.f32 %v1147_v53 }
 0x233   : > { %v5261_v54 = vpop.eup %5260 }
 0x234   : > { %v1154_v55 = vsel %vm1021_vm1, %v5261_v54, 0.0 }
 0x235   : > { %v1138_v57 = vpop.xlane.xlu2 %1137  ;;  %1155 = vadd.xlane.f32.xlu0 %v1154_v55 }
 0x236   : > { %v1142_v58 = vsub.f32 %v1125_v44, %v1138_v57 }
 0x238   : > { %v5263_v59 = vpop.eup %5262  ;;  %v1149_v61 = vmul.f32 1.442695, %v1142_v58  ;;  %v1415_v58 = vld [vmem:[%s6953_s29 + $0x18] sm:$0xff] }
 0x239   : > { %v1157_v62 = vsel %vm1021_vm1, %v5263_v59, 0.0 }
 0x23a   : > { %5264 = vpow2.f32 %v1149_v61  ;;  %1158 = vadd.xlane.f32.xlu2 %v1157_v62  ;;  %v1412_v61 = vld [vmem:[%s6953_s29] sm:$0xff]  ;;  %v1451_v62 = vld [vmem:[%s6954_s1 + $0x38] sm:$0xff] }
 0x23b   : > { %5266 = vpow2.f32 %v1143_v63  ;;  %v1450_v63 = vld [vmem:[%s6954_s1 + $0x30] sm:$0xff] }
 0x23d   : > { %v5093_v0 = vpop.permute.xlu2 %5092 }
 0x23e   : > { %v5095_v1 = vunpack.i.h.bf16 %v5093_v0  ;;  %v5094_v2 = vunpack.i.l.bf16 %v5093_v0  ;;  %v1449_v0 = vld [vmem:[%s6954_s1 + $0x28] sm:$0xff] }
 0x240   : > { %v5265_v3 = vpop.eup %5264  ;;  %1244 = vmatpush.msra.mxu2 %v5094_v2  ;;  %1270 = vmatpush.msra.mxu3 %v5095_v1  ;;  %v5098_v4 = vpop.permute.xlu1 %5097 }
 0x241   : > { %v5100_v5 = vunpack.i.h.bf16 %v5098_v4  ;;  %v5099_v6 = vunpack.i.l.bf16 %v5098_v4  ;;  %v1160_v7 = vsel %vm1021_vm1, %v5265_v3, 0.0  ;;  %v5267_v8 = vpop.eup %5266 }
 0x242   : > { %1161 = vadd.xlane.f32.xlu2 %v1160_v7  ;;  %v1151_v9 = vsel %vm1021_vm1, %v5267_v8, 0.0  ;;  %1339 = vmatpush.msrb.mxu2 %v919_v24 }
 0x243   : > { %1192 = vmatpush.msra.mxu0 %v5099_v6  ;;  %1218 = vmatpush.msra.mxu1 %v5100_v5  ;;  %v1447_v5 = vld [vmem:[%s6954_s1 + $0x18] sm:$0xff] }
 0x244   : > { %1362 = vmatpush.msrb.mxu3 %v920_v25 }
 0x245   : > { %1316 = vmatpush.msrb.mxu1 %v918_v23  ;;  %1293 = vmatpush.msrb.mxu0 %v917_v26 }
 0x24a   : > { %1152 = vadd.xlane.f32.xlu2 %v1151_v9 }
 0x2a8   : > { %v1156_v10 = vpop.xlane.xlu0 %1155 }
 0x2a9   : > { %5268 = vrcp.f32 %v1156_v10  ;;  %v5818_v10 = vld [vmem:[%s6955_s30] sm:$0xf]  ;;  %s6957_s30 = sld [smem:[#allocation23_spill]] }
 0x2ad   : > { %v1159_v11 = vpop.xlane.xlu2 %1158 }
 0x2ae   : > { %5270 = vrcp.f32 %v1159_v11 }
 0x2af   : > { %v5269_v12 = vpop.eup %5268  ;;  %s6958_s24 = smov %s6957_s30  ;;  %v5226_v23 = vld [vmem:[%s6957_s30] ss:$0 sm:$0xff]  ;;  %s6974_s30 = sld [smem:[#allocation32_spill]] }
 0x2b0   : > { %v1168_v14 = vmul.f32 %v5269_v12, %v5261_v54 }
 0x2b2   : > { %4816 = vmatmul.msk.f32.vlgmr.msra.gmra.mxu1 %vm1021_vm1, %v1168_v14  ;;  %v1408_v14 = vperm.slane %v5818_v10, 0 }
 0x2b3   : > { %1468 = vmatpush.msra.mxu1 %v1451_v62 }
 0x2b4   : > { %v5271_v15 = vpop.eup %5270 }
 0x2b5   : > { %v1169_v16 = vmul.f32 %v5271_v15, %v5263_v59  ;;  %v1162_v17 = vpop.xlane.xlu2 %1161  ;;  %v1414_v59 = vld [vmem:[%s6953_s29 + $0x10] sm:$0xff]  ;;  %1469 = vmatpush.msra.mxu1 %v1450_v63  ;;  %v1503_v63 = vperm.slane %v5818_v10, 2 }
 0x2b6   : > { %5272 = vrcp.f32 %v1162_v17  ;;  %v1410_v17 = vperm.slane %v5818_v10, 1 }
 0x2b7   : > { %4817 = vmatmul.msk.f32.vlgmr.msra.gmra.mxu2 %vm1021_vm1, %v1169_v16  ;;  %1470 = vmatpush.msra.mxu1 %v1449_v0 }
 0x2bc   : > { %v5273_v18 = vpop.eup %5272 }
 0x2bd   : > { %v1170_v19 = vmul.f32 %v5273_v18, %v5265_v3  ;;  %v1153_v20 = vpop.xlane.xlu2 %1152  ;;  %v1448_v3 = vld [vmem:[%s6954_s1 + $0x20] sm:$0xff] }
 0x2be   : > { %5274 = vrcp.f32 %v1153_v20  ;;  %1471 = vmatpush.msra.mxu1 %v1448_v3  ;;  %v1446_v20 = vld [vmem:[%s6954_s1 + $0x10] sm:$0xff] }
 0x2bf   : > { %4818 = vmatmul.msk.f32.vlgmr.msra.gmra.mxu3 %vm1021_vm1, %v1170_v19  ;;  %5276 = vrcp.f32 %v5447_v47  ;;  %v4826_v47 = vld [vmem:[%s6947_s4 + $0x80] sm:$0xff] }
 0x2c0   : > { %1472 = vmatpush.msra.mxu1 %v1447_v5  ;;  %v5229_v5 = vld [vmem:[%s6949_s10 + $0x4] ss:$0 sm:$0xff] }
 0x2c2   : > { %1473 = vmatpush.msra.mxu1 %v1446_v20 }
 0x2c4   : > { %v5275_v21 = vpop.eup %5274 }
 0x2c5   : > { %v1167_v22 = vmul.f32 %v5275_v21, %v5267_v8  ;;  %v5277_v48 = vpop.eup %5276  ;;  %v1445_v21 = vld [vmem:[%s6954_s1 + $0x8] sm:$0xff] }
 0x2c6   : > { %v1383_v49 = vmul.f32 32.0, %v5277_v48  ;;  %vm1387_vm2 = vweird.f32 %v5277_v48  ;;  %1474 = vmatpush.msra.mxu1 %v1445_v21 }
 0x2c7   : > { %4815 = vmatmul.msk.f32.vlgmr.msra.gmra.mxu0 %vm1021_vm1, %v1167_v22  ;;  %v1444_v22 = vld [vmem:[%s6954_s1] sm:$0xff] }
 0x2c8   : > { %v1384_v50 = vsub.f32 1.0, %v1383_v49  ;;  %1435 = vmatpush.msra.mxu0 %v1415_v58  ;;  %1475 = vmatpush.msra.mxu1 %v1444_v22  ;;  %v4834_v49 = vld [vmem:[%s6947_s4 + $0xc0] sm:$0xff] }
 0x2ca   : > { %v1385_v51 = vmul.f32 %v5277_v48, %v1384_v50  ;;  %1436 = vmatpush.msra.mxu0 %v1414_v59  ;;  %v4841_v50 = vld [vmem:[%s6947_s4 + $0xf8] sm:$0xff] }
 0x2cc   : > { %v1386_v52 = vadd.f32 %v5277_v48, %v1385_v51  ;;  %1437 = vmatpush.msra.mxu0 %v1413_v60  ;;  %v4840_v51 = vld [vmem:[%s6947_s4 + $0xf0] sm:$0xff] }
 0x2ce   : > { %v5783_v53 = vsel %vm1387_vm2, %v5277_v48, %v1386_v52  ;;  %1438 = vmatpush.msra.mxu0 %v1412_v61  ;;  %v4830_v48 = vld [vmem:[%s6947_s4 + $0xa0] sm:$0xff] }
 0x32f   : > { %v1220_v27 = vpop.f32.mrf.mxu1 }
 0x330   : > { %4820 = vmatmul.msk.f32.vlgmr.msrb.gmra.mxu1 %vm1021_vm1, %v1220_v27  ;;  %v5227_v27 = vld [vmem:[%s6959_s28] ss:$0 sm:$0xff] }
 0x33a   : > { %v1246_v28 = vpop.f32.mrf.mxu2 }
 0x33b   : > { %4821 = vmatmul.msk.f32.vlgmr.msrb.gmra.mxu2 %vm1021_vm1, %v1246_v28 }
 0x342   : > { %v1272_v29 = vpop.f32.mrf.mxu3 }
 0x343   : > { %4822 = vmatmul.msk.f32.vlgmr.msrb.gmra.mxu3 %vm1021_vm1, %v1272_v29 }
 0x344   : > { %v1194_v30 = vpop.f32.mrf.mxu0 }
 0x345   : > { %4819 = vmatmul.msk.f32.vlgmr.msrb.gmra.mxu0 %vm1021_vm1, %v1194_v30 }
 0x3ad   : > { %v1318_v31 = vpop.f32.mrf.mxu1 }
 0x3ae   : > { %v1368_v35 = vsel %vm934_vm0, %v1318_v31, 0.0 }
 0x3be   : > { %v1341_v32 = vpop.f32.mrf.mxu2 }
 0x3bf   : > { %v1370_v38 = vsel %vm934_vm0, %v1341_v32, 0.0 }
 0x3c2   : > { %v1295_v34 = vpop.f32.mrf.mxu0 }
 0x3c3   : > { %v1367_v36 = vsel %vm934_vm0, %v1295_v34, 0.0 }
 0x3c4   : > { %v1369_v37 = vadd.f32 %v1368_v35, %v1367_v36 }
 0x3c6   : > { %v1364_v39 = vpop.f32.mrf.mxu3  ;;  %v1371_v40 = vadd.f32 %v1370_v38, %v1369_v37  ;;  %v4829_v38 = vld [vmem:[%s6947_s4 + $0x98] sm:$0xff] }
 0x3c7   : > { %v1372_v42 = vsel %vm934_vm0, %v1364_v39, 0.0  ;;  %v4833_v39 = vld [vmem:[%s6947_s4 + $0xb8] sm:$0xff]  ;;  %1565 = vmatpush.msra.mxu2 %v4829_v38 }
 0x3c8   : > { %v1373_v43 = vadd.f32 %v1372_v42, %v1371_v40  ;;  %v4837_v40 = vld [vmem:[%s6947_s4 + $0xd8] sm:$0xff]  ;;  %1585 = vmatpush.msra.mxu3 %v4833_v39  ;;  %v4832_v42 = vld [vmem:[%s6947_s4 + $0xb0] sm:$0xff] }
 0x3c9   : > { %1605 = vmatpush.msrb.mxu0 %v4837_v40 }
 0x3ca   : > { %v1377_v44 = vadd.f32 %v5225_v41, %v1373_v43  ;;  %v4828_v41 = vld [vmem:[%s6947_s4 + $0x90] sm:$0xff]  ;;  %1586 = vmatpush.msra.mxu3 %v4832_v42 }
 0x3cb   : > { %v4836_v43 = vld [vmem:[%s6947_s4 + $0xd0] sm:$0xff]  ;;  %1566 = vmatpush.msra.mxu2 %v4828_v41 }
 0x3cc   : > { %v1378_v45 = vadd.f32 %v1377_v44, %v5688_v13  ;;  %1606 = vmatpush.msrb.mxu0 %v4836_v43  ;;  %v4827_v44 = vld [vmem:[%s6947_s4 + $0x88] sm:$0xff] }
 0x3cd   : > { %1567 = vmatpush.msra.mxu2 %v4827_v44 }
 0x3ce   : > { %v1379_v46 = vsel %vm934_vm0, %v1378_v45, 0.0 }
 0x3cf   : > { %1380 = vadd.xlane.f32.xlu0 %v1379_v46  ;;  %v4835_v46 = vld [vmem:[%s6947_s4 + $0xc8] sm:$0xff]  ;;  %1568 = vmatpush.msra.mxu2 %v4826_v47 }
 0x3d0   : > { %1607 = vmatpush.msrb.mxu0 %v4835_v46 }
 0x3d1   : > { %1625 = vmatpush.msrb.mxu2 %v4841_v50 }
 0x3d2   : > { %1608 = vmatpush.msrb.mxu0 %v4834_v49 }
 0x3d3   : > { %1626 = vmatpush.msrb.mxu2 %v4840_v51 }
 0x442   : > { %v1381_v54 = vpop.xlane.xlu0 %1380 }
 0x443   : > { %v1389_v55 = vmul.f32 %v5783_v53, %v1381_v54  ;;  %v4839_v54 = vld [vmem:[%s6947_s4 + $0xe8] sm:$0xff] }
 0x444   : > { %1627 = vmatpush.msrb.mxu2 %v4839_v54 }
 0x445   : > { %v1390_v56 = vsub.f32 %v1378_v45, %v1389_v55  ;;  %v4831_v45 = vld [vmem:[%s6947_s4 + $0xa8] sm:$0xff] }
 0x446   : > { %1587 = vmatpush.msra.mxu3 %v4831_v45 }
 0x447   : > { %v1391_v57 = vmul.f32 %v1390_v56, %v1390_v56 }
 0x448   : > { %1588 = vmatpush.msra.mxu3 %v4830_v48 }
 0x449   : > { %v1392_v13 = vsel %vm934_vm0, %v1391_v57, 0.0 }
 0x44a   : > { %1393 = vadd.xlane.f32.xlu0 %v1392_v13 }
 0x4bd   : > { %v1394_v1 = vpop.xlane.xlu0 %1393 }
 0x4be   : > { %v1395_v2 = vmul.f32 %v1394_v1, %v5783_v53 }
 0x4c0   : > { %v1396_v4 = vadd.f32 1e-05, %v1395_v2  ;;  %v1505_v2 = vperm.slane %v5818_v10, 3 }
 0x4c2   : > { %5278 = vrsqrt.f32 %v1396_v4  ;;  %vm1403_vm4 = vweird.f32 %v1396_v4 }
 0x4c8   : > { %v5279_v6 = vpop.eup %5278 }
 0x4c9   : > { %v1398_v7 = vmul.f32 %v5279_v6, %v1396_v4  ;;  %vm1404_vm3 = vweird.f32 %v5279_v6 }
 0x4ca   : > { %vm1405_vm5 = vmor %vm1403_vm4, %vm1404_vm3 }
 0x4cb   : > { %v1399_v8 = vmul.f32 %v5279_v6, %v1398_v7 }
 0x4cd   : > { %v1400_v9 = vmul.f32 0.5, %v1399_v8  ;;  %v5230_v8 = vld [vmem:[%s6949_s10 + $0x5] ss:$0 sm:$0xff] }
 0x4cf   : > { %v1401_v11 = vsub.f32 1.5, %v1400_v9  ;;  %v5231_v9 = vld [vmem:[%s6949_s10 + $0x7] ss:$0 sm:$0xff] }
 0x4d1   : > { %v1402_v12 = vmul.f32 %v5279_v6, %v1401_v11 }
 0x4d3   : > { %v1406_v15 = vsel %vm1405_vm5, %v5279_v6, %v1402_v12 }
 0x4d4   : > { %v1407_v16 = vmul.f32 %v1406_v15, %v1390_v56  ;;  %v4838_v56 = vld [vmem:[%s6947_s4 + $0xe0] sm:$0xff]  ;;  %s873_s4 = sand.u32 1, %s6970_s11  }
 0x4d5   : > { %1628 = vmatpush.msrb.mxu2 %v4838_v56  ;;  %v5228_v15 = vld [vmem:[%s6949_s10 + $0x6] ss:$0 sm:$0xff]  ;;  %s6962_s10 = sld [smem:[#allocation15_spill]]  ;;  %s4684_s11 = scalar_lea.sflag [#allocation3], %s873_s4 }
 0x4d6   : > { %v1409_v18 = vmul.f32 %v1408_v14, %v1407_v16 }
 0x4d8   : > { %v1411_v19 = vadd.f32 %v1410_v17, %v1409_v18 }
 0x4da   : > { %4823 = vmatmul.msk.f32.vlgmr.msra.gmra.mxu0 %vm934_vm0, %v1411_v19 }
 0x4db   : > { %s883_s21 = scalar_lea.vmem %s6962_s10, %s5676_s6  ;;  %s6967_s6 = smov %s6966_s9 }
 0x557   : > { %v1440_v24 = vpop.f32.mrf.mxu0 }
 0x558   : > { %v1441_v25 = vadd.f32 %v5226_v23, %v1440_v24 }
 0x55a   : > { %v1443_v26 = vmax.f32 %v1441_v25, 0.0 }
 0x55c   : > { %4824 = vmatmul.msk.f32.vlgmr.msra.gmra.mxu1 %vm1456_vm6, %v1443_v26 }
 0x5d9   : > { %v1477_v28 = vpop.f32.mrf.mxu1 }
 0x5da   : > { %v1478_v29 = vadd.f32 %v5227_v27, %v1477_v28 }
 0x5dc   : > { %v1480_v30 = vadd.f32 %v1478_v29, %v1411_v19 }
 0x5de   : > { %v1481_v31 = vsel %vm934_vm0, %v1480_v30, 0.0 }
 0x5df   : > { %1482 = vadd.xlane.f32.xlu0 %v1481_v31 }
 0x652   : > { %v1483_v32 = vpop.xlane.xlu0 %1482 }
 0x653   : > { %v1484_v34 = vmul.f32 %v1483_v32, %v5783_v53 }
 0x655   : > { %v1485_v35 = vsub.f32 %v1480_v30, %v1484_v34 }
 0x657   : > { %v1486_v36 = vmul.f32 %v1485_v35, %v1485_v35 }
 0x659   : > { %v1487_v37 = vsel %vm934_vm0, %v1486_v36, 0.0 }
 0x65a   : > { %1488 = vadd.xlane.f32.xlu1 %v1487_v37 }
 0x6cd   : > { %v1489_v52 = vpop.xlane.xlu1 %1488 }
 0x6ce   : > { %v1490_v55 = vmul.f32 %v1489_v52, %v5783_v53 }
 0x6d0   : > { %v1491_v57 = vadd.f32 1e-05, %v1490_v55 }
 0x6d2   : > { %5280 = vrsqrt.f32 %v1491_v57  ;;  %vm1498_vm8 = vweird.f32 %v1491_v57 }
 0x6d8   : > { %v5281_v13 = vpop.eup %5280 }
 0x6d9   : > { %v1493_v58 = vmul.f32 %v5281_v13, %v1491_v57  ;;  %vm1499_vm7 = vweird.f32 %v5281_v13 }
 0x6da   : > { %vm1500_vm9 = vmor %vm1498_vm8, %vm1499_vm7 }
 0x6db   : > { %v1494_v59 = vmul.f32 %v5281_v13, %v1493_v58 }
 0x6dd   : > { %v1495_v60 = vmul.f32 0.5, %v1494_v59 }
 0x6df   : > { %v1496_v61 = vsub.f32 1.5, %v1495_v60 }
 0x6e1   : > { %v1497_v62 = vmul.f32 %v5281_v13, %v1496_v61 }
 0x6e3   : > { %v1501_v0 = vsel %vm1500_vm9, %v5281_v13, %v1497_v62 }
 0x6e4   : > { %v1502_v1 = vmul.f32 %v1501_v0, %v1485_v35 }
 0x6e6   : > { %v1504_v3 = vmul.f32 %v1503_v63, %v1502_v1 }
 0x6e8   : > { %v5893_v4 = vadd.f32 %v1505_v2, %v1504_v3 }
 0x6ea   : > { %4851 = vmatmul.msk.f32.vlgmr.msra.gmra.mxu2 %vm934_vm0, %v5893_v4  ;;  %4852 = vmatmul.msk.f32.vlgmr.msra.gmra.mxu3 %vm934_vm0, %v5893_v4 }
 0x6eb   : > { %4853 = vmatmul.msk.f32.vlgmr.msrb.gmra.mxu0 %vm934_vm0, %v5893_v4 }
 0x6f2   : > { %4854 = vmatmul.msk.f32.vlgmr.msrb.gmra.mxu2 %vm934_vm0, %v5893_v4 }
 0x768   : > { %v1610_v16 = vpop.f32.mrf.mxu0 }
 0x769   : > { %v1611_v17 = vadd.f32 %v5228_v15, %v1610_v16  ;;  %v4846_v16 = vld [vmem:[%s6951_s0 + $0x20] sm:$0xff] }
 0x76d   : > { %v1570_v6 = vpop.f32.mrf.mxu2  ;;  %v1590_v10 = vpop.f32.mrf.mxu3 }
 0x76e   : > { %v5906_v7 = vadd.f32 %v5229_v5, %v1570_v6  ;;  %v5916_v12 = vadd.f32 %v5230_v8, %v1590_v10 }
 0x770   : > { %1634 = vrot.lane.b32.xlu0 %v5906_v7, %s6960_s7  ;;  %v5106_v55 = vpack.i.bf16 %v1611_v17, %v5916_v12 }
 0x775   : > { %v1630_v11 = vpop.f32.mrf.mxu2 }
 0x776   : > { %v5918_v14 = vadd.f32 %v5231_v9, %v1630_v11  ;;  %v4847_v11 = vld [vmem:[%s6951_s0 + $0x28] sm:$0xff] }
 0x778   : > { %1715 = vrot.lane.b32.xlu2 %v5918_v14, %s6960_s7  ;;  %1661 = vrot.lane.b32.xlu0 %v5916_v12, %s6960_s7  ;;  %v5101_v56 = vpack.i.bf16 %v5918_v14, %v5906_v7 }
 0x780   : > { %1688 = vrot.lane.b32.xlu0 %v1611_v17, %s6960_s7 }
 0x7d2   : > { %v1716_v18 = vpop.permute.xlu2 %1715 }
 0x7d3   : > { %4861 = vmatpush.xpose.msk.msra.mxu2 %vm1021_vm1, %v1716_v18 }
 0x7d6   : > { %4862 = vmatmul.msk.f32.vlgmr.msra.gmra.mxu2 %vm1021_vm1, %v5918_v14 }
 0x7e2   : > { %v1635_v19 = vpop.permute.xlu0 %1634 }
 0x7e3   : > { %4855 = vmatpush.xpose.msk.msrb.mxu3 %vm1021_vm1, %v1635_v19 }
 0x7e6   : > { %4856 = vmatmul.msk.f32.vlgmr.msrb.gmra.mxu3 %vm1021_vm1, %v5906_v7 }
 0x7ea   : > { %v1662_v20 = vpop.permute.xlu0 %1661 }
 0x7eb   : > { %4857 = vmatpush.xpose.msk.msra.mxu0 %vm1021_vm1, %v1662_v20  ;;  %v2125_v20 = vld [vmem:[%s6862_s13 + $0x38] sm:$0xff] }
 0x7ee   : > { %4858 = vmatmul.msk.f32.vlgmr.msra.gmra.mxu0 %vm1021_vm1, %v5916_v12  ;;  %v4848_v12 = vld [vmem:[%s6951_s0 + $0x30] sm:$0xff] }
 0x7f2   : > { %v1689_v21 = vpop.permute.xlu0 %1688 }
 0x7f3   : > { %4859 = vmatpush.xpose.msk.msrb.mxu1 %vm1021_vm1, %v1689_v21  ;;  %v2124_v21 = vld [vmem:[%s6862_s13 + $0x30] sm:$0xff] }
 0x7f6   : > { %4860 = vmatmul.msk.f32.vlgmr.msrb.gmra.mxu1 %vm1021_vm1, %v1611_v17  ;;  %v4849_v17 = vld [vmem:[%s6951_s0 + $0x38] sm:$0xff]  ;;  %s6969_s0 = sld [smem:[#allocation31_spill]] }
 0x859   : > { %v1738_v31 = vpop.f32.mrf.mxu2 }
 0x85a   : > { %v1739_v32 = vadd.f32 %v1738_v31, %v5738_v33 }
 0x85c   : > { %v1750_v34 = vsel %vm1021_vm1, %v1739_v32, -inf }
 0x869   : > { %v1657_v22 = vpop.f32.mrf.mxu3 }
 0x86a   : > { %v1658_v23 = vadd.f32 %v1657_v22, %v5738_v33  ;;  %v2121_v22 = vld [vmem:[%s6862_s13 + $0x18] sm:$0xff] }
 0x86b   : > { %v1684_v24 = vpop.f32.mrf.mxu0 }
 0x86c   : > { %v1685_v25 = vadd.f32 %v1684_v24, %v5738_v33  ;;  %v1741_v26 = vsel %vm1021_vm1, %v1658_v23, -inf  ;;  %v2120_v24 = vld [vmem:[%s6862_s13 + $0x10] sm:$0xff] }
 0x86d   : > { %1742 = vmax.xlane.f32.xlu2 %v1741_v26  ;;  %v2122_v26 = vld [vmem:[%s6862_s13 + $0x20] sm:$0xff] }
 0x86e   : > { %v1744_v27 = vsel %vm1021_vm1, %v1685_v25, -inf }
 0x86f   : > { %1745 = vmax.xlane.f32.xlu0 %v1744_v27  ;;  %v6001_v27 = vld [vmem:[%s883_s21] sm:$0xff]  ;;  %s6965_s21 = sld [smem:[#allocation29_spill]] }
 0x873   : > { %v1711_v28 = vpop.f32.mrf.mxu1 }
 0x874   : > { %v1712_v29 = vadd.f32 %v1711_v28, %v5738_v33  ;;  %v2118_v28 = vld [vmem:[%s6862_s13] sm:$0xff] }
 0x876   : > { %v1747_v30 = vsel %vm1021_vm1, %v1712_v29, -inf }
 0x877   : > { %1748 = vmax.xlane.f32.xlu1 %v1747_v30 }
 0x87f   : > { %1751 = vmax.xlane.f32.xlu1 %v1750_v34 }
 0x8e0   : > { %v1743_v35 = vpop.xlane.xlu2 %1742 }
 0x8e1   : > { %v1753_v36 = vsub.f32 %v1658_v23, %v1743_v35  ;;  %v2123_v23 = vld [vmem:[%s6862_s13 + $0x28] sm:$0xff] }
 0x8e2   : > { %v1746_v37 = vpop.xlane.xlu0 %1745 }
 0x8e3   : > { %v1757_v38 = vmul.f32 1.442695, %v1753_v36  ;;  %v1754_v39 = vsub.f32 %v1685_v25, %v1746_v37  ;;  %v2119_v25 = vld [vmem:[%s6862_s13 + $0x8] sm:$0xff] }
 0x8e5   : > { %5282 = vpow2.f32 %v1757_v38  ;;  %v1759_v40 = vmul.f32 1.442695, %v1754_v39  ;;  %v5232_v39 = vld [vmem:[%s6952_s12 + $0x1] ss:$0 sm:$0xff]  ;;  %s4798_s12 = sshll.u32 %s873_s4, 3 }
 0x8e7   : > { %5284 = vpow2.f32 %v1759_v40 }
 0x8ea   : > { %v1749_v41 = vpop.xlane.xlu1 %1748 }
 0x8eb   : > { %v5283_v42 = vpop.eup %5282  ;;  %v1755_v43 = vsub.f32 %v1712_v29, %v1749_v41 }
 0x8ec   : > { %v1765_v44 = vsel %vm1021_vm1, %v5283_v42, 0.0 }
 0x8ed   : > { %v5285_v45 = vpop.eup %5284  ;;  %v1761_v46 = vmul.f32 1.442695, %v1755_v43  ;;  %1766 = vadd.xlane.f32.xlu1 %v1765_v44 }
 0x8ee   : > { %v1768_v33 = vsel %vm1021_vm1, %v5285_v45, 0.0 }
 0x8ef   : > { %5286 = vpow2.f32 %v1761_v46  ;;  %1769 = vadd.xlane.f32.xlu2 %v1768_v33  ;;  %v2132_v46 = vld [vmem:[%s6862_s13 + $0x70] sm:$0xff]  ;;  %v2131_v33 = vld [vmem:[%s6862_s13 + $0x68] sm:$0xff] }
 0x8f2   : > { %v1752_v47 = vpop.xlane.xlu1 %1751 }
 0x8f3   : > { %v1756_v48 = vsub.f32 %v1739_v32, %v1752_v47  ;;  %v5234_v47 = vld [vmem:[%s6863_s14] ss:$0 sm:$0xff] }
 0x8f5   : > { %v5287_v49 = vpop.eup %5286  ;;  %v1763_v50 = vmul.f32 1.442695, %v1756_v48 }
 0x8f6   : > { %v1771_v51 = vsel %vm1021_vm1, %v5287_v49, 0.0 }
 0x8f7   : > { %5288 = vpow2.f32 %v1763_v50  ;;  %1772 = vadd.xlane.f32.xlu0 %v1771_v51  ;;  %v5233_v50 = vld [vmem:[%s6863_s14 + $0x1] ss:$0 sm:$0xff] }
 0x8fd   : > { %v5289_v52 = vpop.eup %5288 }
 0x8fe   : > { %v1774_v54 = vsel %vm1021_vm1, %v5289_v52, 0.0 }
 0x8ff   : > { %1775 = vadd.xlane.f32.xlu1 %v1774_v54 }
 0x907   : > { %5107 = vrot.lane.b32.xlu2 %v5106_v55, %s6961_s5 }
 0x918   : > { %5102 = vrot.lane.b32.xlu1 %v5101_v56, %s6961_s5 }
 0x960   : > { %v1767_v1 = vpop.xlane.xlu1 %1766 }
 0x962   : > { %v1770_v57 = vpop.xlane.xlu2 %1769 }
 0x963   : > { %5290 = vrcp.f32 %v1770_v57 }
 0x969   : > { %v5291_v13 = vpop.eup %5290 }
 0x96a   : > { %v5108_v58 = vpop.permute.xlu2 %5107  ;;  %v1773_v59 = vpop.xlane.xlu0 %1772  ;;  %v1782_v62 = vmul.f32 %v5291_v13, %v5285_v45  ;;  %v2133_v45 = vld [vmem:[%s6862_s13 + $0x78] sm:$0xff] }
 0x96b   : > { %v5110_v60 = vunpack.i.h.bf16 %v5108_v58  ;;  %v5109_v61 = vunpack.i.l.bf16 %v5108_v58  ;;  %5292 = vrcp.f32 %v1773_v59  ;;  %v4874_v58 = vld [vmem:[%s6953_s29 + $0x38] sm:$0xff]  ;;  %v4873_v59 = vld [vmem:[%s6953_s29 + $0x30] sm:$0xff] }
 0x96c   : > { %5294 = vrcp.f32 %v1767_v1 }
 0x96d   : > { %1832 = vmatpush.msrb.mxu0 %v5109_v61  ;;  %1858 = vmatpush.msra.mxu1 %v5110_v60  ;;  %v4872_v60 = vld [vmem:[%s6953_s29 + $0x28] sm:$0xff]  ;;  %v4871_v61 = vld [vmem:[%s6953_s29 + $0x20] sm:$0xff] }
 0x96e   : > { %4864 = vmatmul.msk.f32.vlgmr.msrb.gmra.mxu0 %vm1021_vm1, %v1782_v62  ;;  %v2129_v62 = vld [vmem:[%s6862_s13 + $0x58] sm:$0xff] }
 0x96f   : > { %1930 = vmatpush.msra.mxu0 %v4847_v11  ;;  %1953 = vmatpush.msrb.mxu1 %v4848_v12  ;;  %v4884_v12 = vld [vmem:[%s6954_s1 + $0x78] sm:$0xff] }
 0x971   : > { %v5293_v63 = vpop.eup %5292  ;;  %2078 = vmatpush.msrb.mxu0 %v4884_v12 }
 0x972   : > { %v1783_v0 = vmul.f32 %v5293_v63, %v5287_v49  ;;  %v1776_v2 = vpop.xlane.xlu1 %1775  ;;  %v5295_v3 = vpop.eup %5294  ;;  %v2128_v63 = vld [vmem:[%s6862_s13 + $0x50] sm:$0xff] }
 0x973   : > { %5296 = vrcp.f32 %v1776_v2  ;;  %v1781_v9 = vmul.f32 %v5295_v3, %v5283_v42  ;;  %v2126_v3 = vld [vmem:[%s6862_s13 + $0x40] sm:$0xff] }
 0x974   : > { %4865 = vmatmul.msk.f32.vlgmr.msra.gmra.mxu1 %vm1021_vm1, %v1783_v0  ;;  %v2127_v0 = vld [vmem:[%s6862_s13 + $0x48] sm:$0xff] }
 0x975   : > { %2170 = vmatpush.msra.mxu1 %v2121_v22 }
 0x977   : > { %2171 = vmatpush.msra.mxu1 %v2120_v24 }
 0x979   : > { %v5297_v5 = vpop.eup %5296  ;;  %2172 = vmatpush.msra.mxu1 %v2119_v25 }
 0x97a   : > { %v1784_v10 = vmul.f32 %v5297_v5, %v5289_v52 }
 0x97b   : > { %2173 = vmatpush.msra.mxu1 %v2118_v28 }
 0x98a   : > { %v5103_v6 = vpop.permute.xlu1 %5102 }
 0x98b   : > { %v5105_v7 = vunpack.i.h.bf16 %v5103_v6  ;;  %v5104_v8 = vunpack.i.l.bf16 %v5103_v6  ;;  %v5235_v6 = vld [vmem:[%s6863_s14 + $0x3] ss:$0 sm:$0xff] }
 0x98d   : > { %1806 = vmatpush.msra.mxu3 %v5104_v8  ;;  %1884 = vmatpush.msrb.mxu2 %v5105_v7 }
 0x98e   : > { %4863 = vmatmul.msk.f32.vlgmr.msra.gmra.mxu3 %vm1021_vm1, %v1781_v9  ;;  %4866 = vmatmul.msk.f32.vlgmr.msrb.gmra.mxu2 %vm1021_vm1, %v1784_v10 }
 0x98f   : > { %1907 = vmatpush.msrb.mxu3 %v4846_v16  ;;  %1976 = vmatpush.msra.mxu2 %v4849_v17  ;;  %v4882_v16 = vld [vmem:[%s6954_s1 + $0x68] sm:$0xff] }
 0x991   : > { %2190 = vmatpush.msrb.mxu2 %v2125_v20  ;;  %2044 = vmatpush.msra.mxu3 %v4874_v58 }
 0x993   : > { %2191 = vmatpush.msrb.mxu2 %v2124_v21  ;;  %2045 = vmatpush.msra.mxu3 %v4873_v59  ;;  %v4880_v21 = vld [vmem:[%s6954_s1 + $0x58] sm:$0xff] }
 0x995   : > { %2192 = vmatpush.msrb.mxu2 %v2123_v23  ;;  %2046 = vmatpush.msra.mxu3 %v4872_v60 }
 0x997   : > { %2193 = vmatpush.msrb.mxu2 %v2122_v26  ;;  %2047 = vmatpush.msra.mxu3 %v4871_v61 }
 0x9eb   : > { %v1834_v14 = vpop.f32.mrf.mxu0 }
 0x9ec   : > { %4868 = vmatmul.msk.f32.vlgmr.msra.gmra.mxu0 %vm1021_vm1, %v1834_v14  ;;  %v4883_v14 = vld [vmem:[%s6954_s1 + $0x70] sm:$0xff] }
 0x9ed   : > { %2079 = vmatpush.msrb.mxu0 %v4883_v14 }
 0x9ef   : > { %2080 = vmatpush.msrb.mxu0 %v4882_v16 }
 0x9f1   : > { %v1860_v15 = vpop.f32.mrf.mxu1 }
 0x9f2   : > { %4869 = vmatmul.msk.f32.vlgmr.msrb.gmra.mxu1 %vm1021_vm1, %v1860_v15 }
 0x9f3   : > { %2230 = vmatpush.msrb.mxu1 %v2133_v45 }
 0x9f5   : > { %2231 = vmatpush.msrb.mxu1 %v2132_v46 }
 0x9f7   : > { %2232 = vmatpush.msrb.mxu1 %v2131_v33 }
 0x9fa   : > { %4887 = vmatmul.msk.f32.vlgmr.msra.gmra.mxu1 %vm934_vm0, %v6001_v27 }
 0xa11   : > { %v1808_v18 = vpop.f32.mrf.mxu3  ;;  %v1886_v19 = vpop.f32.mrf.mxu2 }
 0xa12   : > { %4867 = vmatmul.msk.f32.vlgmr.msrb.gmra.mxu3 %vm1021_vm1, %v1808_v18  ;;  %4870 = vmatmul.msk.f32.vlgmr.msra.gmra.mxu2 %vm1021_vm1, %v1886_v19  ;;  %v4881_v18 = vld [vmem:[%s6954_s1 + $0x60] sm:$0xff] }
 0xa13   : > { %2210 = vmatpush.msrb.mxu3 %v2129_v62  ;;  %v6099_v19 = vld [vmem:[%s6956_s27 + $0x4] sm:$0xf]  ;;  %2081 = vmatpush.msrb.mxu0 %v4881_v18 }
 0xa14   : > { %v2015_v23 = vperm.slane %v6099_v19, 0  ;;  %v2017_v26 = vperm.slane %v6099_v19, 1 }
 0xa15   : > { %2211 = vmatpush.msrb.mxu3 %v2128_v63  ;;  %2082 = vmatpush.msrb.mxu0 %v4880_v21 }
 0xa17   : > { %2212 = vmatpush.msrb.mxu3 %v2127_v0 }
 0xa19   : > { %2213 = vmatpush.msrb.mxu3 %v2126_v3 }
 0xa1a   : > { %4888 = vmatmul.msk.f32.vlgmr.msrb.gmra.mxu2 %vm934_vm0, %v6001_v27 }
 0xa69   : > { %v1932_v29 = vpop.f32.mrf.mxu0 }
 0xa6a   : > { %v1982_v32 = vsel %vm934_vm0, %v1932_v29, 0.0 }
 0xa6f   : > { %v1955_v30 = vpop.f32.mrf.mxu1 }
 0xa70   : > { %v1984_v37 = vsel %vm934_vm0, %v1955_v30, 0.0 }
 0xa77   : > { %v2175_v48 = vpop.f32.mrf.mxu1 }
 0xa78   : > { %v6036_v49 = vadd.f32 %v5234_v47, %v2175_v48 }
 0xa95   : > { %v1909_v31 = vpop.f32.mrf.mxu3  ;;  %v1978_v36 = vpop.f32.mrf.mxu2 }
 0xa96   : > { %v1981_v34 = vsel %vm934_vm0, %v1909_v31, 0.0  ;;  %v1986_v40 = vsel %vm934_vm0, %v1978_v36, 0.0  ;;  %v5236_v36 = vld [vmem:[%s6958_s24 + $0x1] ss:$0 sm:$0xff] }
 0xa97   : > { %v1983_v35 = vadd.f32 %v1982_v32, %v1981_v34  ;;  %v4879_v32 = vld [vmem:[%s6954_s1 + $0x50] sm:$0xff]  ;;  %v4878_v34 = vld [vmem:[%s6954_s1 + $0x48] sm:$0xff] }
 0xa98   : > { %2083 = vmatpush.msrb.mxu0 %v4879_v32 }
 0xa99   : > { %v1985_v38 = vadd.f32 %v1984_v37, %v1983_v35  ;;  %v4877_v35 = vld [vmem:[%s6954_s1 + $0x40] sm:$0xff]  ;;  %s6968_s1 = sld [smem:[#allocation30_spill]] }
 0xa9a   : > { %2084 = vmatpush.msrb.mxu0 %v4878_v34 }
 0xa9b   : > { %v1987_v41 = vadd.f32 %v1986_v40, %v1985_v38  ;;  %v5237_v40 = vld [vmem:[%s6863_s14 + $0x2] ss:$0 sm:$0xff] }
 0xa9c   : > { %2085 = vmatpush.msrb.mxu0 %v4877_v35 }
 0xa9d   : > { %v1991_v42 = vadd.f32 %v5232_v39, %v1987_v41  ;;  %v2195_v51 = vpop.f32.mrf.mxu2 }
 0xa9e   : > { %v6043_v52 = vadd.f32 %v5233_v50, %v2195_v51 }
 0xa9f   : > { %v1992_v43 = vadd.f32 %v1991_v42, %v5893_v4  ;;  %v2130_v4 = vld [vmem:[%s6862_s13 + $0x60] sm:$0xff] }
 0xaa0   : > { %2233 = vmatpush.msrb.mxu1 %v2130_v4  ;;  %2266 = vrot.lane.b32.xlu2 %v6043_v52, %s6960_s7  ;;  %v5111_v48 = vpack.i.bf16 %v6043_v52, %v6036_v49 }
 0xaa1   : > { %v1993_v44 = vsel %vm934_vm0, %v1992_v43, 0.0  ;;  %4890 = vmatmul.msk.f32.vlgmr.msrb.gmra.mxu1 %vm934_vm0, %v6001_v27 }
 0xaa2   : > { %1994 = vadd.xlane.f32.xlu0 %v1993_v44 }
 0xab6   : > { %2239 = vrot.lane.b32.xlu0 %v6036_v49, %s6960_s7 }
 0xafa   : > { %v2267_v30 = vpop.permute.xlu2 %2266 }
 0xb15   : > { %v1995_v54 = vpop.xlane.xlu0 %1994 }
 0xb16   : > { %v1996_v55 = vmul.f32 %v1995_v54, %v5783_v53 }
 0xb18   : > { %v1997_v56 = vsub.f32 %v1992_v43, %v1996_v55  ;;  %v895_v43 = vld [vmem:[%s6140_s22] sm:$0xff] }
 0xb1a   : > { %v1998_v57 = vmul.f32 %v1997_v56, %v1997_v56 }
 0xb1c   : > { %v1999_v13 = vsel %vm934_vm0, %v1998_v57, 0.0 }
 0xb1d   : > { %2000 = vadd.xlane.f32.xlu1 %v1999_v13 }
 0xb1e   : > { %v2235_v7 = vpop.f32.mrf.mxu1 }
 0xb1f   : > { %v6077_v8 = vadd.f32 %v5235_v6, %v2235_v7 }
 0xb21   : > { %2320 = vrot.lane.b32.xlu0 %v6077_v8, %s6960_s7 }
 0xb28   : > { %v2240_v11 = vpop.permute.xlu0 %2239 }
 0xb29   : > { %4891 = vmatpush.xpose.msk.msra.mxu2 %vm1021_vm1, %v2240_v11 }
 0xb2c   : > { %4892 = vmatmul.msk.f32.vlgmr.msra.gmra.mxu2 %vm1021_vm1, %v6036_v49 }
 0xb90   : > { %v2001_v1 = vpop.xlane.xlu1 %2000 }
 0xb91   : > { %v2002_v2 = vmul.f32 %v2001_v1, %v5783_v53 }
 0xb93   : > { %v2003_v5 = vadd.f32 1e-05, %v2002_v2  ;;  %v2321_v31 = vpop.permute.xlu0 %2320 }
 0xb94   : > { %4897 = vmatpush.xpose.msk.msra.mxu1 %vm1021_vm1, %v2321_v31 }
 0xb95   : > { %5298 = vrsqrt.f32 %v2003_v5  ;;  %vm2010_vm11 = vweird.f32 %v2003_v5 }
 0xb97   : > { %4898 = vmatmul.msk.f32.vlgmr.msra.gmra.mxu1 %vm1021_vm1, %v6077_v8 }
 0xb9b   : > { %v5299_v9 = vpop.eup %5298 }
 0xb9c   : > { %v2005_v10 = vmul.f32 %v5299_v9, %v2003_v5  ;;  %vm2011_vm10 = vweird.f32 %v5299_v9 }
 0xb9d   : > { %vm2012_vm12 = vmor %vm2010_vm11, %vm2011_vm10 }
 0xb9e   : > { %v2006_v15 = vmul.f32 %v5299_v9, %v2005_v10 }
 0xba0   : > { %v2007_v17 = vmul.f32 0.5, %v2006_v15 }
 0xba2   : > { %v2008_v20 = vsub.f32 1.5, %v2007_v17 }
 0xba4   : > { %v2009_v22 = vmul.f32 %v5299_v9, %v2008_v20 }
 0xba6   : > { %v2013_v24 = vsel %vm2012_vm12, %v5299_v9, %v2009_v22 }
 0xba7   : > { %v2014_v25 = vmul.f32 %v2013_v24, %v1997_v56 }
 0xba9   : > { %v2016_v28 = vmul.f32 %v2015_v23, %v2014_v25 }
 0xbab   : > { %v6106_v29 = vadd.f32 %v2017_v26, %v2016_v28  ;;  %v2138_v28 = vld [vmem:[%s6864_s15] sm:$0xff] }
 0xbad   : > { %4876 = vmatmul.msk.f32.vlgmr.msra.gmra.mxu3 %vm934_vm0, %v6106_v29 }
 0xbae   : > { %4893 = vmatpush.xpose.msk.msra.mxu3 %vm1021_vm1, %v2267_v30  ;;  %v2139_v30 = vld [vmem:[%s6864_s15 + $0x8] sm:$0xff] }
 0xbaf   : > { %v2262_v33 = vpop.f32.mrf.mxu2 }
 0xbb0   : > { %v2263_v4 = vadd.f32 %v2262_v33, %v895_v43 }
 0xbb2   : > { %v2346_v47 = vsel %vm1021_vm1, %v2263_v4, -inf }
 0xbb5   : > { %4889 = vmatmul.msk.f32.vlgmr.msrb.gmra.mxu3 %vm934_vm0, %v6001_v27 }
 0xbbd   : > { %4894 = vmatmul.msk.f32.vlgmr.msra.gmra.mxu3 %vm1021_vm1, %v6043_v52 }
 0xc14   : > { %v2343_v52 = vpop.f32.mrf.mxu1 }
 0xc15   : > { %v2344_v61 = vadd.f32 %v2343_v52, %v895_v43 }
 0xc17   : > { %v2355_v0 = vsel %vm1021_vm1, %v2344_v61, -inf }
 0xc30   : > { %v2049_v37 = vpop.f32.mrf.mxu3 }
 0xc31   : > { %v2050_v38 = vadd.f32 %v5236_v36, %v2049_v37 }
 0xc33   : > { %v2052_v39 = vmax.f32 %v2050_v38, 0.0 }
 0xc35   : > { %4886 = vmatmul.msk.f32.vlgmr.msrb.gmra.mxu0 %vm1456_vm6, %v2052_v39 }
 0xc38   : > { %v2215_v41 = vpop.f32.mrf.mxu3 }
 0xc39   : > { %v6134_v42 = vadd.f32 %v5237_v40, %v2215_v41 }
 0xc3b   : > { %2293 = vrot.lane.b32.xlu2 %v6134_v42, %s6960_s7  ;;  %v5116_v25 = vpack.i.bf16 %v6077_v8, %v6134_v42 }
 0xc40   : > { %v2289_v44 = vpop.f32.mrf.mxu3 }
 0xc41   : > { %v2290_v45 = vadd.f32 %v2289_v44, %v895_v43 }
 0xc43   : > { %v2349_v46 = vsel %vm1021_vm1, %v2290_v45, -inf }
 0xc44   : > { %2350 = vmax.xlane.f32.xlu0 %v2349_v46 }
 0xc64   : > { %2347 = vmax.xlane.f32.xlu2 %v2346_v47 }
 0xc7c   : > { %5112 = vrot.lane.b32.xlu2 %v5111_v48, %s6961_s5 }
 0xc95   : > { %v2294_v50 = vpop.permute.xlu2 %2293 }
 0xc96   : > { %4895 = vmatpush.xpose.msk.msra.mxu0 %vm1021_vm1, %v2294_v50 }
 0xc99   : > { %4896 = vmatmul.msk.f32.vlgmr.msra.gmra.mxu0 %vm1021_vm1, %v6134_v42  ;;  %v2140_v42 = vld [vmem:[%s6864_s15 + $0x10] sm:$0xff] }
 0xcb2   : > { %v6153_v57 = vpop.f32.mrf.mxu0 }
 0xcb7   : > { %v2351_v62 = vpop.xlane.xlu0 %2350 }
 0xcb8   : > { %v2359_v63 = vsub.f32 %v2290_v45, %v2351_v62 }
 0xcba   : > { %v2364_v1 = vmul.f32 1.442695, %v2359_v63 }
 0xcd7   : > { %v2348_v51 = vpop.xlane.xlu2 %2347 }
 0xcd8   : > { %v2358_v59 = vsub.f32 %v2263_v4, %v2348_v51 }
 0xcda   : > { %v2362_v60 = vmul.f32 1.442695, %v2358_v59  ;;  %v5238_v59 = vld [vmem:[%s6959_s28 + $0x1] ss:$0 sm:$0xff] }
 0xcdc   : > { %5300 = vpow2.f32 %v2362_v60  ;;  %v2088_v60 = vadd.f32 %v5238_v59, %v6153_v57  ;;  %v2625_v57 = vld [vmem:[%s6866_s17 + $0x8] sm:$0xff]  ;;  %v6288_v59 = vld [vmem:[%s6867_s18 + $0x1] ss:$0 sm:$0xff] }
 0xcdd   : > { %5302 = vpow2.f32 %v2364_v1  ;;  %v2631_v1 = vld [vmem:[%s6866_s17 + $0x38] sm:$0xff] }
 0xcde   : > { %v2090_v62 = vadd.f32 %v2088_v60, %v6106_v29  ;;  %v2630_v29 = vld [vmem:[%s6866_s17 + $0x30] sm:$0xff] }
 0xcdf   : > { %v5113_v54 = vpop.permute.xlu2 %5112 }
 0xce0   : > { %v5115_v55 = vunpack.i.h.bf16 %v5113_v54  ;;  %v5114_v56 = vunpack.i.l.bf16 %v5113_v54  ;;  %v2091_v63 = vsel %vm934_vm0, %v2090_v62, 0.0 }
 0xce2   : > { %2411 = vmatpush.msrb.mxu2 %v5114_v56  ;;  %2437 = vmatpush.msrb.mxu3 %v5115_v55  ;;  %v5301_v2 = vpop.eup %5300  ;;  %v5239_v56 = vld [vmem:[%s6865_s16] ss:$0 sm:$0xff] }
 0xce3   : > { %v2370_v3 = vsel %vm1021_vm1, %v5301_v2, 0.0  ;;  %v5303_v5 = vpop.eup %5302 }
 0xce4   : > { %v2373_v6 = vsel %vm1021_vm1, %v5303_v5, 0.0  ;;  %2512 = vmatpush.msra.mxu2 %v2138_v28  ;;  %2535 = vmatpush.msra.mxu3 %v2139_v30  ;;  %v2632_v28 = vld [vmem:[%s6866_s17 + $0x40] sm:$0xff]  ;;  %v2638_v30 = vld [vmem:[%s6866_s17 + $0x70] sm:$0xff] }
 0xd16   : > { %v2316_v13 = vpop.f32.mrf.mxu0 }
 0xd17   : > { %v2317_v58 = vadd.f32 %v2316_v13, %v895_v43  ;;  %v2141_v43 = vld [vmem:[%s6864_s15 + $0x18] sm:$0xff] }
 0xd19   : > { %v2352_v49 = vsel %vm1021_vm1, %v2317_v58, -inf }
 0xd1a   : > { %2353 = vmax.xlane.f32.xlu1 %v2352_v49 }
 0xd22   : > { %2356 = vmax.xlane.f32.xlu1 %v2355_v0  ;;  %v2627_v0 = vld [vmem:[%s6866_s17 + $0x18] sm:$0xff] }
 0xd2a   : > { %2371 = vadd.xlane.f32.xlu1 %v2370_v3  ;;  %v2629_v3 = vld [vmem:[%s6866_s17 + $0x28] sm:$0xff] }
 0xd32   : > { %2374 = vadd.xlane.f32.xlu1 %v2373_v6  ;;  %v5131_v6 = vpack.i.bf16 %v2629_v3, %v2625_v57 }
 0xd8d   : > { %v2354_v7 = vpop.xlane.xlu1 %2353 }
 0xd8e   : > { %v2360_v9 = vsub.f32 %v2317_v58, %v2354_v7  ;;  %v2628_v7 = vld [vmem:[%s6866_s17 + $0x20] sm:$0xff] }
 0xd90   : > { %v2366_v10 = vmul.f32 1.442695, %v2360_v9 }
 0xd92   : > { %5304 = vpow2.f32 %v2366_v10 }
 0xd95   : > { %v2357_v11 = vpop.xlane.xlu1 %2356 }
 0xd96   : > { %v2361_v12 = vsub.f32 %v2344_v61, %v2357_v11 }
 0xd98   : > { %v5305_v14 = vpop.eup %5304  ;;  %v2368_v15 = vmul.f32 1.442695, %v2361_v12 }
 0xd99   : > { %v2376_v16 = vsel %vm1021_vm1, %v5305_v14, 0.0 }
 0xd9a   : > { %5306 = vpow2.f32 %v2368_v15  ;;  %2377 = vadd.xlane.f32.xlu0 %v2376_v16 }
 0xd9d   : > { %v2372_v17 = vpop.xlane.xlu1 %2371 }
 0xd9e   : > { %5308 = vrcp.f32 %v2372_v17 }
 0xda0   : > { %v5307_v18 = vpop.eup %5306 }
 0xda1   : > { %v2379_v20 = vsel %vm1021_vm1, %v5307_v18, 0.0 }
 0xda2   : > { %2380 = vadd.xlane.f32.xlu1 %v2379_v20  ;;  %v2635_v20 = vld [vmem:[%s6866_s17 + $0x58] sm:$0xff] }
 0xda4   : > { %v5309_v21 = vpop.eup %5308 }
 0xda5   : > { %v2386_v22 = vmul.f32 %v5309_v21, %v5301_v2  ;;  %v2375_v23 = vpop.xlane.xlu1 %2374  ;;  %v5121_v2 = vpack.i.bf16 %v2631_v1, %v2627_v0 }
 0xda6   : > { %5310 = vrcp.f32 %v2375_v23 }
 0xda7   : > { %4899 = vmatmul.msk.f32.vlgmr.msrb.gmra.mxu2 %vm1021_vm1, %v2386_v22  ;;  %v2639_v22 = vld [vmem:[%s6866_s17 + $0x78] sm:$0xff] }
 0xda8   : > { %2676 = vmatpush.msrb.mxu2 %v2627_v0 }
 0xdac   : > { %v5311_v24 = vpop.eup %5310 }
 0xdad   : > { %v2387_v26 = vmul.f32 %v5311_v24, %v5303_v5  ;;  %v2624_v5 = vld [vmem:[%s6866_s17] sm:$0xff] }
 0xdae   : > { %5117 = vrot.lane.b32.xlu0 %v5116_v25, %s6961_s5  ;;  %v5136_v9 = vpack.i.bf16 %v2628_v7, %v2624_v5  ;;  %v2633_v25 = vld [vmem:[%s6866_s17 + $0x48] sm:$0xff] }
 0xdaf   : > { %4900 = vmatmul.msk.f32.vlgmr.msrb.gmra.mxu3 %vm1021_vm1, %v2387_v26 }
 0xdb0   : > { %2696 = vmatpush.msrb.mxu3 %v2631_v1 }
 0xdb2   : > { %2697 = vmatpush.msrb.mxu3 %v2630_v29 }
 0xdb4   : > { %2698 = vmatpush.msrb.mxu3 %v2629_v3 }
 0xdb6   : > { %5122 = vrot.lane.b32.xlu0 %v5121_v2, %s6960_s7  ;;  %2699 = vmatpush.msrb.mxu3 %v2628_v7  ;;  %v2113_v7 = vperm.slane %v6099_v19, 2 }
 0xdbe   : > { %5132 = vrot.lane.b32.xlu0 %v5131_v6, %s6960_s7 }
 0xdc6   : > { %5137 = vrot.lane.b32.xlu0 %v5136_v9, %s6960_s7 }
 0xe0d   : > { %v2378_v31 = vpop.xlane.xlu0 %2377 }
 0xe0e   : > { %5312 = vrcp.f32 %v2378_v31  ;;  %v5151_v31 = vpack.i.bf16 %v2632_v28, %v2638_v30 }
 0xe14   : > { %v5313_v8 = vpop.eup %5312 }
 0xe15   : > { %v2381_v32 = vpop.xlane.xlu1 %2380  ;;  %v2388_v38 = vmul.f32 %v5313_v8, %v5305_v14  ;;  %v2636_v8 = vld [vmem:[%s6866_s17 + $0x60] sm:$0xff] }
 0xe16   : > { %5314 = vrcp.f32 %v2381_v32  ;;  %v2637_v32 = vld [vmem:[%s6866_s17 + $0x68] sm:$0xff] }
 0xe1c   : > { %v5315_v34 = vpop.eup %5314 }
 0xe1d   : > { %v2389_v39 = vmul.f32 %v5315_v34, %v5307_v18  ;;  %v2634_v18 = vld [vmem:[%s6866_s17 + $0x50] sm:$0xff]  ;;  %v5156_v34 = vpack.i.bf16 %v2636_v8, %v2637_v32 }
 0xe1e   : > { %v5141_v21 = vpack.i.bf16 %v2634_v18, %v2635_v20 }
 0xe20   : > { %v5118_v35 = vpop.permute.xlu0 %5117  ;;  %5142 = vrot.lane.b32.xlu0 %v5141_v21, %s6960_s7 }
 0xe21   : > { %v5120_v36 = vunpack.i.h.bf16 %v5118_v35  ;;  %v5119_v37 = vunpack.i.l.bf16 %v5118_v35 }
 0xe23   : > { %2463 = vmatpush.msrb.mxu0 %v5119_v37  ;;  %2489 = vmatpush.msrb.mxu1 %v5120_v36  ;;  %v5146_v36 = vpack.i.bf16 %v2633_v25, %v2639_v22 }
 0xe24   : > { %4901 = vmatmul.msk.f32.vlgmr.msrb.gmra.mxu0 %vm1021_vm1, %v2388_v38  ;;  %4902 = vmatmul.msk.f32.vlgmr.msrb.gmra.mxu1 %vm1021_vm1, %v2389_v39 }
 0xe25   : > { %2558 = vmatpush.msra.mxu0 %v2140_v42  ;;  %2581 = vmatpush.msra.mxu1 %v2141_v43 }
 0xe27   : > { %2716 = vmatpush.msrb.mxu0 %v2635_v20  ;;  %2736 = vmatpush.msrb.mxu1 %v2639_v22 }
 0xe28   : > { %5152 = vrot.lane.b32.xlu0 %v5151_v31, %s6960_s7  ;;  %v5123_v37 = vpop.permute.xlu0 %5122 }
 0xe29   : > { %2717 = vmatpush.msrb.mxu0 %v2634_v18  ;;  %2737 = vmatpush.msrb.mxu1 %v2638_v30  ;;  %v5125_v39 = vunpack.i.h.bf16 %v5123_v37 }
 0xe2a   : > { %v2413_v40 = vpop.f32.mrf.mxu2 }
 0xe2b   : > { %4903 = vmatmul.msk.f32.vlgmr.msra.gmra.mxu2 %vm1021_vm1, %v2413_v40  ;;  %2718 = vmatpush.msrb.mxu0 %v2633_v25  ;;  %v5124_v40 = vunpack.i.l.bf16 %v5123_v37 }
 0xe2c   : > { %2738 = vmatpush.msrb.mxu1 %v2637_v32 }
 0xe2d   : > { %2719 = vmatpush.msrb.mxu0 %v2632_v28 }
 0xe2e   : > { %2739 = vmatpush.msrb.mxu1 %v2636_v8 }
 0xe30   : > { %v6267_v38 = vpop.permute.xlu0 %5132  ;;  %2802 = vrot.lane.b32.xlu0 %v6288_v59, %s6960_s7 }
 0xe31   : > { %v5134_v18 = vunpack.i.l.bf16 %v6267_v38 }
 0xe32   : > { %v2439_v41 = vpop.f32.mrf.mxu3 }
 0xe33   : > { %4904 = vmatmul.msk.f32.vlgmr.msra.gmra.mxu3 %vm1021_vm1, %v2439_v41 }
 0xe34   : > { %2817 = vmatpush.msra.mxu3 %v5125_v39 }
 0xe38   : > { %v6269_v41 = vpop.permute.xlu0 %5137 }
 0xe39   : > { %v5140_v20 = vunpack.i.h.bf16 %v6269_v41  ;;  %v5139_v21 = vunpack.i.l.bf16 %v6269_v41 }
 0xea1   : > { %v2465_v44 = vpop.f32.mrf.mxu0  ;;  %v2491_v45 = vpop.f32.mrf.mxu1 }
 0xea2   : > { %4905 = vmatmul.msk.f32.vlgmr.msra.gmra.mxu0 %vm1021_vm1, %v2465_v44  ;;  %4906 = vmatmul.msk.f32.vlgmr.msra.gmra.mxu1 %vm1021_vm1, %v2491_v45  ;;  %v5143_v45 = vpop.permute.xlu0 %5142 }
 0xeae   : > { %v2514_v33 = vpop.f32.mrf.mxu2 }
 0xeaf   : > { %v2586_v47 = vsel %vm934_vm0, %v2514_v33, 0.0  ;;  %v5144_v33 = vunpack.i.l.bf16 %v5143_v45 }
 0xeb1   : > { %2856 = vmatpush.msra.mxu0 %v5144_v33 }
 0xeb6   : > { %v2537_v46 = vpop.f32.mrf.mxu3 }
 0xeb7   : > { %v2587_v4 = vsel %vm934_vm0, %v2537_v46, 0.0  ;;  %v5145_v46 = vunpack.i.h.bf16 %v5143_v45 }
 0xeb8   : > { %v2588_v48 = vadd.f32 %v2587_v4, %v2586_v47 }
 0xeb9   : > { %2857 = vmatpush.msra.mxu0 %v5145_v46 }
 0xf1f   : > { %v2560_v50 = vpop.f32.mrf.mxu0  ;;  %v2583_v51 = vpop.f32.mrf.mxu1 }
 0xf20   : > { %v2589_v54 = vsel %vm934_vm0, %v2560_v50, 0.0  ;;  %v2591_v13 = vsel %vm934_vm0, %v2583_v51, 0.0 }
 0xf21   : > { %v2590_v55 = vadd.f32 %v2589_v54, %v2588_v48 }
 0xf23   : > { %v2592_v58 = vadd.f32 %v2591_v13, %v2590_v55  ;;  %v6276_v55 = vld [vmem:[%s6867_s18] ss:$0 sm:$0xff] }
 0xf24   : > { %v6283_v13 = vld [vmem:[%s6874_s25] sm:$0x3f] }
 0xf25   : > { %v2596_v49 = vadd.f32 %v5239_v56, %v2592_v58  ;;  %v2622_v2 = vperm.slane %v6283_v13, 1 }
 0xf27   : > { %v2597_v52 = vadd.f32 %v2596_v49, %v6001_v27  ;;  %v2626_v27 = vld [vmem:[%s6866_s17 + $0x10] sm:$0xff] }
 0xf28   : > { %2677 = vmatpush.msrb.mxu2 %v2626_v27  ;;  %v5126_v35 = vpack.i.bf16 %v2630_v29, %v2626_v27  ;;  %v6303_v29 = vld [vmem:[%s6867_s18 + $0x3] ss:$0 sm:$0xff] }
 0xf29   : > { %v2598_v61 = vsel %vm934_vm0, %v2597_v52, 0.0  ;;  %2880 = vrot.lane.b32.xlu0 %v6303_v29, %s6960_s7 }
 0xf2a   : > { %2599 = vadd.xlane.f32.xlu1 %v2598_v61  ;;  %2678 = vmatpush.msrb.mxu2 %v2625_v57  ;;  %v2620_v61 = vperm.slane %v6283_v13, 0 }
 0xf2c   : > { %2679 = vmatpush.msrb.mxu2 %v2624_v5 }
 0xf2e   : > { %2778 = vmatpush.msra.mxu2 %v5124_v40 }
 0xf32   : > { %2092 = vadd.xlane.f32.xlu1 %v2091_v63 }
 0xf9d   : > { %v2600_v10 = vpop.xlane.xlu1 %2599 }
 0xf9e   : > { %v2601_v11 = vmul.f32 %v2600_v10, %v5783_v53 }
 0xfa0   : > { %v6226_v12 = vsub.f32 %v2597_v52, %v2601_v11 }
 0xfa2   : > { %v2603_v14 = vmul.f32 %v6226_v12, %v6226_v12 }
 0xfa4   : > { %v2604_v15 = vsel %vm934_vm0, %v2603_v14, 0.0 }
 0xfa5   : > { %2605 = vadd.xlane.f32.xlu2 %v2604_v15  ;;  %v2093_v16 = vpop.xlane.xlu1 %2092  ;;  %v2115_v15 = vperm.slane %v6099_v19, 3 }
 0xfa6   : > { %v2094_v17 = vmul.f32 %v2093_v16, %v5783_v53 }
 0xfa8   : > { %v6242_v23 = vsub.f32 %v2090_v62, %v2094_v17  ;;  %v6296_v62 = vld [vmem:[%s6867_s18 + $0x2] ss:$0 sm:$0xff]  ;;  %v5135_v17 = vunpack.i.h.bf16 %v6267_v38 }
 0xfaa   : > { %v2096_v24 = vmul.f32 %v6242_v23, %v6242_v23 }
 0xfac   : > { %v2097_v26 = vsel %vm934_vm0, %v2096_v24, 0.0 }
 0xfad   : > { %2098 = vadd.xlane.f32.xlu1 %v2097_v26 }
 0xfbd   : > { %5157 = vrot.lane.b32.xlu2 %v5156_v34, %s6960_s7 }
 0xfc6   : > { %5127 = vrot.lane.b32.xlu1 %v5126_v35, %s6960_s7 }
 0xfce   : > { %5147 = vrot.lane.b32.xlu1 %v5146_v36, %s6960_s7 }
 0xfd6   : > { %2760 = vrot.lane.b32.xlu1 %v6276_v55, %s6960_s7 }
 0xfde   : > { %2841 = vrot.lane.b32.xlu1 %v6296_v62, %s6960_s7 }
0x1018   : > { %v2606_v42 = vpop.xlane.xlu2 %2605 }
0x1019   : > { %v2607_v43 = vmul.f32 %v2606_v42, %v5783_v53 }
0x101b   : > { %v2608_v44 = vadd.f32 1e-05, %v2607_v43 }
0x101d   : > { %5316 = vrsqrt.f32 %v2608_v44  ;;  %vm2615_vm14 = vweird.f32 %v2608_v44 }
0x1020   : > { %v2099_v4 = vpop.xlane.xlu1 %2098  ;;  %v5158_v19 = vpop.permute.xlu2 %5157 }
0x1021   : > { %v2100_v47 = vmul.f32 %v2099_v4, %v5783_v53  ;;  %v5159_v31 = vunpack.i.l.bf16 %v5158_v19  ;;  %v5160_v32 = vunpack.i.h.bf16 %v5158_v19 }
0x1023   : > { %v5317_v48 = vpop.eup %5316  ;;  %v2101_v50 = vadd.f32 1e-05, %v2100_v47 }
0x1024   : > { %v2610_v51 = vmul.f32 %v5317_v48, %v2608_v44  ;;  %vm2616_vm13 = vweird.f32 %v5317_v48 }
0x1025   : > { %5318 = vrsqrt.f32 %v2101_v50  ;;  %vm2617_vm15 = vmor %vm2615_vm14, %vm2616_vm13  ;;  %vm2108_vm3 = vweird.f32 %v2101_v50 }
0x1026   : > { %v2611_v54 = vmul.f32 %v5317_v48, %v2610_v51 }
0x1028   : > { %v2612_v56 = vmul.f32 0.5, %v2611_v54 }
0x102a   : > { %v2613_v58 = vsub.f32 1.5, %v2612_v56 }
0x102b   : > { %v5319_v49 = vpop.eup %5318 }
0x102c   : > { %v2614_v52 = vmul.f32 %v5317_v48, %v2613_v58  ;;  %v2103_v60 = vmul.f32 %v5319_v49, %v2101_v50  ;;  %vm2109_vm2 = vweird.f32 %v5319_v49  ;;  %v5378_v58 = vld [vmem:[%s5735_s8] sm:$0xff] }
0x102d   : > { %vm2110_vm4 = vmor %vm2108_vm3, %vm2109_vm2 }
0x102e   : > { %v2618_v63 = vsel %vm2617_vm15, %v5317_v48, %v2614_v52  ;;  %v2104_v0 = vmul.f32 %v5319_v49, %v2103_v60 }
0x102f   : > { %v2619_v1 = vmul.f32 %v2618_v63, %v6226_v12 }
0x1030   : > { %v2105_v27 = vmul.f32 0.5, %v2104_v0 }
0x1031   : > { %v2621_v57 = vmul.f32 %v2620_v61, %v2619_v1 }
0x1032   : > { %v2106_v3 = vsub.f32 1.5, %v2105_v27 }
0x1033   : > { %v6307_v5 = vadd.f32 %v2622_v2, %v2621_v57 }
0x1034   : > { %v2107_v6 = vmul.f32 %v5319_v49, %v2106_v3 }
0x1035   : > { %4907 = vmatmul.msk.f32.vlgmr.msrb.gmra.mxu2 %vm934_vm0, %v6307_v5  ;;  %4908 = vmatmul.msk.f32.vlgmr.msrb.gmra.mxu3 %vm934_vm0, %v6307_v5 }
0x1036   : > { %v2111_v9 = vsel %vm2110_vm4, %v5319_v49, %v2107_v6  ;;  %4909 = vmatmul.msk.f32.vlgmr.msrb.gmra.mxu0 %vm934_vm0, %v6307_v5  ;;  %4910 = vmatmul.msk.f32.vlgmr.msrb.gmra.mxu1 %vm934_vm0, %v6307_v5 }
0x1037   : > { %v2112_v10 = vmul.f32 %v2111_v9, %v6242_v23  ;;  %v5153_v23 = vpop.permute.xlu0 %5152 }
0x1038   : > { %v5128_v11 = vpop.permute.xlu1 %5127  ;;  %v5155_v28 = vunpack.i.h.bf16 %v5153_v23  ;;  %v5154_v30 = vunpack.i.l.bf16 %v5153_v23 }
0x1039   : > { %v5130_v12 = vunpack.i.h.bf16 %v5128_v11  ;;  %v5129_v14 = vunpack.i.l.bf16 %v5128_v11  ;;  %v2114_v16 = vmul.f32 %v2113_v7, %v2112_v10 }
0x103b   : > { %2779 = vmatpush.msra.mxu2 %v5129_v14  ;;  %2818 = vmatpush.msra.mxu3 %v5130_v12  ;;  %v6326_v22 = vadd.f32 %v2115_v15, %v2114_v16 }
0x103d   : > { %2780 = vmatpush.msra.mxu2 %v5134_v18  ;;  %2819 = vmatpush.msra.mxu3 %v5135_v17 }
0x103f   : > { %2781 = vmatpush.msra.mxu2 %v5139_v21  ;;  %2820 = vmatpush.msra.mxu3 %v5140_v20  ;;  %v2803_v34 = vpop.permute.xlu0 %2802 }
0x1040   : > { %v5148_v24 = vpop.permute.xlu1 %5147  ;;  %4911 = vmatmul.msk.f32.vlgmr.msra.gmra.mxu2 %vm934_vm0, %v6326_v22  ;;  %4912 = vmatmul.msk.f32.vlgmr.msra.gmra.mxu3 %vm934_vm0, %v6326_v22 }
0x1041   : > { %v5150_v25 = vunpack.i.h.bf16 %v5148_v24  ;;  %v5149_v26 = vunpack.i.l.bf16 %v5148_v24 }
0x1043   : > { %2858 = vmatpush.msra.mxu0 %v5150_v25  ;;  %2895 = vmatpush.msra.mxu1 %v5149_v26 }
0x1045   : > { %2859 = vmatpush.msra.mxu0 %v5155_v28  ;;  %2896 = vmatpush.msra.mxu1 %v5154_v30 }
0x1046   : > { %4913 = vmatmul.msk.f32.vlgmr.msra.gmra.mxu0 %vm934_vm0, %v6326_v22 }
0x1047   : > { %2897 = vmatpush.msra.mxu1 %v5159_v31  ;;  %v2881_v46 = vpop.permute.xlu0 %2880 }
0x1048   : > { %v2761_v8 = vpop.permute.xlu1 %2760 }
0x1049   : > { %2898 = vmatpush.msra.mxu1 %v5160_v32 }
0x104a   : > { %4914 = vmatmul.msk.f32.vlgmr.msra.gmra.mxu1 %vm934_vm0, %v6326_v22 }
0x1050   : > { %v2842_v39 = vpop.permute.xlu1 %2841 }
0x10b3   : > { %v2721_v37 = vpop.f32.mrf.mxu0  ;;  %v2741_v38 = vpop.f32.mrf.mxu1 }
0x10b4   : > { %v2722_v50 = vadd.f32 %v6296_v62, %v2721_v37 }
0x10b8   : > { %v2681_v35 = vpop.f32.mrf.mxu2  ;;  %v2701_v36 = vpop.f32.mrf.mxu3 }
0x10b9   : > { %v2682_v4 = vadd.f32 %v6276_v55, %v2681_v35  ;;  %v2702_v47 = vadd.f32 %v6288_v59, %v2701_v36  ;;  %v2742_v55 = vadd.f32 %v6303_v29, %v2741_v38 }
0x10c3   : > { %v2783_v40 = vpop.f32.mrf.mxu2  ;;  %v2822_v41 = vpop.f32.mrf.mxu3 }
0x10c4   : > { %v2784_v42 = vadd.f32 %v2783_v40, %v2761_v8  ;;  %v2823_v43 = vadd.f32 %v2822_v41, %v2803_v34  ;;  %v2861_v44 = vpop.f32.mrf.mxu0 }
0x10c5   : > { %v6336_v45 = vadd.f32 %v2861_v44, %v2842_v39 }
0x10c6   : > { %v5161_v33 = vpack.i.bf16 %v2823_v43, %v2784_v42  ;;  %4915 = vmatpush.xpose.msk.msrb.mxu2 %vm1021_vm1, %v2784_v42  ;;  %4917 = vmatpush.xpose.msk.msrb.mxu3 %vm1021_vm1, %v2823_v43 }
0x10c7   : > { %4919 = vmatpush.xpose.msk.msrb.mxu0 %vm1021_vm1, %v6336_v45  ;;  %v2900_v48 = vpop.f32.mrf.mxu1 }
0x10c8   : > { %v2901_v51 = vadd.f32 %v2900_v48, %v2881_v46  ;;  %v2644_v46 = vld [vmem:[%s6868_s19] sm:$0xff] }
0x10c9   : > { %4916 = vmatmul.msk.f32.vlgmr.msrb.gmra.mxu2 %vm1021_vm1, %v2682_v4  ;;  %4918 = vmatmul.msk.f32.vlgmr.msrb.gmra.mxu3 %vm1021_vm1, %v2702_v47  ;;  %v2646_v4 = vld [vmem:[%s6868_s19 + $0x10] sm:$0xff]  ;;  %v2647_v47 = vld [vmem:[%s6868_s19 + $0x18] sm:$0xff] }
0x10ca   : > { %v5166_v54 = vpack.i.bf16 %v2901_v51, %v6336_v45  ;;  %4920 = vmatmul.msk.f32.vlgmr.msrb.gmra.mxu0 %vm1021_vm1, %v2722_v50  ;;  %4921 = vmatpush.xpose.msk.msrb.mxu1 %vm1021_vm1, %v2901_v51 }
0x10cd   : > { %4922 = vmatmul.msk.f32.vlgmr.msrb.gmra.mxu1 %vm1021_vm1, %v2742_v55 }
0x1147   : > { %v2978_v56 = vpop.f32.mrf.mxu0 }
0x1148   : > { %v2979_v59 = vadd.f32 %v5378_v58, %v2978_v56 }
0x114a   : > { %v3013_v49 = vsel %vm1021_vm1, %v2979_v59, -inf  ;;  %v3004_v1 = vpop.f32.mrf.mxu1 }
0x114b   : > { %3014 = vmax.xlane.f32.xlu2 %v3013_v49  ;;  %v3005_v2 = vadd.f32 %v5378_v58, %v3004_v1 }
0x114c   : > { %v2926_v52 = vpop.f32.mrf.mxu2  ;;  %v2952_v60 = vpop.f32.mrf.mxu3 }
0x114d   : > { %v2927_v61 = vadd.f32 %v5378_v58, %v2926_v52  ;;  %v2953_v62 = vadd.f32 %v5378_v58, %v2952_v60  ;;  %v3016_v27 = vsel %vm1021_vm1, %v3005_v2, -inf }
0x114f   : > { %v3010_v63 = vsel %vm1021_vm1, %v2953_v62, -inf  ;;  %v3007_v0 = vsel %vm1021_vm1, %v2927_v61, -inf }
0x1150   : > { %3011 = vmax.xlane.f32.xlu0 %v3010_v63  ;;  %3008 = vmax.xlane.f32.xlu1 %v3007_v0  ;;  %v5244_v63 = vld [vmem:[%s6869_s20] ss:$0 sm:$0xff] }
0x1158   : > { %3017 = vmax.xlane.f32.xlu1 %v3016_v27 }
0x1171   : > { %5162 = vrot.lane.b32.xlu1 %v5161_v33, %s6960_s7  ;;  %v2645_v33 = vld [vmem:[%s6868_s19 + $0x8] sm:$0xff] }
0x11be   : > { %v3015_v3 = vpop.xlane.xlu2 %3014 }
0x11bf   : > { %v3021_v11 = vsub.f32 %v2979_v59, %v3015_v3 }
0x11c1   : > { %v3027_v12 = vmul.f32 1.442695, %v3021_v11  ;;  %v3286_v11 = vld [vmem:[%s6964_s2 + $0x8] sm:$0xff] }
0x11c3   : > { %v3012_v29 = vpop.xlane.xlu0 %3011  ;;  %v3009_v57 = vpop.xlane.xlu1 %3008 }
0x11c4   : > { %v3020_v6 = vsub.f32 %v2953_v62, %v3012_v29  ;;  %v3019_v7 = vsub.f32 %v2927_v61, %v3009_v57 }
0x11c6   : > { %v3025_v9 = vmul.f32 1.442695, %v3020_v6  ;;  %v3023_v10 = vmul.f32 1.442695, %v3019_v7 }
0x11c8   : > { %5320 = vpow2.f32 %v3025_v9 }
0x11c9   : > { %5322 = vpow2.f32 %v3023_v10  ;;  %v3288_v10 = vld [vmem:[%s6964_s2 + $0x18] sm:$0xff] }
0x11ca   : > { %5324 = vpow2.f32 %v3027_v12  ;;  %v3285_v12 = vld [vmem:[%s6964_s2] sm:$0xff] }
0x11cb   : > { %v3018_v14 = vpop.xlane.xlu1 %3017 }
0x11cc   : > { %v3022_v15 = vsub.f32 %v3005_v2, %v3018_v14  ;;  %v3324_v14 = vld [vmem:[%s6965_s21 + $0x38] sm:$0xff] }
0x11ce   : > { %v5321_v16 = vpop.eup %5320  ;;  %v3029_v17 = vmul.f32 1.442695, %v3022_v15  ;;  %v3323_v15 = vld [vmem:[%s6965_s21 + $0x30] sm:$0xff] }
0x11cf   : > { %v5323_v18 = vpop.eup %5322  ;;  %v3034_v20 = vsel %vm1021_vm1, %v5321_v16, 0.0 }
0x11d0   : > { %5326 = vpow2.f32 %v3029_v17  ;;  %3035 = vadd.xlane.f32.xlu2 %v3034_v20  ;;  %v3031_v21 = vsel %vm1021_vm1, %v5323_v18, 0.0  ;;  %v5325_v23 = vpop.eup %5324  ;;  %v3321_v20 = vld [vmem:[%s6965_s21 + $0x20] sm:$0xff] }
0x11d1   : > { %3032 = vadd.xlane.f32.xlu0 %v3031_v21  ;;  %v3037_v25 = vsel %vm1021_vm1, %v5325_v23, 0.0 }
0x11d6   : > { %v5327_v24 = vpop.eup %5326 }
0x11d7   : > { %v3040_v19 = vsel %vm1021_vm1, %v5327_v24, 0.0 }
0x11d8   : > { %3041 = vadd.xlane.f32.xlu2 %v3040_v19 }
0x11d9   : > { %3038 = vadd.xlane.f32.xlu0 %v3037_v25 }
0x11e3   : > { %v5163_v26 = vpop.permute.xlu1 %5162 }
0x11e4   : > { %v5165_v28 = vunpack.i.h.bf16 %v5163_v26  ;;  %v5164_v30 = vunpack.i.l.bf16 %v5163_v26 }
0x11e6   : > { %3072 = vmatpush.msra.mxu2 %v5164_v30  ;;  %3098 = vmatpush.msra.mxu3 %v5165_v28 }
0x11e8   : > { %3173 = vmatpush.msrb.mxu2 %v2644_v46  ;;  %3196 = vmatpush.msrb.mxu3 %v2645_v33 }
0x11ed   : > { %5167 = vrot.lane.b32.xlu0 %v5166_v54, %s6960_s7 }
0x1243   : > { %v3036_v31 = vpop.xlane.xlu2 %3035 }
0x1244   : > { %5328 = vrcp.f32 %v3036_v31  ;;  %v3033_v32 = vpop.xlane.xlu0 %3032  ;;  %v3281_v31 = vperm.slane %v6283_v13, 2 }
0x1245   : > { %5330 = vrcp.f32 %v3033_v32 }
0x124a   : > { %v5329_v8 = vpop.eup %5328 }
0x124b   : > { %v5331_v34 = vpop.eup %5330  ;;  %v3048_v35 = vmul.f32 %v5329_v8, %v5321_v16  ;;  %v3042_v37 = vpop.xlane.xlu2 %3041  ;;  %v3322_v16 = vld [vmem:[%s6965_s21 + $0x28] sm:$0xff] }
0x124c   : > { %v3047_v36 = vmul.f32 %v5331_v34, %v5323_v18  ;;  %v3039_v38 = vpop.xlane.xlu0 %3038  ;;  %5332 = vrcp.f32 %v3042_v37  ;;  %v3283_v34 = vperm.slane %v6283_v13, 3  ;;  %v3319_v37 = vld [vmem:[%s6965_s21 + $0x10] sm:$0xff] }
0x124d   : > { %4924 = vmatmul.msk.f32.vlgmr.msra.gmra.mxu3 %vm1021_vm1, %v3048_v35  ;;  %5334 = vrcp.f32 %v3039_v38  ;;  %v3318_v38 = vld [vmem:[%s6965_s21 + $0x8] sm:$0xff] }
0x124e   : > { %4923 = vmatmul.msk.f32.vlgmr.msra.gmra.mxu2 %vm1021_vm1, %v3047_v36  ;;  %3340 = vmatpush.msra.mxu3 %v3324_v14 }
0x124f   : > { %3308 = vmatpush.msra.mxu2 %v3288_v10 }
0x1250   : > { %3341 = vmatpush.msra.mxu3 %v3323_v15  ;;  %v3375_v15 = vperm.slane %v6283_v13, 4 }
0x1252   : > { %v5333_v39 = vpop.eup %5332  ;;  %3342 = vmatpush.msra.mxu3 %v3322_v16 }
0x1253   : > { %v5335_v40 = vpop.eup %5334  ;;  %v3050_v45 = vmul.f32 %v5333_v39, %v5327_v24  ;;  %v3317_v39 = vld [vmem:[%s6965_s21] sm:$0xff] }
0x1254   : > { %v3049_v44 = vmul.f32 %v5335_v40, %v5325_v23  ;;  %v3320_v23 = vld [vmem:[%s6965_s21 + $0x18] sm:$0xff]  ;;  %3343 = vmatpush.msra.mxu3 %v3321_v20  ;;  %v5245_v40 = vld [vmem:[%s6966_s9] ss:$0 sm:$0xff]  ;;  %s6971_s9 = sld [smem:[#allocation9_spill]] }
0x1256   : > { %3344 = vmatpush.msra.mxu3 %v3320_v23  ;;  %v5248_v23 = vld [vmem:[%s6863_s14 + $0x5] ss:$0 sm:$0xff] }
0x1258   : > { %3345 = vmatpush.msra.mxu3 %v3319_v37 }
0x125a   : > { %3346 = vmatpush.msra.mxu3 %v3318_v38  ;;  %s5046_s10 = sshll.u32 %s6971_s9, 3 }
0x125c   : > { %3347 = vmatpush.msra.mxu3 %v3317_v39 }
0x125f   : > { %v5168_v41 = vpop.permute.xlu0 %5167 }
0x1260   : > { %v5170_v42 = vunpack.i.h.bf16 %v5168_v41  ;;  %v5169_v43 = vunpack.i.l.bf16 %v5168_v41 }
0x1262   : > { %3124 = vmatpush.msra.mxu0 %v5169_v43  ;;  %3150 = vmatpush.msra.mxu1 %v5170_v42 }
0x1263   : > { %4925 = vmatmul.msk.f32.vlgmr.msra.gmra.mxu0 %vm1021_vm1, %v3049_v44  ;;  %4926 = vmatmul.msk.f32.vlgmr.msra.gmra.mxu1 %vm1021_vm1, %v3050_v45  ;;  %v5246_v44 = vld [vmem:[%s6968_s1] ss:$0 sm:$0xff] }
0x1264   : > { %3219 = vmatpush.msrb.mxu0 %v2646_v4  ;;  %3242 = vmatpush.msrb.mxu1 %v2647_v47 }
0x12d0   : > { %v3100_v48 = vpop.f32.mrf.mxu3 }
0x12d1   : > { %v3074_v50 = vpop.f32.mrf.mxu2  ;;  %4928 = vmatmul.msk.f32.vlgmr.msrb.gmra.mxu3 %vm1021_vm1, %v3100_v48 }
0x12d2   : > { %4927 = vmatmul.msk.f32.vlgmr.msrb.gmra.mxu2 %vm1021_vm1, %v3074_v50 }
0x12e0   : > { %v3126_v51 = vpop.f32.mrf.mxu0  ;;  %v3152_v54 = vpop.f32.mrf.mxu1 }
0x12e1   : > { %4929 = vmatmul.msk.f32.vlgmr.msrb.gmra.mxu0 %vm1021_vm1, %v3126_v51  ;;  %4930 = vmatmul.msk.f32.vlgmr.msrb.gmra.mxu1 %vm1021_vm1, %v3152_v54 }
0x1354   : > { %v3198_v56 = vpop.f32.mrf.mxu3 }
0x1355   : > { %v3175_v55 = vpop.f32.mrf.mxu2  ;;  %v3248_v59 = vsel %vm934_vm0, %v3198_v56, 0.0  ;;  %v4941_v56 = vld [vmem:[%s6862_s13 + $0xb8] sm:$0xff] }
0x1356   : > { %v3247_v58 = vsel %vm934_vm0, %v3175_v55, 0.0  ;;  %v4937_v55 = vld [vmem:[%s6862_s13 + $0x98] sm:$0xff]  ;;  %3457 = vmatpush.msra.mxu1 %v4941_v56 }
0x1357   : > { %v3249_v49 = vadd.f32 %v3248_v59, %v3247_v58  ;;  %v4945_v58 = vld [vmem:[%s6862_s13 + $0xd8] sm:$0xff]  ;;  %3437 = vmatpush.msra.mxu0 %v4937_v55  ;;  %v4936_v59 = vld [vmem:[%s6862_s13 + $0x90] sm:$0xff] }
0x1359   : > { %3438 = vmatpush.msra.mxu0 %v4936_v59 }
0x135e   : > { %v3221_v52 = vpop.f32.mrf.mxu0  ;;  %v3244_v60 = vpop.f32.mrf.mxu1 }
0x135f   : > { %v3250_v61 = vsel %vm934_vm0, %v3221_v52, 0.0  ;;  %v3252_v0 = vsel %vm934_vm0, %v3244_v60, 0.0  ;;  %v4944_v52 = vld [vmem:[%s6862_s13 + $0xd0] sm:$0xff]  ;;  %v4935_v60 = vld [vmem:[%s6862_s13 + $0x88] sm:$0xff] }
0x1360   : > { %v3251_v62 = vadd.f32 %v3250_v61, %v3249_v49  ;;  %v4940_v49 = vld [vmem:[%s6862_s13 + $0xb0] sm:$0xff]  ;;  %v4939_v61 = vld [vmem:[%s6862_s13 + $0xa8] sm:$0xff]  ;;  %3439 = vmatpush.msra.mxu0 %v4935_v60 }
0x1361   : > { %3458 = vmatpush.msra.mxu1 %v4940_v49 }
0x1362   : > { %v3253_v1 = vadd.f32 %v3252_v0, %v3251_v62  ;;  %v4943_v62 = vld [vmem:[%s6862_s13 + $0xc8] sm:$0xff]  ;;  %v4938_v0 = vld [vmem:[%s6862_s13 + $0xa0] sm:$0xff] }
0x1363   : > { %3459 = vmatpush.msra.mxu1 %v4939_v61 }
0x1364   : > { %v3257_v2 = vadd.f32 %v5244_v63, %v3253_v1  ;;  %v4934_v63 = vld [vmem:[%s6862_s13 + $0x80] sm:$0xff] }
0x1365   : > { %v4942_v1 = vld [vmem:[%s6862_s13 + $0xc0] sm:$0xff]  ;;  %3440 = vmatpush.msra.mxu0 %v4934_v63  ;;  %3460 = vmatpush.msra.mxu1 %v4938_v0 }
0x1366   : > { %v3258_v27 = vadd.f32 %v3257_v2, %v6307_v5  ;;  %v3287_v5 = vld [vmem:[%s6964_s2 + $0x10] sm:$0xff]  ;;  %v4949_v2 = vld [vmem:[%s6862_s13 + $0xf8] sm:$0xff] }
0x1367   : > { %3309 = vmatpush.msra.mxu2 %v3287_v5  ;;  %3497 = vmatpush.msrb.mxu0 %v4949_v2 }
0x1368   : > { %v3259_v29 = vsel %vm934_vm0, %v3258_v27, 0.0 }
0x1369   : > { %3260 = vadd.xlane.f32.xlu2 %v3259_v29  ;;  %3310 = vmatpush.msra.mxu2 %v3286_v11 }
0x136b   : > { %3311 = vmatpush.msra.mxu2 %v3285_v12 }
0x136d   : > { %3477 = vmatpush.msrb.mxu2 %v4945_v58 }
0x136f   : > { %3478 = vmatpush.msrb.mxu2 %v4944_v52 }
0x1371   : > { %3479 = vmatpush.msrb.mxu2 %v4943_v62 }
0x1373   : > { %3480 = vmatpush.msrb.mxu2 %v4942_v1 }
0x13dc   : > { %v3261_v57 = vpop.xlane.xlu2 %3260 }
0x13dd   : > { %v3262_v3 = vmul.f32 %v3261_v57, %v5783_v53  ;;  %v4947_v57 = vld [vmem:[%s6862_s13 + $0xe8] sm:$0xff] }
0x13df   : > { %v3263_v6 = vsub.f32 %v3258_v27, %v3262_v3  ;;  %v4948_v27 = vld [vmem:[%s6862_s13 + $0xf0] sm:$0xff] }
0x13e0   : > { %3498 = vmatpush.msrb.mxu0 %v4948_v27 }
0x13e1   : > { %v3264_v7 = vmul.f32 %v3263_v6, %v3263_v6 }
0x13e2   : > { %3499 = vmatpush.msrb.mxu0 %v4947_v57 }
0x13e3   : > { %v3265_v9 = vsel %vm934_vm0, %v3264_v7, 0.0 }
0x13e4   : > { %3266 = vadd.xlane.f32.xlu2 %v3265_v9 }
0x1457   : > { %v3267_v17 = vpop.xlane.xlu2 %3266 }
0x1458   : > { %v3268_v18 = vmul.f32 %v3267_v17, %v5783_v53 }
0x145a   : > { %v3269_v21 = vadd.f32 1e-05, %v3268_v18  ;;  %v3377_v18 = vperm.slane %v6283_v13, 5 }
0x145c   : > { %5336 = vrsqrt.f32 %v3269_v21  ;;  %vm3276_vm7 = vweird.f32 %v3269_v21 }
0x1462   : > { %v5337_v24 = vpop.eup %5336 }
0x1463   : > { %v3271_v19 = vmul.f32 %v5337_v24, %v3269_v21  ;;  %vm3277_vm5 = vweird.f32 %v5337_v24 }
0x1464   : > { %vm3278_vm8 = vmor %vm3276_vm7, %vm3277_vm5 }
0x1465   : > { %v3272_v25 = vmul.f32 %v5337_v24, %v3271_v19 }
0x1467   : > { %v3273_v26 = vmul.f32 0.5, %v3272_v25  ;;  %v5249_v25 = vld [vmem:[%s6863_s14 + $0x6] ss:$0 sm:$0xff] }
0x1469   : > { %v3274_v28 = vsub.f32 1.5, %v3273_v26  ;;  %v5247_v26 = vld [vmem:[%s6863_s14 + $0x4] ss:$0 sm:$0xff] }
0x146b   : > { %v3275_v30 = vmul.f32 %v5337_v24, %v3274_v28 }
0x146d   : > { %v3279_v32 = vsel %vm3278_vm8, %v5337_v24, %v3275_v30 }
0x146e   : > { %v3280_v8 = vmul.f32 %v3279_v32, %v3263_v6  ;;  %v4946_v6 = vld [vmem:[%s6862_s13 + $0xe0] sm:$0xff] }
0x146f   : > { %3500 = vmatpush.msrb.mxu0 %v4946_v6  ;;  %v5250_v32 = vld [vmem:[%s6863_s14 + $0x7] ss:$0 sm:$0xff] }
0x1470   : > { %v3282_v35 = vmul.f32 %v3281_v31, %v3280_v8 }
0x1472   : > { %v3284_v36 = vadd.f32 %v3283_v34, %v3282_v35 }
0x1474   : > { %4931 = vmatmul.msk.f32.vlgmr.msra.gmra.mxu2 %vm934_vm0, %v3284_v36 }
0x14f7   : > { %v3313_v41 = vpop.f32.mrf.mxu2 }
0x14f8   : > { %v3314_v42 = vadd.f32 %v5245_v40, %v3313_v41  ;;  %v5379_v40 = vld [vmem:[%s6140_s22] sm:$0xff]  ;;  %s5401_s22 = scalar_lea.hbm %s6972_s23, 16 }
0x14fa   : > { %v3316_v43 = vmax.f32 %v3314_v42, 0.0 }
0x14fc   : > { %4932 = vmatmul.msk.f32.vlgmr.msra.gmra.mxu3 %vm1456_vm6, %v3316_v43 }
0x157f   : > { %v3349_v45 = vpop.f32.mrf.mxu3 }
0x1580   : > { %v3350_v46 = vadd.f32 %v5246_v44, %v3349_v45 }
0x1582   : > { %v3352_v33 = vadd.f32 %v3350_v46, %v3284_v36 }
0x1584   : > { %v3353_v4 = vsel %vm934_vm0, %v3352_v33, 0.0 }
0x1585   : > { %3354 = vadd.xlane.f32.xlu1 %v3353_v4 }
0x15f8   : > { %v3355_v47 = vpop.xlane.xlu1 %3354 }
0x15f9   : > { %v3356_v48 = vmul.f32 %v3355_v47, %v5783_v53 }
0x15fb   : > { %v3357_v50 = vsub.f32 %v3352_v33, %v3356_v48 }
0x15fd   : > { %v3358_v51 = vmul.f32 %v3357_v50, %v3357_v50 }
0x15ff   : > { %v3359_v54 = vsel %vm934_vm0, %v3358_v51, 0.0 }
0x1600   : > { %3360 = vadd.xlane.f32.xlu2 %v3359_v54 }
0x1673   : > { %v3361_v29 = vpop.xlane.xlu2 %3360 }
0x1674   : > { %v3362_v3 = vmul.f32 %v3361_v29, %v5783_v53 }
0x1676   : > { %v3363_v7 = vadd.f32 1e-05, %v3362_v3 }
0x1678   : > { %5338 = vrsqrt.f32 %v3363_v7  ;;  %vm3370_vm10 = vweird.f32 %v3363_v7 }
0x167e   : > { %v5339_v9 = vpop.eup %5338 }
0x167f   : > { %v3365_v10 = vmul.f32 %v5339_v9, %v3363_v7  ;;  %vm3371_vm9 = vweird.f32 %v5339_v9 }
0x1680   : > { %vm3372_vm11 = vmor %vm3370_vm10, %vm3371_vm9 }
0x1681   : > { %v3366_v5 = vmul.f32 %v5339_v9, %v3365_v10 }
0x1683   : > { %v3367_v11 = vmul.f32 0.5, %v3366_v5 }
0x1685   : > { %v3368_v12 = vsub.f32 1.5, %v3367_v11 }
0x1687   : > { %v3369_v14 = vmul.f32 %v5339_v9, %v3368_v12 }
0x1689   : > { %v3373_v16 = vsel %vm3372_vm11, %v5339_v9, %v3369_v14 }
0x168a   : > { %v3374_v17 = vmul.f32 %v3373_v16, %v3357_v50 }
0x168c   : > { %v3376_v20 = vmul.f32 %v3375_v15, %v3374_v17 }
0x168e   : > { %v6495_v21 = vadd.f32 %v3377_v18, %v3376_v20 }
0x1690   : > { %4959 = vmatmul.msk.f32.vlgmr.msra.gmra.mxu0 %vm934_vm0, %v6495_v21  ;;  %4960 = vmatmul.msk.f32.vlgmr.msra.gmra.mxu1 %vm934_vm0, %v6495_v21 }
0x1691   : > { %4961 = vmatmul.msk.f32.vlgmr.msrb.gmra.mxu2 %vm934_vm0, %v6495_v21 }
0x1698   : > { %4962 = vmatmul.msk.f32.vlgmr.msrb.gmra.mxu0 %vm934_vm0, %v6495_v21 }
0x170d   : > { %v3462_v13 = vpop.f32.mrf.mxu1  ;;  %v3442_v19 = vpop.f32.mrf.mxu0 }
0x170e   : > { %v3463_v24 = vadd.f32 %v5248_v23, %v3462_v13  ;;  %v6515_v31 = vadd.f32 %v5247_v26, %v3442_v19 }
0x1710   : > { %3533 = vrot.lane.b32.xlu0 %v3463_v24, %s6960_s7 }
0x1714   : > { %v3482_v28 = vpop.f32.mrf.mxu2 }
0x1715   : > { %v3483_v30 = vadd.f32 %v5249_v25, %v3482_v28  ;;  %v3502_v8 = vpop.f32.mrf.mxu0  ;;  %v4957_v28 = vld [vmem:[%s6864_s15 + $0x38] sm:$0xff] }
0x1716   : > { %v6523_v34 = vadd.f32 %v5250_v32, %v3502_v8  ;;  %v4954_v32 = vld [vmem:[%s6864_s15 + $0x20] sm:$0xff] }
0x1717   : > { %3560 = vrot.lane.b32.xlu2 %v3483_v30, %s6960_s7  ;;  %v5171_v51 = vpack.i.bf16 %v3483_v30, %v3463_v24 }
0x1718   : > { %3506 = vrot.lane.b32.xlu0 %v6515_v31, %s6960_s7 }
0x1720   : > { %3587 = vrot.lane.b32.xlu0 %v6523_v34, %s6960_s7 }
0x1771   : > { %v3561_v35 = vpop.permute.xlu2 %3560 }
0x1772   : > { %4967 = vmatpush.xpose.msk.msrb.mxu3 %vm1021_vm1, %v3561_v35 }
0x1775   : > { %4968 = vmatmul.msk.f32.vlgmr.msrb.gmra.mxu3 %vm1021_vm1, %v3483_v30  ;;  %v4955_v30 = vld [vmem:[%s6864_s15 + $0x28] sm:$0xff] }
0x1782   : > { %v3534_v36 = vpop.permute.xlu0 %3533 }
0x1783   : > { %4965 = vmatpush.xpose.msk.msra.mxu2 %vm1021_vm1, %v3534_v36 }
0x1786   : > { %4966 = vmatmul.msk.f32.vlgmr.msra.gmra.mxu2 %vm1021_vm1, %v3463_v24 }
0x178a   : > { %v3507_v37 = vpop.permute.xlu0 %3506 }
0x178b   : > { %4963 = vmatpush.xpose.msk.msrb.mxu1 %vm1021_vm1, %v3507_v37  ;;  %v4985_v37 = vld [vmem:[%s6866_s17 + $0xb0] sm:$0xff] }
0x178e   : > { %4964 = vmatmul.msk.f32.vlgmr.msrb.gmra.mxu1 %vm1021_vm1, %v6515_v31 }
0x1792   : > { %v3588_v38 = vpop.permute.xlu0 %3587 }
0x1793   : > { %4969 = vmatpush.xpose.msk.msra.mxu0 %vm1021_vm1, %v3588_v38  ;;  %v4986_v38 = vld [vmem:[%s6866_s17 + $0xb8] sm:$0xff] }
0x1796   : > { %4970 = vmatmul.msk.f32.vlgmr.msra.gmra.mxu0 %vm1021_vm1, %v6523_v34 }
0x17f8   : > { %v3583_v39 = vpop.f32.mrf.mxu3 }
0x17f9   : > { %v3584_v41 = vadd.f32 %v5379_v40, %v3583_v39  ;;  %v5176_v39 = vpack.i.bf16 %v4985_v37, %v4986_v38 }
0x17fb   : > { %v3619_v42 = vsel %vm1021_vm1, %v3584_v41, -inf }
0x17fc   : > { %3620 = vmax.xlane.f32.xlu2 %v3619_v42 }
0x1809   : > { %v3556_v43 = vpop.f32.mrf.mxu2 }
0x180a   : > { %v3557_v44 = vadd.f32 %v5379_v40, %v3556_v43 }
0x180b   : > { %v3529_v45 = vpop.f32.mrf.mxu1 }
0x180c   : > { %v3530_v46 = vadd.f32 %v5379_v40, %v3529_v45  ;;  %v3616_v33 = vsel %vm1021_vm1, %v3557_v44, -inf }
0x180d   : > { %3617 = vmax.xlane.f32.xlu0 %v3616_v33 }
0x180e   : > { %v3613_v4 = vsel %vm1021_vm1, %v3530_v46, -inf }
0x180f   : > { %3614 = vmax.xlane.f32.xlu1 %v3613_v4 }
0x1813   : > { %v3610_v47 = vpop.f32.mrf.mxu0 }
0x1814   : > { %v3611_v48 = vadd.f32 %v5379_v40, %v3610_v47  ;;  %v5251_v47 = vld [vmem:[%s6865_s16 + $0x1] ss:$0 sm:$0xff] }
0x1816   : > { %v3622_v50 = vsel %vm1021_vm1, %v3611_v48, -inf }
0x1817   : > { %3623 = vmax.xlane.f32.xlu1 %v3622_v50 }
0x1821   : > { %5172 = vrot.lane.b32.xlu0 %v5171_v51, %s6961_s5 }
0x186f   : > { %v3621_v52 = vpop.xlane.xlu2 %3620 }
0x1870   : > { %v3627_v63 = vsub.f32 %v3584_v41, %v3621_v52  ;;  %v4994_v52 = vld [vmem:[%s6866_s17 + $0xf8] sm:$0xff] }
0x1872   : > { %v3633_v2 = vmul.f32 1.442695, %v3627_v63  ;;  %v4982_v63 = vld [vmem:[%s6866_s17 + $0x98] sm:$0xff] }
0x1880   : > { %v3618_v54 = vpop.xlane.xlu0 %3617 }
0x1881   : > { %v3626_v58 = vsub.f32 %v3557_v44, %v3618_v54 }
0x1882   : > { %v3615_v55 = vpop.xlane.xlu1 %3614 }
0x1883   : > { %v3625_v56 = vsub.f32 %v3530_v46, %v3615_v55  ;;  %v3631_v49 = vmul.f32 1.442695, %v3626_v58  ;;  %v4990_v58 = vld [vmem:[%s6866_s17 + $0xd8] sm:$0xff] }
0x1885   : > { %v3629_v59 = vmul.f32 1.442695, %v3625_v56  ;;  %v4984_v56 = vld [vmem:[%s6866_s17 + $0xa8] sm:$0xff] }
0x1887   : > { %5340 = vpow2.f32 %v3629_v59  ;;  %v5181_v59 = vpack.i.bf16 %v4984_v56, %v4990_v58 }
0x1888   : > { %5342 = vpow2.f32 %v3631_v49  ;;  %v4989_v49 = vld [vmem:[%s6866_s17 + $0xd0] sm:$0xff] }
0x188a   : > { %v3624_v60 = vpop.xlane.xlu1 %3623 }
0x188b   : > { %v3628_v61 = vsub.f32 %v3611_v48, %v3624_v60 }
0x188d   : > { %v5341_v62 = vpop.eup %5340  ;;  %v3635_v0 = vmul.f32 1.442695, %v3628_v61  ;;  %v4988_v61 = vld [vmem:[%s6866_s17 + $0xc8] sm:$0xff] }
0x188e   : > { %v3637_v1 = vsel %vm1021_vm1, %v5341_v62, 0.0  ;;  %v5343_v27 = vpop.eup %5342 }
0x188f   : > { %5344 = vpow2.f32 %v3635_v0  ;;  %3638 = vadd.xlane.f32.xlu1 %v3637_v1  ;;  %v3640_v9 = vsel %vm1021_vm1, %v5343_v27, 0.0  ;;  %v4993_v1 = vld [vmem:[%s6866_s17 + $0xf0] sm:$0xff] }
0x1890   : > { %5346 = vpow2.f32 %v3633_v2  ;;  %v4987_v2 = vld [vmem:[%s6866_s17 + $0xc0] sm:$0xff] }
0x1893   : > { %v5173_v29 = vpop.permute.xlu0 %5172 }
0x1894   : > { %v5175_v57 = vunpack.i.h.bf16 %v5173_v29  ;;  %v5174_v3 = vunpack.i.l.bf16 %v5173_v29  ;;  %v4980_v29 = vld [vmem:[%s6866_s17 + $0x88] sm:$0xff] }
0x1895   : > { %v5345_v6 = vpop.eup %5344 }
0x1896   : > { %3704 = vmatpush.msrb.mxu2 %v5174_v3  ;;  %3730 = vmatpush.msra.mxu3 %v5175_v57  ;;  %v3646_v7 = vsel %vm1021_vm1, %v5345_v6, 0.0  ;;  %v5347_v10 = vpop.eup %5346  ;;  %v4991_v57 = vld [vmem:[%s6866_s17 + $0xe0] sm:$0xff] }
0x1897   : > { %3647 = vadd.xlane.f32.xlu2 %v3646_v7  ;;  %3641 = vadd.xlane.f32.xlu1 %v3640_v9  ;;  %v3643_v5 = vsel %vm1021_vm1, %v5347_v10, 0.0  ;;  %v4979_v3 = vld [vmem:[%s6866_s17 + $0x80] sm:$0xff]  ;;  %v5201_v7 = vpack.i.bf16 %v4994_v52, %v4980_v29 }
0x1898   : > { %3802 = vmatpush.msra.mxu2 %v4955_v30 }
0x189f   : > { %3644 = vadd.xlane.f32.xlu1 %v3643_v5 }
0x18af   : > { %3735 = vrot.lane.b32.xlu2 %v6523_v34, %s6961_s5 }
0x18b8   : > { %3657 = vrot.lane.b32.xlu1 %v6515_v31, %s6961_s5  ;;  %v4956_v31 = vld [vmem:[%s6864_s15 + $0x30] sm:$0xff] }
0x18b9   : > { %3825 = vmatpush.msrb.mxu3 %v4956_v31 }
0x18c0   : > { %5177 = vrot.lane.b32.xlu1 %v5176_v39, %s6960_s7 }
0x18c8   : > { %5182 = vrot.lane.b32.xlu1 %v5181_v59, %s6960_s7 }
0x1902   : > { %v3639_v11 = vpop.xlane.xlu1 %3638 }
0x190a   : > { %v3648_v12 = vpop.xlane.xlu2 %3647  ;;  %v3642_v14 = vpop.xlane.xlu1 %3641 }
0x190b   : > { %5348 = vrcp.f32 %v3648_v12 }
0x190c   : > { %5350 = vrcp.f32 %v3642_v14  ;;  %v5206_v14 = vpack.i.bf16 %v4993_v1, %v4979_v3 }
0x1911   : > { %v5349_v15 = vpop.eup %5348 }
0x1912   : > { %v5351_v16 = vpop.eup %5350  ;;  %v3656_v17 = vmul.f32 %v5349_v15, %v5345_v6  ;;  %v3736_v18 = vpop.permute.xlu2 %3735  ;;  %v5191_v6 = vpack.i.bf16 %v4987_v2, %v4988_v61 }
0x1913   : > { %v3645_v20 = vpop.xlane.xlu1 %3644  ;;  %v3654_v23 = vmul.f32 %v5351_v16, %v5343_v27  ;;  %3756 = vmatpush.msrb.mxu0 %v3736_v18  ;;  %v4992_v27 = vld [vmem:[%s6866_s17 + $0xe8] sm:$0xff] }
0x1914   : > { %5352 = vrcp.f32 %v3645_v20  ;;  %4974 = vmatmul.msk.f32.vlgmr.msrb.gmra.mxu0 %vm1021_vm1, %v3656_v17  ;;  %v5211_v18 = vpack.i.bf16 %v4991_v57, %v4992_v27 }
0x1915   : > { %4972 = vmatmul.msk.f32.vlgmr.msrb.gmra.mxu2 %vm1021_vm1, %v3654_v23  ;;  %5354 = vrcp.f32 %v3639_v11  ;;  %3848 = vmatpush.msra.mxu0 %v4957_v28 }
0x1916   : > { %3967 = vmatpush.msrb.mxu2 %v4986_v38 }
0x1917   : > { %4007 = vmatpush.msrb.mxu0 %v4994_v52 }
0x1918   : > { %3968 = vmatpush.msrb.mxu2 %v4985_v37 }
0x1919   : > { %4008 = vmatpush.msrb.mxu0 %v4993_v1 }
0x191a   : > { %v5353_v13 = vpop.eup %5352  ;;  %3969 = vmatpush.msrb.mxu2 %v4984_v56 }
0x191b   : > { %v3655_v24 = vmul.f32 %v5353_v13, %v5347_v10  ;;  %v5355_v19 = vpop.eup %5354  ;;  %4009 = vmatpush.msrb.mxu0 %v4992_v27 }
0x191c   : > { %v3653_v25 = vmul.f32 %v5355_v19, %v5341_v62  ;;  %v4981_v62 = vld [vmem:[%s6866_s17 + $0x90] sm:$0xff] }
0x191d   : > { %4973 = vmatmul.msk.f32.vlgmr.msra.gmra.mxu3 %vm1021_vm1, %v3655_v24  ;;  %v5196_v0 = vpack.i.bf16 %v4981_v62, %v4982_v63  ;;  %4010 = vmatpush.msrb.mxu0 %v4991_v57 }
0x191e   : > { %3987 = vmatpush.msra.mxu3 %v4990_v58 }
0x1920   : > { %3988 = vmatpush.msra.mxu3 %v4989_v49 }
0x1922   : > { %3989 = vmatpush.msra.mxu3 %v4988_v61 }
0x1924   : > { %3990 = vmatpush.msra.mxu3 %v4987_v2 }
0x192a   : > { %v3658_v26 = vpop.permute.xlu1 %3657 }
0x192b   : > { %3678 = vmatpush.msra.mxu1 %v3658_v26 }
0x192c   : > { %4971 = vmatmul.msk.f32.vlgmr.msra.gmra.mxu1 %vm1021_vm1, %v3653_v25 }
0x192d   : > { %3779 = vmatpush.msrb.mxu1 %v4954_v32 }
0x192f   : > { %3947 = vmatpush.msra.mxu1 %v4982_v63 }
0x1931   : > { %3948 = vmatpush.msra.mxu1 %v4981_v62 }
0x1932   : > { %v5178_v10 = vpop.permute.xlu1 %5177 }
0x1933   : > { %3949 = vmatpush.msra.mxu1 %v4980_v29  ;;  %v5180_v11 = vunpack.i.h.bf16 %v5178_v10  ;;  %v5179_v12 = vunpack.i.l.bf16 %v5178_v10 }
0x1935   : > { %3950 = vmatpush.msra.mxu1 %v4979_v3 }
0x193a   : > { %v5183_v20 = vpop.permute.xlu1 %5182 }
0x193b   : > { %v5185_v23 = vunpack.i.h.bf16 %v5183_v20  ;;  %v5184_v13 = vunpack.i.l.bf16 %v5183_v20  ;;  %v5380_v20 = vld [vmem:[%s5735_s8] sm:$0xff] }
0x1991   : > { %v3758_v8 = vpop.f32.mrf.mxu0 }
0x1992   : > { %4978 = vmatmul.msk.f32.vlgmr.msra.gmra.mxu0 %vm1021_vm1, %v3758_v8 }
0x1998   : > { %v3706_v34 = vpop.f32.mrf.mxu2 }
0x1999   : > { %4976 = vmatmul.msk.f32.vlgmr.msra.gmra.mxu2 %vm1021_vm1, %v3706_v34 }
0x19a0   : > { %v3732_v35 = vpop.f32.mrf.mxu3 }
0x19a1   : > { %4977 = vmatmul.msk.f32.vlgmr.msrb.gmra.mxu3 %vm1021_vm1, %v3732_v35 }
0x19a2   : > { %4124 = vmatpush.msrb.mxu3 %v5184_v13 }
0x19a9   : > { %v3680_v36 = vpop.f32.mrf.mxu1 }
0x19aa   : > { %4975 = vmatmul.msk.f32.vlgmr.msrb.gmra.mxu1 %vm1021_vm1, %v3680_v36 }
0x1a0f   : > { %v3850_v45 = vpop.f32.mrf.mxu0 }
0x1a10   : > { %v3858_v48 = vsel %vm934_vm0, %v3850_v45, 0.0 }
0x1a1c   : > { %v3804_v40 = vpop.f32.mrf.mxu2 }
0x1a1d   : > { %v3854_v43 = vsel %vm934_vm0, %v3804_v40, 0.0 }
0x1a24   : > { %v3827_v41 = vpop.f32.mrf.mxu3 }
0x1a25   : > { %v3856_v33 = vsel %vm934_vm0, %v3827_v41, 0.0 }
0x1a27   : > { %v3781_v42 = vpop.f32.mrf.mxu1 }
0x1a28   : > { %v3853_v44 = vsel %vm934_vm0, %v3781_v42, 0.0 }
0x1a29   : > { %v3855_v46 = vadd.f32 %v3854_v43, %v3853_v44  ;;  %v6646_v43 = vld [vmem:[%s6867_s18 + $0x6] ss:$0 sm:$0xff]  ;;  %v5253_v44 = vld [vmem:[%s6867_s18 + $0x5] ss:$0 sm:$0xff] }
0x1a2b   : > { %v3857_v4 = vadd.f32 %v3856_v33, %v3855_v46 }
0x1a2d   : > { %v3859_v50 = vadd.f32 %v3858_v48, %v3857_v4  ;;  %v5254_v48 = vld [vmem:[%s6867_s18 + $0x7] ss:$0 sm:$0xff] }
0x1a2f   : > { %v3863_v51 = vadd.f32 %v5251_v47, %v3859_v50  ;;  %v5255_v50 = vld [vmem:[%s6867_s18 + $0x4] ss:$0 sm:$0xff] }
0x1a31   : > { %v3864_v54 = vadd.f32 %v3863_v51, %v6495_v21  ;;  %v4983_v21 = vld [vmem:[%s6866_s17 + $0xa0] sm:$0xff] }
0x1a32   : > { %3970 = vmatpush.msrb.mxu2 %v4983_v21  ;;  %v5186_v60 = vpack.i.bf16 %v4983_v21, %v4989_v49 }
0x1a33   : > { %v3865_v55 = vsel %vm934_vm0, %v3864_v54, 0.0 }
0x1a34   : > { %3866 = vadd.xlane.f32.xlu0 %v3865_v55  ;;  %5187 = vrot.lane.b32.xlu1 %v5186_v60, %s6960_s7  ;;  %v6665_v55 = vld [vmem:[%s6874_s25 + $0x8] sm:$0x3f] }
0x1a35   : > { %4085 = vmatpush.msra.mxu2 %v5179_v12  ;;  %v3887_v59 = vperm.slane %v6665_v55, 0  ;;  %v3889_v52 = vperm.slane %v6665_v55, 1 }
0x1a37   : > { %4086 = vmatpush.msra.mxu2 %v5180_v11 }
0x1a39   : > { %4087 = vmatpush.msra.mxu2 %v5185_v23 }
0x1a3c   : > { %5192 = vrot.lane.b32.xlu1 %v5191_v6, %s6960_s7 }
0x1a44   : > { %5202 = vrot.lane.b32.xlu1 %v5201_v7, %s6960_s7 }
0x1a48   : > { %5197 = vrot.lane.b32.xlu0 %v5196_v0, %s6960_s7 }
0x1a4c   : > { %5207 = vrot.lane.b32.xlu1 %v5206_v14, %s6960_s7 }
0x1a50   : > { %4070 = vrot.lane.b32.xlu0 %v5253_v44, %s6960_s7 }
0x1a54   : > { %4109 = vrot.lane.b32.xlu1 %v6646_v43, %s6960_s7 }
0x1a58   : > { %4031 = vrot.lane.b32.xlu0 %v5255_v50, %s6960_s7 }
0x1a5c   : > { %4148 = vrot.lane.b32.xlu1 %v5254_v48, %s6960_s7 }
0x1aa6   : > { %v5188_v24 = vpop.permute.xlu1 %5187 }
0x1aa7   : > { %v3867_v9 = vpop.xlane.xlu0 %3866  ;;  %v5190_v26 = vunpack.i.h.bf16 %v5188_v24  ;;  %v5189_v28 = vunpack.i.l.bf16 %v5188_v24 }
0x1aa8   : > { %v3868_v5 = vmul.f32 %v3867_v9, %v5783_v53 }
0x1aa9   : > { %4088 = vmatpush.msra.mxu2 %v5190_v26  ;;  %4125 = vmatpush.msrb.mxu3 %v5189_v28 }
0x1aaa   : > { %v6635_v15 = vsub.f32 %v3864_v54, %v3868_v5 }
0x1aac   : > { %v3870_v16 = vmul.f32 %v6635_v15, %v6635_v15 }
0x1aae   : > { %v3871_v17 = vsel %vm934_vm0, %v3870_v16, 0.0  ;;  %v5193_v19 = vpop.permute.xlu1 %5192 }
0x1aaf   : > { %3872 = vadd.xlane.f32.xlu2 %v3871_v17  ;;  %v5194_v30 = vunpack.i.l.bf16 %v5193_v19  ;;  %v5195_v35 = vunpack.i.h.bf16 %v5193_v19 }
0x1ab1   : > { %4126 = vmatpush.msrb.mxu3 %v5194_v30 }
0x1ab3   : > { %4127 = vmatpush.msrb.mxu3 %v5195_v35 }
0x1ab6   : > { %v5203_v25 = vpop.permute.xlu1 %5202 }
0x1ab7   : > { %v5205_v32 = vunpack.i.h.bf16 %v5203_v25  ;;  %v5204_v36 = vunpack.i.l.bf16 %v5203_v25 }
0x1ab9   : > { %4163 = vmatpush.msra.mxu0 %v5205_v32 }
0x1aba   : > { %v5198_v31 = vpop.permute.xlu0 %5197 }
0x1abb   : > { %v5200_v8 = vunpack.i.h.bf16 %v5198_v31  ;;  %v5199_v34 = vunpack.i.l.bf16 %v5198_v31 }
0x1abd   : > { %4046 = vmatpush.msrb.mxu1 %v5199_v34 }
0x1abe   : > { %v5208_v37 = vpop.permute.xlu1 %5207 }
0x1abf   : > { %4047 = vmatpush.msrb.mxu1 %v5200_v8  ;;  %v5210_v38 = vunpack.i.h.bf16 %v5208_v37  ;;  %v5209_v39 = vunpack.i.l.bf16 %v5208_v37 }
0x1ac1   : > { %4048 = vmatpush.msrb.mxu1 %v5204_v36  ;;  %4164 = vmatpush.msra.mxu0 %v5210_v38 }
0x1ac2   : > { %v4071_v62 = vpop.permute.xlu0 %4070 }
0x1ac3   : > { %4049 = vmatpush.msrb.mxu1 %v5209_v39 }
0x1ac6   : > { %v4110_v63 = vpop.permute.xlu1 %4109 }
0x1ac7   : > { %5212 = vrot.lane.b32.xlu2 %v5211_v18, %s6960_s7 }
0x1aca   : > { %v4032_v27 = vpop.permute.xlu0 %4031 }
0x1ace   : > { %v4149_v57 = vpop.permute.xlu1 %4148 }
0x1b22   : > { %v3873_v40 = vpop.xlane.xlu2 %3872 }
0x1b23   : > { %v3874_v41 = vmul.f32 %v3873_v40, %v5783_v53 }
0x1b25   : > { %v3875_v42 = vadd.f32 1e-05, %v3874_v41 }
0x1b27   : > { %5356 = vrsqrt.f32 %v3875_v42  ;;  %vm3882_vm13 = vweird.f32 %v3875_v42 }
0x1b2a   : > { %v5213_v45 = vpop.permute.xlu2 %5212 }
0x1b2b   : > { %v5215_v46 = vunpack.i.h.bf16 %v5213_v45  ;;  %v5214_v33 = vunpack.i.l.bf16 %v5213_v45 }
0x1b2d   : > { %v5357_v4 = vpop.eup %5356  ;;  %4165 = vmatpush.msra.mxu0 %v5214_v33 }
0x1b2e   : > { %v3877_v47 = vmul.f32 %v5357_v4, %v3875_v42  ;;  %vm3883_vm12 = vweird.f32 %v5357_v4 }
0x1b2f   : > { %4166 = vmatpush.msra.mxu0 %v5215_v46  ;;  %vm3884_vm14 = vmor %vm3882_vm13, %vm3883_vm12 }
0x1b30   : > { %v3878_v51 = vmul.f32 %v5357_v4, %v3877_v47 }
0x1b32   : > { %v3879_v54 = vmul.f32 0.5, %v3878_v51 }
0x1b34   : > { %v3880_v56 = vsub.f32 1.5, %v3879_v54 }
0x1b36   : > { %v3881_v58 = vmul.f32 %v5357_v4, %v3880_v56 }
0x1b38   : > { %v3885_v21 = vsel %vm3884_vm14, %v5357_v4, %v3881_v58 }
0x1b39   : > { %v3886_v49 = vmul.f32 %v3885_v21, %v6635_v15 }
0x1b3b   : > { %v3888_v60 = vmul.f32 %v3887_v59, %v3886_v49 }
0x1b3d   : > { %v6670_v61 = vadd.f32 %v3889_v52, %v3888_v60 }
0x1b3f   : > { %5004 = vmatmul.msk.f32.vlgmr.msra.gmra.mxu1 %vm934_vm0, %v6670_v61  ;;  %5005 = vmatmul.msk.f32.vlgmr.msrb.gmra.mxu2 %vm934_vm0, %v6670_v61 }
0x1b40   : > { %5006 = vmatmul.msk.f32.vlgmr.msra.gmra.mxu3 %vm934_vm0, %v6670_v61  ;;  %5007 = vmatmul.msk.f32.vlgmr.msrb.gmra.mxu0 %vm934_vm0, %v6670_v61 }
0x1b47   : > { %5008 = vmatmul.msk.f32.vlgmr.msrb.gmra.mxu1 %vm934_vm0, %v6326_v22  ;;  %5009 = vmatmul.msk.f32.vlgmr.msra.gmra.mxu2 %vm934_vm0, %v6326_v22 }
0x1b48   : > { %5010 = vmatmul.msk.f32.vlgmr.msrb.gmra.mxu3 %vm934_vm0, %v6326_v22  ;;  %5011 = vmatmul.msk.f32.vlgmr.msra.gmra.mxu0 %vm934_vm0, %v6326_v22 }
0x1bbc   : > { %v3952_v0 = vpop.f32.mrf.mxu1 }
0x1bbd   : > { %v4012_v1 = vpop.f32.mrf.mxu0  ;;  %v3953_v10 = vadd.f32 %v5255_v50, %v3952_v0 }
0x1bbe   : > { %v4013_v22 = vadd.f32 %v5254_v48, %v4012_v1 }
0x1bc2   : > { %v3972_v2 = vpop.f32.mrf.mxu2 }
0x1bc3   : > { %v3992_v29 = vpop.f32.mrf.mxu3  ;;  %v3973_v15 = vadd.f32 %v5253_v44, %v3972_v2 }
0x1bc4   : > { %v4051_v3 = vpop.f32.mrf.mxu1  ;;  %v3993_v17 = vadd.f32 %v6646_v43, %v3992_v29 }
0x1bc5   : > { %v4168_v6 = vpop.f32.mrf.mxu0  ;;  %v6688_v7 = vadd.f32 %v4051_v3, %v4032_v27 }
0x1bc6   : > { %v6690_v9 = vadd.f32 %v4168_v6, %v4149_v57 }
0x1bc7   : > { %5012 = vmatpush.xpose.msk.msra.mxu1 %vm1021_vm1, %v6688_v7 }
0x1bc8   : > { %5018 = vmatpush.xpose.msk.msrb.mxu0 %vm1021_vm1, %v6690_v9 }
0x1bca   : > { %v4090_v5 = vpop.f32.mrf.mxu2  ;;  %5013 = vmatmul.msk.f32.vlgmr.msra.gmra.mxu1 %vm1021_vm1, %v3953_v10  ;;  %v5001_v10 = vld [vmem:[%s6868_s19 + $0x30] sm:$0xff] }
0x1bcb   : > { %v4091_v11 = vadd.f32 %v4090_v5, %v4071_v62  ;;  %v4129_v12 = vpop.f32.mrf.mxu3  ;;  %5019 = vmatmul.msk.f32.vlgmr.msrb.gmra.mxu0 %vm1021_vm1, %v4013_v22  ;;  %v5002_v5 = vld [vmem:[%s6868_s19 + $0x38] sm:$0xff] }
0x1bcc   : > { %v4130_v14 = vadd.f32 %v4129_v12, %v4110_v63 }
0x1bcd   : > { %5014 = vmatpush.xpose.msk.msrb.mxu2 %vm1021_vm1, %v4091_v11 }
0x1bce   : > { %v5216_v16 = vpack.i.bf16 %v4130_v14, %v4091_v11  ;;  %5016 = vmatpush.xpose.msk.msra.mxu3 %vm1021_vm1, %v4130_v14 }
0x1bd0   : > { %5015 = vmatmul.msk.f32.vlgmr.msrb.gmra.mxu2 %vm1021_vm1, %v3973_v15 }
0x1bd1   : > { %5017 = vmatmul.msk.f32.vlgmr.msra.gmra.mxu3 %vm1021_vm1, %v3993_v17 }
0x1c47   : > { %v4194_v18 = vpop.f32.mrf.mxu1 }
0x1c48   : > { %v4195_v23 = vadd.f32 %v5380_v20, %v4194_v18  ;;  %v4272_v30 = vpop.f32.mrf.mxu0 }
0x1c49   : > { %v4273_v32 = vadd.f32 %v5380_v20, %v4272_v30 }
0x1c4a   : > { %v4275_v13 = vsel %vm1021_vm1, %v4195_v23, -inf }
0x1c4b   : > { %4276 = vmax.xlane.f32.xlu2 %v4275_v13  ;;  %v4284_v8 = vsel %vm1021_vm1, %v4273_v32, -inf }
0x1c53   : > { %v4220_v24 = vpop.f32.mrf.mxu2 }
0x1c54   : > { %v4221_v19 = vadd.f32 %v5380_v20, %v4220_v24  ;;  %v4246_v25 = vpop.f32.mrf.mxu3 }
0x1c55   : > { %v4247_v26 = vadd.f32 %v5380_v20, %v4246_v25  ;;  %v5256_v25 = vld [vmem:[%s6869_s20 + $0x1] ss:$0 sm:$0xff] }
0x1c56   : > { %v4278_v28 = vsel %vm1021_vm1, %v4221_v19, -inf }
0x1c57   : > { %v4281_v31 = vsel %vm1021_vm1, %v4247_v26, -inf  ;;  %4279 = vmax.xlane.f32.xlu0 %v4278_v28 }
0x1c58   : > { %4282 = vmax.xlane.f32.xlu1 %v4281_v31 }
0x1c5f   : > { %4285 = vmax.xlane.f32.xlu0 %v4284_v8 }
0x1c73   : > { %5217 = vrot.lane.b32.xlu0 %v5216_v16, %s6960_s7 }
0x1cbe   : > { %v4277_v34 = vpop.xlane.xlu2 %4276 }
0x1cbf   : > { %v4287_v35 = vsub.f32 %v4195_v23, %v4277_v34 }
0x1cc1   : > { %v4291_v36 = vmul.f32 1.442695, %v4287_v35 }
0x1cc3   : > { %5358 = vpow2.f32 %v4291_v36 }
0x1cc9   : > { %v5359_v37 = vpop.eup %5358 }
0x1cca   : > { %v4280_v38 = vpop.xlane.xlu0 %4279  ;;  %v4299_v39 = vsel %vm1021_vm1, %v5359_v37, 0.0 }
0x1ccb   : > { %v4288_v40 = vsub.f32 %v4221_v19, %v4280_v38  ;;  %4300 = vadd.xlane.f32.xlu2 %v4299_v39  ;;  %v4283_v42 = vpop.xlane.xlu1 %4282  ;;  %v5031_v38 = vld [vmem:[%s6964_s2 + $0x38] sm:$0xff]  ;;  %v5029_v39 = vld [vmem:[%s6964_s2 + $0x28] sm:$0xff] }
0x1ccc   : > { %v4289_v46 = vsub.f32 %v4247_v26, %v4283_v42  ;;  %v5040_v42 = vld [vmem:[%s6965_s21 + $0x70] sm:$0xff] }
0x1ccd   : > { %v4293_v41 = vmul.f32 1.442695, %v4288_v40  ;;  %v5028_v40 = vld [vmem:[%s6964_s2 + $0x20] sm:$0xff] }
0x1cce   : > { %v4295_v47 = vmul.f32 1.442695, %v4289_v46  ;;  %v5038_v46 = vld [vmem:[%s6965_s21 + $0x60] sm:$0xff] }
0x1ccf   : > { %5360 = vpow2.f32 %v4293_v41  ;;  %v5041_v41 = vld [vmem:[%s6965_s21 + $0x78] sm:$0xff] }
0x1cd2   : > { %v4286_v43 = vpop.xlane.xlu0 %4285 }
0x1cd3   : > { %v4290_v44 = vsub.f32 %v4273_v32, %v4286_v43  ;;  %v5039_v43 = vld [vmem:[%s6965_s21 + $0x68] sm:$0xff] }
0x1cd5   : > { %v5361_v45 = vpop.eup %5360  ;;  %v4297_v33 = vmul.f32 1.442695, %v4290_v44 }
0x1cd6   : > { %v4302_v4 = vsel %vm1021_vm1, %v5361_v45, 0.0 }
0x1cd7   : > { %5362 = vpow2.f32 %v4297_v33  ;;  %4303 = vadd.xlane.f32.xlu2 %v4302_v4  ;;  %v5037_v4 = vld [vmem:[%s6965_s21 + $0x58] sm:$0xff] }
0x1cd8   : > { %5364 = vpow2.f32 %v4295_v47 }
0x1cdd   : > { %v5363_v48 = vpop.eup %5362 }
0x1cde   : > { %v4308_v50 = vsel %vm1021_vm1, %v5363_v48, 0.0  ;;  %v5365_v51 = vpop.eup %5364 }
0x1cdf   : > { %4309 = vadd.xlane.f32.xlu1 %v4308_v50  ;;  %v4305_v59 = vsel %vm1021_vm1, %v5365_v51, 0.0 }
0x1ce5   : > { %v5218_v54 = vpop.permute.xlu0 %5217 }
0x1ce6   : > { %v5220_v56 = vunpack.i.h.bf16 %v5218_v54  ;;  %v5219_v58 = vunpack.i.l.bf16 %v5218_v54 }
0x1ce7   : > { %4306 = vadd.xlane.f32.xlu1 %v4305_v59 }
0x1ce8   : > { %4366 = vmatpush.msra.mxu2 %v5219_v58  ;;  %4392 = vmatpush.msrb.mxu3 %v5220_v56  ;;  %v4549_v58 = vperm.slane %v6665_v55, 2 }
0x1cea   : > { %4487 = vmatpush.msra.mxu3 %v5001_v10 }
0x1cef   : > { %4319 = vrot.lane.b32.xlu2 %v6688_v7, %s6960_s7  ;;  %v4999_v7 = vld [vmem:[%s6868_s19 + $0x20] sm:$0xff] }
0x1d00   : > { %4397 = vrot.lane.b32.xlu1 %v6690_v9, %s6960_s7  ;;  %v5000_v9 = vld [vmem:[%s6868_s19 + $0x28] sm:$0xff]  ;;  %s4694_s7 = scalar_lea.hbm %s6972_s23, %s5046_s10 }
0x1d01   : > { %4464 = vmatpush.msrb.mxu2 %v5000_v9 }
0x1d3e   : > { %v4301_v21 = vpop.xlane.xlu2 %4300 }
0x1d3f   : > { %5366 = vrcp.f32 %v4301_v21  ;;  %v4551_v21 = vperm.slane %v6665_v55, 3 }
0x1d45   : > { %v5367_v52 = vpop.eup %5366 }
0x1d46   : > { %v4315_v62 = vmul.f32 %v5367_v52, %v5359_v37 }
0x1d4a   : > { %v4304_v49 = vpop.xlane.xlu2 %4303 }
0x1d4b   : > { %5368 = vrcp.f32 %v4304_v49 }
0x1d51   : > { %v5369_v60 = vpop.eup %5368 }
0x1d52   : > { %v4316_v63 = vmul.f32 %v5369_v60, %v5361_v45  ;;  %v4310_v0 = vpop.xlane.xlu1 %4309  ;;  %v4320_v1 = vpop.permute.xlu2 %4319 }
0x1d53   : > { %4340 = vmatpush.msrb.mxu1 %v4320_v1  ;;  %v5257_v1 = vld [vmem:[%s6967_s6 + $0x1] ss:$0 sm:$0xff] }
0x1d54   : > { %5020 = vmatmul.msk.f32.vlgmr.msrb.gmra.mxu1 %vm1021_vm1, %v4315_v62  ;;  %5021 = vmatmul.msk.f32.vlgmr.msra.gmra.mxu2 %vm1021_vm1, %v4316_v63  ;;  %v5036_v62 = vld [vmem:[%s6965_s21 + $0x50] sm:$0xff]  ;;  %v5035_v63 = vld [vmem:[%s6965_s21 + $0x48] sm:$0xff] }
0x1d55   : > { %4441 = vmatpush.msra.mxu1 %v4999_v7  ;;  %4612 = vmatpush.msra.mxu2 %v5041_v41 }
0x1d57   : > { %4578 = vmatpush.msrb.mxu1 %v5031_v38  ;;  %4613 = vmatpush.msra.mxu2 %v5040_v42 }
0x1d59   : > { %4614 = vmatpush.msra.mxu2 %v5039_v43 }
0x1d5a   : > { %v4307_v2 = vpop.xlane.xlu1 %4306 }
0x1d5b   : > { %5370 = vrcp.f32 %v4307_v2  ;;  %4615 = vmatpush.msra.mxu2 %v5038_v46 }
0x1d5c   : > { %5372 = vrcp.f32 %v4310_v0  ;;  %v5034_v0 = vld [vmem:[%s6965_s21 + $0x40] sm:$0xff] }
0x1d5d   : > { %4616 = vmatpush.msra.mxu2 %v5037_v4 }
0x1d5f   : > { %4617 = vmatpush.msra.mxu2 %v5036_v62 }
0x1d61   : > { %v5371_v27 = vpop.eup %5370  ;;  %4618 = vmatpush.msra.mxu2 %v5035_v63 }
0x1d62   : > { %v4317_v29 = vmul.f32 %v5371_v27, %v5365_v51  ;;  %v5373_v57 = vpop.eup %5372 }
0x1d63   : > { %v4318_v3 = vmul.f32 %v5373_v57, %v5363_v48  ;;  %4619 = vmatpush.msra.mxu2 %v5034_v0  ;;  %v5258_v57 = vld [vmem:[%s6968_s1 + $0x1] ss:$0 sm:$0xff] }
0x1d64   : > { %5022 = vmatmul.msk.f32.vlgmr.msrb.gmra.mxu3 %vm1021_vm1, %v4317_v29 }
0x1d72   : > { %v4398_v6 = vpop.permute.xlu1 %4397 }
0x1d73   : > { %4418 = vmatpush.msra.mxu0 %v4398_v6 }
0x1d74   : > { %5023 = vmatmul.msk.f32.vlgmr.msra.gmra.mxu0 %vm1021_vm1, %v4318_v3 }
0x1d75   : > { %4510 = vmatpush.msrb.mxu0 %v5002_v5 }
0x1dd1   : > { %v4342_v22 = vpop.f32.mrf.mxu1 }
0x1dd2   : > { %5024 = vmatmul.msk.f32.vlgmr.msra.gmra.mxu1 %vm1021_vm1, %v4342_v22 }
0x1dd7   : > { %v4368_v11 = vpop.f32.mrf.mxu2 }
0x1dd8   : > { %5025 = vmatmul.msk.f32.vlgmr.msrb.gmra.mxu2 %vm1021_vm1, %v4368_v11 }
0x1de7   : > { %v4394_v12 = vpop.f32.mrf.mxu3 }
0x1de8   : > { %5026 = vmatmul.msk.f32.vlgmr.msra.gmra.mxu3 %vm1021_vm1, %v4394_v12 }
0x1df1   : > { %v4420_v14 = vpop.f32.mrf.mxu0 }
0x1df2   : > { %5027 = vmatmul.msk.f32.vlgmr.msrb.gmra.mxu0 %vm1021_vm1, %v4420_v14  ;;  %v4654_v14 = vld [vmem:[%s6969_s0 + $0x18] sm:$0xff] }
0x1df3   : > { %4674 = vmatpush.msrb.mxu3 %v4654_v14 }
0x1e4f   : > { %v4443_v16 = vpop.f32.mrf.mxu1 }
0x1e50   : > { %v4515_v20 = vsel %vm934_vm0, %v4443_v16, 0.0  ;;  %v4652_v16 = vld [vmem:[%s6969_s0 + $0x8] sm:$0xff] }
0x1e5b   : > { %v4466_v15 = vpop.f32.mrf.mxu2 }
0x1e5c   : > { %v4516_v17 = vsel %vm934_vm0, %v4466_v15, 0.0  ;;  %v4653_v15 = vld [vmem:[%s6969_s0 + $0x10] sm:$0xff] }
0x1e5d   : > { %v4517_v13 = vadd.f32 %v4516_v17, %v4515_v20  ;;  %4675 = vmatpush.msrb.mxu3 %v4653_v15  ;;  %v4651_v17 = vld [vmem:[%s6969_s0] sm:$0xff]  ;;  %s875_s0 = scalar_lea.vmem [#allocation2], %s4798_s12 }
0x1e5e   : > { %s4696_s1 = sshll.u32 %s875_s0, 4  ;;  %s4697_s1 = int_to_ptr.vmem [resolvable:$true] %s4696_s1 }
0x1e5f   : > { %4676 = vmatpush.msrb.mxu3 %v4652_v16 }
0x1e61   : > { %4677 = vmatpush.msrb.mxu3 %v4651_v17 }
0x1e6b   : > { %v4489_v18 = vpop.f32.mrf.mxu3 }
0x1e6c   : > { %v4518_v23 = vsel %vm934_vm0, %v4489_v18, 0.0 }
0x1e6d   : > { %v4519_v24 = vadd.f32 %v4518_v23, %v4517_v13 }
0x1e6f   : > { %v4512_v19 = vpop.f32.mrf.mxu0 }
0x1e70   : > { %v4520_v26 = vsel %vm934_vm0, %v4512_v19, 0.0 }
0x1e71   : > { %v4521_v28 = vadd.f32 %v4520_v26, %v4519_v24 }
0x1e73   : > { %v4525_v30 = vadd.f32 %v5256_v25, %v4521_v28 }
0x1e75   : > { %v4526_v31 = vadd.f32 %v4525_v30, %v6670_v61  ;;  %v5030_v61 = vld [vmem:[%s6964_s2 + $0x30] sm:$0xff]  ;;  %v4647_v30 = vperm.slane %v6665_v55, 4  ;;  %s4698_s2 = sshll.u32 %s4694_s7, 4  ;;  %s4699_s2 = int_to_ptr.hbm [resolvable:$true] %s4698_s2 }
0x1e76   : > { %4579 = vmatpush.msrb.mxu1 %v5030_v61  ;;  %s5395_s6 = sshra.s32 %s4699_s2, 4  ;;  %s5396_s6 = int_to_ptr.hbm [resolvable:$true] %s5395_s6 }
0x1e77   : > { %v4527_v32 = vsel %vm934_vm0, %v4526_v31, 0.0  ;;  %s5397_s9 = scalar_lea.hbm %s5396_s6, 8  ;;  %p5402_p0 = scmp.lt.s32.totalorder %s5396_s6, %s6972_s23 }
0x1e78   : > { %4528 = vadd.xlane.f32.xlu0 %v4527_v32  ;;  %4580 = vmatpush.msrb.mxu1 %v5029_v39  ;;  %v4649_v32 = vperm.slane %v6665_v55, 5  ;;  %p5398_p11 = scmp.ne.s32.totalorder %s5396_s6, %s5397_s9  ;;  %p5403_p1 = scmp.lt.s32.totalorder %s5401_s22, %s5397_s9 }
0x1e7a   : > { %4581 = vmatpush.msrb.mxu1 %v5028_v40  ;;  %p5399_p12 = pnand %p5398_p11, %p5631_p5  ;;  %p5404_p2 = por %p5403_p1, %p5402_p0 }
0x1e7c   : > { %p5400_p13 = pneg %p5399_p12 }
0x1e7e   : > { %p5405_p3 = pnand %p5404_p2, %p5400_p13 }
0x1eeb   : > { %v4529_v8 = vpop.xlane.xlu0 %4528 }
0x1eec   : > { %v4530_v34 = vmul.f32 %v4529_v8, %v5783_v53 }
0x1eee   : > { %v4531_v35 = vsub.f32 %v4526_v31, %v4530_v34 }
0x1ef0   : > { %v4532_v36 = vmul.f32 %v4531_v35, %v4531_v35 }
0x1ef2   : > { %v4533_v37 = vsel %vm934_vm0, %v4532_v36, 0.0 }
0x1ef3   : > { %4534 = vadd.xlane.f32.xlu2 %v4533_v37 }
0x1f66   : > { %v4535_v44 = vpop.xlane.xlu2 %4534 }
0x1f67   : > { %v4536_v45 = vmul.f32 %v4535_v44, %v5783_v53 }
0x1f69   : > { %v4537_v33 = vadd.f32 1e-05, %v4536_v45 }
0x1f6b   : > { %5374 = vrsqrt.f32 %v4537_v33  ;;  %vm4544_vm15 = vweird.f32 %v4537_v33 }
0x1f71   : > { %v5375_v47 = vpop.eup %5374 }
0x1f72   : > { %v4539_v48 = vmul.f32 %v5375_v47, %v4537_v33  ;;  %vm4545_vm1 = vweird.f32 %v5375_v47 }
0x1f73   : > { %vm4546_vm2 = vmor %vm4544_vm15, %vm4545_vm1 }
0x1f74   : > { %v4540_v50 = vmul.f32 %v5375_v47, %v4539_v48 }
0x1f76   : > { %v4541_v51 = vmul.f32 0.5, %v4540_v50 }
0x1f78   : > { %v4542_v54 = vsub.f32 1.5, %v4541_v51 }
0x1f7a   : > { %v4543_v56 = vmul.f32 %v5375_v47, %v4542_v54 }
0x1f7c   : > { %v4547_v59 = vsel %vm4546_vm2, %v5375_v47, %v4543_v56 }
0x1f7d   : > { %v4548_v49 = vmul.f32 %v4547_v59, %v4531_v35  ;;  %v5259_v35 = vld [vmem:[%s6974_s30] ss:$0 sm:$0xff] }
0x1f7f   : > { %v4550_v52 = vmul.f32 %v4549_v58, %v4548_v49 }
0x1f81   : > { %v4552_v60 = vadd.f32 %v4551_v21, %v4550_v52 }
0x1f83   : > { %5033 = vmatmul.msk.f32.vlgmr.msrb.gmra.mxu1 %vm934_vm0, %v4552_v60 }
0x2000   : > { %v4583_v2 = vpop.f32.mrf.mxu1 }
0x2001   : > { %v4584_v27 = vadd.f32 %v5257_v1, %v4583_v2 }
0x2003   : > { %v4586_v29 = vmax.f32 %v4584_v27, 0.0 }
0x2005   : > { %5043 = vmatmul.msk.f32.vlgmr.msra.gmra.mxu2 %vm1456_vm6, %v4586_v29 }
0x2088   : > { %v4621_v3 = vpop.f32.mrf.mxu2 }
0x2089   : > { %v4622_v6 = vadd.f32 %v5258_v57, %v4621_v3 }
0x208b   : > { %v4624_v7 = vadd.f32 %v4622_v6, %v4552_v60 }
0x208d   : > { %v4625_v9 = vsel %vm934_vm0, %v4624_v7, 0.0 }
0x208e   : > { %4626 = vadd.xlane.f32.xlu1 %v4625_v9 }
0x2101   : > { %v4627_v10 = vpop.xlane.xlu1 %4626 }
0x2102   : > { %v4628_v22 = vmul.f32 %v4627_v10, %v5783_v53 }
0x2104   : > { %v4629_v5 = vsub.f32 %v4624_v7, %v4628_v22 }
0x2106   : > { %v4630_v11 = vmul.f32 %v4629_v5, %v4629_v5 }
0x2108   : > { %v4631_v12 = vsel %vm934_vm0, %v4630_v11, 0.0 }
0x2109   : > { %4632 = vadd.xlane.f32.xlu0 %v4631_v12 }
0x217c   : > { %v4633_v18 = vpop.xlane.xlu0 %4632 }
0x217d   : > { %v4634_v20 = vmul.f32 %v4633_v18, %v5783_v53 }
0x217f   : > { %v4635_v23 = vadd.f32 1e-05, %v4634_v20 }
0x2181   : > { %5376 = vrsqrt.f32 %v4635_v23  ;;  %vm4642_vm3 = vweird.f32 %v4635_v23 }
0x2187   : > { %v5377_v13 = vpop.eup %5376 }
0x2188   : > { %v4637_v24 = vmul.f32 %v5377_v13, %v4635_v23  ;;  %vm4643_vm6 = vweird.f32 %v5377_v13 }
0x2189   : > { %vm4644_vm4 = vmor %vm4642_vm3, %vm4643_vm6 }
0x218a   : > { %v4638_v19 = vmul.f32 %v5377_v13, %v4637_v24 }
0x218c   : > { %v4639_v25 = vmul.f32 0.5, %v4638_v19 }
0x218e   : > { %v4640_v26 = vsub.f32 1.5, %v4639_v25 }
0x2190   : > { %v4641_v28 = vmul.f32 %v5377_v13, %v4640_v26 }
0x2192   : > { %v4645_v31 = vsel %vm4644_vm4, %v5377_v13, %v4641_v28 }
0x2193   : > { %v4646_v8 = vmul.f32 %v4645_v31, %v4629_v5 }
0x2195   : > { %v4648_v53 = vmul.f32 %v4647_v30, %v4646_v8 }
0x2197   : > { %v4650_v34 = vadd.f32 %v4649_v32, %v4648_v53 }
0x2199   : > { %5044 = vmatmul.msk.f32.vlgmr.msrb.gmra.mxu3 %vm934_vm0, %v4650_v34 }
0x221c   : > { %v4679_v55 = vpop.f32.mrf.mxu3 }
0x221d   : > { %v4680_v36 = vadd.f32 %v5259_v35, %v4679_v55 }
0x221f   : > { %4682 = vst [vmem:[%s875_s0] sm:$0xff] %v4680_v36 }
0x2220   : > { %5408 = shalt.err (!%p5405_p3)
}
0x2221   : > { %5049 = dma.vmem_to_hbm [thread:$0]  (%p5631_p5), %s4697_s1, 128, %s4699_s2, %s4684_s11  }
0x2222 PF: > { %s6975_s0 = sld [smem:[#allocation8_spill]] }
0x2223   : > { %s6976_s4 = sld [smem:[#allocation5_spill]] }
0x2228   : > { %p5055_p4 = scmp.ge.s32.totalorder %s6975_s0, 2 }
0x2229   : > { %s4710_s26 = sand.u32 1, %s6976_s4  }
0x222a   : > { %p5052_p7 = pnand %p5055_p4, %p5635_p6  ;;  %s4711_s30 = scalar_lea.sflag [#allocation3], %s4710_s26 }
0x222c   : > { %p5053_p8 = pneg %p5052_p7 }
0x222e   : > { %5426 = dma.done.wait (%p5053_p8), %s4711_s30, 128  }
0x222f   : > { %5428 = vsyncadd (%p5053_p8), %s4711_s30, 4294967168  ;;  %s6978_s30 = sld [smem:[#allocation10_spill]] }
0x2230   : > { %s6979_s8 = sld [smem:[#allocation6_spill]] }
0x2231   : > { %s6980_s5 = sld [smem:[#allocation7_spill]] }
0x2232   : > { %s6981_s9 = sld [smem:[#allocation11_spill]] }
0x2235   : > { %p38_p9 = scmp.ge.s32.totalorder %s6978_s30, 4  }
0x2237   :  { %40 = sbr.rel (!%p38_p9) target bundleno = 24 (0x18), region = 198 }
0x223c   :  { %4717 = vsyncpa [#allocation3], 1 }
0x223d   :  { %4719 = vsyncpa [#allocation3 + $0x1], 1 }

</bundles_post_ra>
